<compile_context>
chip_gen: v6e
topology: v6e:2x2x1
jax: 0.10.0
libtpu: 0.0.40
codegen_flags: <defaults>
</compile_context>

<pallas_src>
import functools

import jax
import jax.numpy as jnp
from jax.experimental import pallas as pl
from jax.experimental.pallas import tpu as pltpu


CFG = dict(
    num_nodes=8, in_dim=2, out_dim=12,
    residual_channels=16, dilation_channels=16,
    skip_channels=32, end_channels=64,
    kernel_size=2, blocks=4, layers=2,
)

_IN_DIM_PAD = 8      # zero-pad in_dim (2 -> 8); exact, layout-friendly


def receptive_field(cfg):
    rf = 1
    for _ in range(cfg["blocks"]):
        add = cfg["kernel_size"] - 1
        for _ in range(cfg["layers"]):
            rf += add
            add *= 2
    return rf


# ----------------------------- parameters -----------------------------

def init_params(key, cfg):
    N = cfg["num_nodes"]
    D = cfg["in_dim"]
    RC = cfg["residual_channels"]
    DC = cfg["dilation_channels"]
    SC = cfg["skip_channels"]
    EC = cfg["end_channels"]
    OD = cfg["out_dim"]
    nlayers = cfg["blocks"] * cfg["layers"]
    support_len = 1                       # supports=None + adaptive adjacency
    gcn_in = (2 * support_len + 1) * DC   # order=2

    keys = iter(jax.random.split(key, 8 + 14 * nlayers))
    nrm = lambda shape, s=0.1: s * jax.random.normal(next(keys), shape, jnp.float32)

    p = {
        "nodevec1": jax.random.normal(next(keys), (N, 10), jnp.float32),
        "nodevec2": jax.random.normal(next(keys), (10, N), jnp.float32),
        "start_w": nrm((D, RC)), "start_b": nrm((RC,)),
        "end1_w": nrm((SC, EC)), "end1_b": nrm((EC,)),
        "end2_w": nrm((EC, OD)), "end2_b": nrm((OD,)),
        "layers": [],
    }
    eps = 1e-5
    for _ in range(nlayers):
        wf0, wf1, bf = nrm((RC, DC)), nrm((RC, DC)), nrm((DC,))
        wg0, wg1, bg = nrm((RC, DC)), nrm((RC, DC)), nrm((DC,))
        skip_w, skip_b = nrm((DC, SC)), nrm((SC,))
        gcn_w, gcn_b = nrm((gcn_in, RC)), nrm((RC,))
        gamma = 1.0 + nrm((RC,))
        beta = nrm((RC,))
        run_mean = nrm((RC,))
        run_var = 1.0 + jnp.abs(nrm((RC,)))
        scale = gamma / jnp.sqrt(run_var + eps)
        shift = beta - run_mean * scale
        p["layers"].append(dict(
            wf0=wf0, wf1=wf1, bf=bf, wg0=wg0, wg1=wg1, bg=bg,
            skip_w=skip_w, skip_b=skip_b, gcn_w=gcn_w, gcn_b=gcn_b,
            bn_scale=scale, bn_shift=shift,
        ))
    return p


def pack_params(p, cfg):
    """One-time preprocessing: adjacency hoist + weight coalescing/fusion."""
    HI = jax.lax.Precision.HIGHEST
    D = cfg["in_dim"]
    RC = cfg["residual_channels"]
    DC = cfg["dilation_channels"]
    SC = cfg["skip_channels"]
    EC = cfg["end_channels"]
    OD = cfg["out_dim"]
    L = p["layers"]

    # adaptive adjacency (parameter-only in inference) -> hoisted out of kernel
    adp = jax.nn.softmax(jnp.maximum(
        jnp.matmul(p["nodevec1"], p["nodevec2"], precision=HI), 0.0), axis=1)
    adp_t = adp.T                                         # 1-hop operator (transposed)
    adp2_t = jnp.matmul(adp_t, adp_t, precision=HI)       # == (adp @ adp).T, 2-hop

    lane_w = max(2 * DC, SC, RC)

    def padw(w):
        return jnp.pad(w, ((0, 0), (0, lane_w - w.shape[1])))

    wl, vl = [], []
    for lp in L:
        # per-layer weight slab: rows = [tap0 f|g, tap1 f|g, skip, gcnW0, gcnW1, gcnW2]
        wl.append(jnp.concatenate([
            padw(jnp.concatenate([lp["wf0"], lp["wg0"]], axis=1)),   # [RC, 2DC]
            padw(jnp.concatenate([lp["wf1"], lp["wg1"]], axis=1)),   # [RC, 2DC]
            padw(lp["skip_w"]),                                      # [DC, SC]
            padw(lp["gcn_w"][0:DC]),                                 # [DC, RC]
            padw(lp["gcn_w"][DC:2 * DC]),                            # [DC, RC]
            padw(lp["gcn_w"][2 * DC:3 * DC]),                        # [DC, RC]
        ], axis=0))                                                  # [2RC+4DC, lane_w]
        # per-layer vector slab: [bgate(2DC) | bskip(SC) | bgcn(RC) | bn_scale | bn_shift]
        vl.append(jnp.concatenate([
            lp["bf"], lp["bg"], lp["skip_b"], lp["gcn_b"],
            lp["bn_scale"], lp["bn_shift"]]).reshape(1, -1))

    packed = {
        "adp_t": adp_t, "adp2_t": adp2_t,
        # start / end convs: weight rows followed by one bias row
        "start": jnp.concatenate(
            [jnp.pad(p["start_w"], ((0, _IN_DIM_PAD - D), (0, 0))),
             p["start_b"].reshape(1, RC)], axis=0),                  # [Dp+1, RC]
        "wlayer": jnp.stack(wl),                                     # [L, 2RC+4DC, lane_w]
        "vlayer": jnp.stack(vl),                                     # [L, 1, 2DC+SC+3RC]
        "end1": jnp.concatenate([p["end1_w"],
                                 p["end1_b"].reshape(1, EC)], axis=0),   # [SC+1, EC]
        "end2": jnp.concatenate([p["end2_w"],
                                 p["end2_b"].reshape(1, OD)], axis=0),   # [EC+1, OD]
    }
    return packed


# ----------------------------- fused kernel -----------------------------

def gwnet_kernel(x_ref, bd_ref, start_ref, wl_ref, vl_ref, end1_ref, end2_ref,
                 o_ref, *, blocks, layers, n_nodes, res_ch, dil_ch, skip_ch,
                 t_final):
    f32 = jnp.float32
    N, RC, DC, SC, Tf = n_nodes, res_ch, dil_ch, skip_ch, t_final
    Dp = start_ref.shape[0] - 1
    T0 = x_ref.shape[1] // N
    EC = end1_ref.shape[1]

    def mm(a, w):
        # flattened 2-D matmul on the MXU, f32 accumulation (default precision)
        return jnp.dot(a, w, preferred_element_type=f32)

    # ---- start conv (1x1) on the flattened [(T0*N), Dp] slab ---------------
    x = mm(x_ref[0], start_ref[0:Dp, :]) + start_ref[Dp:Dp + 1, :]   # [T0*N, RC]

    skip = None
    li = 0
    t_cur = T0
    gcn0 = 2 * RC + DC            # row offset of the GCN weight slabs in wlayer
    for _ in range(blocks):
        d = 1
        for _ in range(layers):
            tn = t_cur - d                              # kernel_size == 2
            rows = tn * N
            xl = x[0:rows, :]
            xr = x[d * N:, :]                           # also the residual tail

            # dilated filter|gate conv: two [rows,RC]@[RC,2*DC] matmuls + gate
            fg = (mm(xl, wl_ref[li, 0:RC, 0:2 * DC])
                  + mm(xr, wl_ref[li, RC:2 * RC, 0:2 * DC])
                  + vl_ref[li, :, 0:2 * DC])
            gated = jnp.tanh(fg[:, 0:DC]) * jax.nn.sigmoid(fg[:, DC:2 * DC])

            # skip 1x1: only the trailing Tf steps ever reach the output head
            s = (mm(gated[rows - Tf * N:rows, :], wl_ref[li, 2 * RC:2 * RC + DC, 0:SC])
                 + vl_ref[li, :, 2 * DC:2 * DC + SC])
            skip = s if skip is None else skip + s

            # GCN: two independent diffusion hops via block-diagonal operators
            #   bd[0] = I_t ⊗ adpᵀ,  bd[1] = I_t ⊗ (adp²)ᵀ   (precomputed)
            x1 = mm(bd_ref[0, 0:rows, 0:rows], gated)
            x2 = mm(bd_ref[1, 0:rows, 0:rows], gated)
            h = (mm(gated, wl_ref[li, gcn0:gcn0 + DC, 0:RC])
                 + mm(x1, wl_ref[li, gcn0 + DC:gcn0 + 2 * DC, 0:RC])
                 + mm(x2, wl_ref[li, gcn0 + 2 * DC:gcn0 + 3 * DC, 0:RC])
                 + vl_ref[li, :, 2 * DC + SC:2 * DC + SC + RC])
            # TODO(synk): F.dropout(training=True) is stochastic; identity here (inference).

            # residual add + folded eval-mode BatchNorm, fused epilogue
            bns = vl_ref[li, :, 2 * DC + SC + RC:2 * DC + SC + 2 * RC]
            bnh = vl_ref[li, :, 2 * DC + SC + 2 * RC:2 * DC + SC + 3 * RC]
            x = (h + xr) * bns + bnh

            t_cur = tn
            d *= 2
            li += 1

    # ---- output head -------------------------------------------------------
    y = jnp.maximum(skip, 0.0)
    y = jnp.maximum(mm(y, end1_ref[0:SC, :]) + end1_ref[SC:SC + 1, :], 0.0)
    y = mm(y, end2_ref[0:EC, :]) + end2_ref[EC:EC + 1, :]            # [Tf*N, OD]
    o_ref[0] = y


def _const_map(nd):
    return lambda b: (0,) * nd


def gwnet_forward(packed, x_in, cfg):
    """x_in: [B, in_dim, N, S] (PyTorch NCHW). Returns [B, out_dim, N, T_final]."""
    assert cfg["kernel_size"] == 2
    B, D, N, S = x_in.shape
    OD = cfg["out_dim"]
    RC = cfg["residual_channels"]
    DC = cfg["dilation_channels"]
    SC = cfg["skip_channels"]
    rf = receptive_field(cfg)
    if S < rf:
        x_in = jnp.pad(x_in, ((0, 0), (0, 0), (0, 0), (rf - S, 0)))
    T0 = x_in.shape[3]
    Tf = T0 - (rf - 1)

    # one-time layout prep in XLA: NCHW -> [B, T0*N, Dp] (channels-last, flattened rows)
    x = jnp.transpose(x_in, (0, 3, 2, 1)).astype(jnp.float32)        # [B, T0, N, D]
    Dp = packed["start"].shape[0] - 1
    if D < Dp:
        x = jnp.pad(x, ((0, 0), (0, 0), (0, 0), (0, Dp - D)))
    x = x.reshape(B, T0 * N, Dp)

    # block-diagonal diffusion operators sized for the longest conv output (T0-1)
    tmax = T0 - 1
    eye = jnp.eye(tmax, dtype=jnp.float32)
    bd = jnp.stack([jnp.kron(eye, packed["adp_t"]),
                    jnp.kron(eye, packed["adp2_t"])])                # [2, tmax*N, tmax*N]

    weights = [bd, packed["start"], packed["wlayer"], packed["vlayer"],
               packed["end1"], packed["end2"]]

    kern = functools.partial(
        gwnet_kernel, blocks=cfg["blocks"], layers=cfg["layers"],
        n_nodes=N, res_ch=RC, dil_ch=DC, skip_ch=SC, t_final=Tf)

    out = pl.pallas_call(
        kern,
        out_shape=jax.ShapeDtypeStruct((B, Tf * N, OD), jnp.float32),
        grid=(B,),
        in_specs=[pl.BlockSpec((1, T0 * N, Dp), lambda b: (b, 0, 0))]
                 + [pl.BlockSpec(w.shape, _const_map(w.ndim)) for w in weights],
        out_specs=pl.BlockSpec((1, Tf * N, OD), lambda b: (b, 0, 0)),
        compiler_params=pltpu.CompilerParams(
            dimension_semantics=("parallel",)),
    )(x, *weights)

    out = out.reshape(B, Tf, N, OD)
    return jnp.transpose(out, (0, 3, 2, 1))                          # [B, OD, N, Tf]


# --------------------- pure-JAX reference (for checking) ---------------------

def gwnet_forward_ref(params, x_in, cfg):
    HI = jax.lax.Precision.HIGHEST
    B, D, N, S = x_in.shape
    rf = receptive_field(cfg)
    if S < rf:
        x_in = jnp.pad(x_in, ((0, 0), (0, 0), (0, 0), (rf - S, 0)))
    x = jnp.transpose(x_in, (0, 2, 3, 1)).astype(jnp.float32)        # [B, N, T, D]
    x = jnp.matmul(x, params["start_w"], precision=HI) + params["start_b"]
    adp = jax.nn.softmax(
        jnp.maximum(jnp.matmul(params["nodevec1"], params["nodevec2"],
                               precision=HI), 0.0), axis=1)
    skip = None
    li = 0
    for _ in range(cfg["blocks"]):
        d = 1
        for _ in range(cfg["layers"]):
            lp = params["layers"][li]
            residual = x
            Tn = x.shape[2] - d
            xl, xr = x[:, :, :Tn, :], x[:, :, d:, :]
            f = jnp.tanh(jnp.matmul(xl, lp["wf0"], precision=HI)
                         + jnp.matmul(xr, lp["wf1"], precision=HI) + lp["bf"])
            g = jax.nn.sigmoid(jnp.matmul(xl, lp["wg0"], precision=HI)
                               + jnp.matmul(xr, lp["wg1"], precision=HI) + lp["bg"])
            x = f * g
            s = jnp.matmul(x, lp["skip_w"], precision=HI) + lp["skip_b"]
            skip = s if skip is None else s + skip[:, :, -Tn:, :]
            x1 = jnp.einsum("bvtc,vw->bwtc", x, adp, precision=HI)
            x2 = jnp.einsum("bvtc,vw->bwtc", x1, adp, precision=HI)
            h = jnp.concatenate([x, x1, x2], axis=-1)
            x = jnp.matmul(h, lp["gcn_w"], precision=HI) + lp["gcn_b"]
            x = (x + residual[:, :, -Tn:, :]) * lp["bn_scale"] + lp["bn_shift"]
            d *= 2
            li += 1
    y = jnp.maximum(skip, 0.0)
    y = jnp.maximum(jnp.matmul(y, params["end1_w"], precision=HI)
                    + params["end1_b"], 0.0)
    y = jnp.matmul(y, params["end2_w"], precision=HI) + params["end2_b"]
    return jnp.transpose(y, (0, 3, 1, 2))


# ----------------------------------- main -----------------------------------

if __name__ == "__main__":
    cfg = CFG
    key = jax.random.PRNGKey(0)
    pkey, xkey = jax.random.split(key)
    params = init_params(pkey, cfg)
    packed = pack_params(params, cfg)

    B, S = 2, 12
    x = jax.random.normal(xkey, (B, cfg["in_dim"], cfg["num_nodes"], S), jnp.float32)

    fwd = jax.jit(lambda pk, xin: gwnet_forward(pk, xin, cfg))
    out = jax.block_until_ready(fwd(packed, x))
    assert out.shape == (B, cfg["out_dim"], cfg["num_nodes"], 1), out.shape

    ref = gwnet_forward_ref(params, x, cfg)
    err = float(jnp.max(jnp.abs(out - ref)))
    # Kernel deliberately uses default MXU matmul precision (reference uses
    # Precision.HIGHEST); tolerance covers that while still catching real bugs.
    assert err < 5e-3, f"mismatch vs pure-JAX reference: {err}"

    print("KERNEL_OK")
</pallas_src>

<mosaic_0001>
module attributes {stable_mosaic.version = 11 : i64} {
  func.func @gwnet_kernel(%arg0: i32, %arg1: memref<1x104x8xf32, #tpu.memory_space<vmem>>, %arg2: memref<2x96x96xf32, #tpu.memory_space<vmem>>, %arg3: memref<9x16xf32, #tpu.memory_space<vmem>>, %arg4: memref<8x96x32xf32, #tpu.memory_space<vmem>>, %arg5: memref<8x1x112xf32, #tpu.memory_space<vmem>>, %arg6: memref<33x64xf32, #tpu.memory_space<vmem>>, %arg7: memref<65x12xf32, #tpu.memory_space<vmem>>, %arg8: memref<1x8x12xf32, #tpu.memory_space<vmem>>) attributes {dimension_semantics = [#tpu.dimension_semantics<parallel>], iteration_bounds = array<i64: 2>, scalar_prefetch = 0 : i64, scratch_operands = 0 : i64, tpu.core_type = #tpu.core_type<tc>, window_params = [{transform_indices = @transform_0, window_bounds = array<i64: 1, 104, 8>}, {pipeline_mode = #tpu.pipeline_mode<synchronous>, transform_indices = @transform_1, window_bounds = array<i64: 2, 96, 96>}, {pipeline_mode = #tpu.pipeline_mode<synchronous>, transform_indices = @transform_2, window_bounds = array<i64: 9, 16>}, {pipeline_mode = #tpu.pipeline_mode<synchronous>, transform_indices = @transform_3, window_bounds = array<i64: 8, 96, 32>}, {pipeline_mode = #tpu.pipeline_mode<synchronous>, transform_indices = @transform_4, window_bounds = array<i64: 8, 1, 112>}, {pipeline_mode = #tpu.pipeline_mode<synchronous>, transform_indices = @transform_5, window_bounds = array<i64: 33, 64>}, {pipeline_mode = #tpu.pipeline_mode<synchronous>, transform_indices = @transform_6, window_bounds = array<i64: 65, 12>}, {transform_indices = @transform_7, window_bounds = array<i64: 1, 8, 12>}]} {
    %c0 = arith.constant 0 : index
    %c0_0 = arith.constant 0 : index
    %c0_1 = arith.constant 0 : index
    %0 = vector.load %arg1[%c0, %c0_0, %c0_1] : memref<1x104x8xf32, #tpu.memory_space<vmem>>, vector<1x104x8xf32>
    %1 = vector.shape_cast %0 : vector<1x104x8xf32> to vector<104x8xf32>
    %c0_2 = arith.constant 0 : index
    %c0_3 = arith.constant 0 : index
    %2 = vector.load %arg3[%c0_2, %c0_3] : memref<9x16xf32, #tpu.memory_space<vmem>>, vector<8x16xf32>
    %cst = arith.constant dense<0.000000e+00> : vector<104x16xf32>
    %3 = tpu.matmul %1, %2, %cst {dimension_numbers = #tpu.dot_dimension_numbers<[1], [0], [0], [1], [0, 0, 1, 1], [], []>} : vector<104x8xf32>, vector<8x16xf32>, vector<104x16xf32> -> vector<104x16xf32>
    %c8 = arith.constant 8 : index
    %c0_4 = arith.constant 0 : index
    %4 = vector.load %arg3[%c8, %c0_4] : memref<9x16xf32, #tpu.memory_space<vmem>>, vector<1x16xf32>
    %5 = vector.broadcast %4 : vector<1x16xf32> to vector<104x16xf32>
    %6 = arith.addf %3, %5 : vector<104x16xf32>
    %7 = vector.extract_strided_slice %6 {offsets = [0, 0], sizes = [96, 16], strides = [1, 1]} : vector<104x16xf32> to vector<96x16xf32>
    %8 = vector.extract_strided_slice %6 {offsets = [8, 0], sizes = [96, 16], strides = [1, 1]} : vector<104x16xf32> to vector<96x16xf32>
    %c0_5 = arith.constant 0 : index
    %c0_6 = arith.constant 0 : index
    %c0_7 = arith.constant 0 : index
    %9 = vector.load %arg4[%c0_5, %c0_6, %c0_7] : memref<8x96x32xf32, #tpu.memory_space<vmem>>, vector<1x16x32xf32>
    %10 = vector.shape_cast %9 : vector<1x16x32xf32> to vector<16x32xf32>
    %cst_8 = arith.constant dense<0.000000e+00> : vector<96x32xf32>
    %11 = tpu.matmul %7, %10, %cst_8 {dimension_numbers = #tpu.dot_dimension_numbers<[1], [0], [0], [1], [0, 0, 1, 1], [], []>} : vector<96x16xf32>, vector<16x32xf32>, vector<96x32xf32> -> vector<96x32xf32>
    %c0_9 = arith.constant 0 : index
    %c16 = arith.constant 16 : index
    %c0_10 = arith.constant 0 : index
    %12 = vector.load %arg4[%c0_9, %c16, %c0_10] : memref<8x96x32xf32, #tpu.memory_space<vmem>>, vector<1x16x32xf32>
    %13 = vector.shape_cast %12 : vector<1x16x32xf32> to vector<16x32xf32>
    %cst_11 = arith.constant dense<0.000000e+00> : vector<96x32xf32>
    %14 = tpu.matmul %8, %13, %cst_11 {dimension_numbers = #tpu.dot_dimension_numbers<[1], [0], [0], [1], [0, 0, 1, 1], [], []>} : vector<96x16xf32>, vector<16x32xf32>, vector<96x32xf32> -> vector<96x32xf32>
    %15 = arith.addf %11, %14 : vector<96x32xf32>
    %c0_12 = arith.constant 0 : index
    %c0_13 = arith.constant 0 : index
    %c0_14 = arith.constant 0 : index
    %16 = vector.load %arg5[%c0_12, %c0_13, %c0_14] : memref<8x1x112xf32, #tpu.memory_space<vmem>>, vector<1x1x32xf32>
    %17 = vector.shape_cast %16 : vector<1x1x32xf32> to vector<1x32xf32>
    %18 = vector.broadcast %17 : vector<1x32xf32> to vector<96x32xf32>
    %19 = arith.addf %15, %18 : vector<96x32xf32>
    %20 = vector.extract_strided_slice %19 {offsets = [0, 0], sizes = [96, 16], strides = [1, 1]} : vector<96x32xf32> to vector<96x16xf32>
    %21 = math.tanh %20 : vector<96x16xf32>
    %22 = vector.extract_strided_slice %19 {offsets = [0, 16], sizes = [96, 16], strides = [1, 1]} : vector<96x32xf32> to vector<96x16xf32>
    %23 = arith.negf %22 : vector<96x16xf32>
    %24 = math.exp %23 : vector<96x16xf32>
    %cst_15 = arith.constant 1.000000e+00 : f32
    %25 = vector.broadcast %cst_15 : f32 to vector<96x16xf32>
    %26 = arith.addf %25, %24 : vector<96x16xf32>
    %27 = arith.divf %25, %26 : vector<96x16xf32>
    %28 = arith.mulf %21, %27 : vector<96x16xf32>
    %29 = vector.extract_strided_slice %28 {offsets = [88, 0], sizes = [8, 16], strides = [1, 1]} : vector<96x16xf32> to vector<8x16xf32>
    %c0_16 = arith.constant 0 : index
    %c32 = arith.constant 32 : index
    %c0_17 = arith.constant 0 : index
    %30 = vector.load %arg4[%c0_16, %c32, %c0_17] : memref<8x96x32xf32, #tpu.memory_space<vmem>>, vector<1x16x32xf32>
    %31 = vector.shape_cast %30 : vector<1x16x32xf32> to vector<16x32xf32>
    %cst_18 = arith.constant dense<0.000000e+00> : vector<8x32xf32>
    %32 = tpu.matmul %29, %31, %cst_18 {dimension_numbers = #tpu.dot_dimension_numbers<[1], [0], [0], [1], [0, 0, 1, 1], [], []>} : vector<8x16xf32>, vector<16x32xf32>, vector<8x32xf32> -> vector<8x32xf32>
    %c0_19 = arith.constant 0 : index
    %c0_20 = arith.constant 0 : index
    %c32_21 = arith.constant 32 : index
    %33 = vector.load %arg5[%c0_19, %c0_20, %c32_21] : memref<8x1x112xf32, #tpu.memory_space<vmem>>, vector<1x1x32xf32>
    %34 = vector.shape_cast %33 : vector<1x1x32xf32> to vector<1x32xf32>
    %35 = vector.broadcast %34 : vector<1x32xf32> to vector<8x32xf32>
    %36 = arith.addf %32, %35 : vector<8x32xf32>
    %c0_22 = arith.constant 0 : index
    %c0_23 = arith.constant 0 : index
    %c0_24 = arith.constant 0 : index
    %37 = vector.load %arg2[%c0_22, %c0_23, %c0_24] : memref<2x96x96xf32, #tpu.memory_space<vmem>>, vector<1x96x96xf32>
    %38 = vector.shape_cast %37 : vector<1x96x96xf32> to vector<96x96xf32>
    %cst_25 = arith.constant dense<0.000000e+00> : vector<96x16xf32>
    %39 = tpu.matmul %38, %28, %cst_25 {dimension_numbers = #tpu.dot_dimension_numbers<[1], [0], [0], [1], [0, 0, 1, 1], [], []>} : vector<96x96xf32>, vector<96x16xf32>, vector<96x16xf32> -> vector<96x16xf32>
    %c1 = arith.constant 1 : index
    %c0_26 = arith.constant 0 : index
    %c0_27 = arith.constant 0 : index
    %40 = vector.load %arg2[%c1, %c0_26, %c0_27] : memref<2x96x96xf32, #tpu.memory_space<vmem>>, vector<1x96x96xf32>
    %41 = vector.shape_cast %40 : vector<1x96x96xf32> to vector<96x96xf32>
    %cst_28 = arith.constant dense<0.000000e+00> : vector<96x16xf32>
    %42 = tpu.matmul %41, %28, %cst_28 {dimension_numbers = #tpu.dot_dimension_numbers<[1], [0], [0], [1], [0, 0, 1, 1], [], []>} : vector<96x96xf32>, vector<96x16xf32>, vector<96x16xf32> -> vector<96x16xf32>
    %c0_29 = arith.constant 0 : index
    %c48 = arith.constant 48 : index
    %c0_30 = arith.constant 0 : index
    %43 = vector.load %arg4[%c0_29, %c48, %c0_30] : memref<8x96x32xf32, #tpu.memory_space<vmem>>, vector<1x16x16xf32>
    %44 = vector.shape_cast %43 : vector<1x16x16xf32> to vector<16x16xf32>
    %cst_31 = arith.constant dense<0.000000e+00> : vector<96x16xf32>
    %45 = tpu.matmul %28, %44, %cst_31 {dimension_numbers = #tpu.dot_dimension_numbers<[1], [0], [0], [1], [0, 0, 1, 1], [], []>} : vector<96x16xf32>, vector<16x16xf32>, vector<96x16xf32> -> vector<96x16xf32>
    %c0_32 = arith.constant 0 : index
    %c64 = arith.constant 64 : index
    %c0_33 = arith.constant 0 : index
    %46 = vector.load %arg4[%c0_32, %c64, %c0_33] : memref<8x96x32xf32, #tpu.memory_space<vmem>>, vector<1x16x16xf32>
    %47 = vector.shape_cast %46 : vector<1x16x16xf32> to vector<16x16xf32>
    %cst_34 = arith.constant dense<0.000000e+00> : vector<96x16xf32>
    %48 = tpu.matmul %39, %47, %cst_34 {dimension_numbers = #tpu.dot_dimension_numbers<[1], [0], [0], [1], [0, 0, 1, 1], [], []>} : vector<96x16xf32>, vector<16x16xf32>, vector<96x16xf32> -> vector<96x16xf32>
    %49 = arith.addf %45, %48 : vector<96x16xf32>
    %c0_35 = arith.constant 0 : index
    %c80 = arith.constant 80 : index
    %c0_36 = arith.constant 0 : index
    %50 = vector.load %arg4[%c0_35, %c80, %c0_36] : memref<8x96x32xf32, #tpu.memory_space<vmem>>, vector<1x16x16xf32>
    %51 = vector.shape_cast %50 : vector<1x16x16xf32> to vector<16x16xf32>
    %cst_37 = arith.constant dense<0.000000e+00> : vector<96x16xf32>
    %52 = tpu.matmul %42, %51, %cst_37 {dimension_numbers = #tpu.dot_dimension_numbers<[1], [0], [0], [1], [0, 0, 1, 1], [], []>} : vector<96x16xf32>, vector<16x16xf32>, vector<96x16xf32> -> vector<96x16xf32>
    %53 = arith.addf %49, %52 : vector<96x16xf32>
    %c0_38 = arith.constant 0 : index
    %c0_39 = arith.constant 0 : index
    %c64_40 = arith.constant 64 : index
    %54 = vector.load %arg5[%c0_38, %c0_39, %c64_40] : memref<8x1x112xf32, #tpu.memory_space<vmem>>, vector<1x1x16xf32>
    %55 = vector.shape_cast %54 : vector<1x1x16xf32> to vector<1x16xf32>
    %56 = vector.broadcast %55 : vector<1x16xf32> to vector<96x16xf32>
    %57 = arith.addf %53, %56 : vector<96x16xf32>
    %c0_41 = arith.constant 0 : index
    %c0_42 = arith.constant 0 : index
    %c80_43 = arith.constant 80 : index
    %58 = vector.load %arg5[%c0_41, %c0_42, %c80_43] : memref<8x1x112xf32, #tpu.memory_space<vmem>>, vector<1x1x16xf32>
    %59 = vector.shape_cast %58 : vector<1x1x16xf32> to vector<1x16xf32>
    %c0_44 = arith.constant 0 : index
    %c0_45 = arith.constant 0 : index
    %c96 = arith.constant 96 : index
    %60 = vector.load %arg5[%c0_44, %c0_45, %c96] : memref<8x1x112xf32, #tpu.memory_space<vmem>>, vector<1x1x16xf32>
    %61 = vector.shape_cast %60 : vector<1x1x16xf32> to vector<1x16xf32>
    %62 = arith.addf %57, %8 : vector<96x16xf32>
    %63 = vector.broadcast %59 : vector<1x16xf32> to vector<96x16xf32>
    %64 = arith.mulf %62, %63 : vector<96x16xf32>
    %65 = vector.broadcast %61 : vector<1x16xf32> to vector<96x16xf32>
    %66 = arith.addf %64, %65 : vector<96x16xf32>
    %67 = vector.extract_strided_slice %66 {offsets = [0, 0], sizes = [80, 16], strides = [1, 1]} : vector<96x16xf32> to vector<80x16xf32>
    %68 = vector.extract_strided_slice %66 {offsets = [16, 0], sizes = [80, 16], strides = [1, 1]} : vector<96x16xf32> to vector<80x16xf32>
    %c1_46 = arith.constant 1 : index
    %c0_47 = arith.constant 0 : index
    %c0_48 = arith.constant 0 : index
    %69 = vector.load %arg4[%c1_46, %c0_47, %c0_48] : memref<8x96x32xf32, #tpu.memory_space<vmem>>, vector<1x16x32xf32>
    %70 = vector.shape_cast %69 : vector<1x16x32xf32> to vector<16x32xf32>
    %cst_49 = arith.constant dense<0.000000e+00> : vector<80x32xf32>
    %71 = tpu.matmul %67, %70, %cst_49 {dimension_numbers = #tpu.dot_dimension_numbers<[1], [0], [0], [1], [0, 0, 1, 1], [], []>} : vector<80x16xf32>, vector<16x32xf32>, vector<80x32xf32> -> vector<80x32xf32>
    %c1_50 = arith.constant 1 : index
    %c16_51 = arith.constant 16 : index
    %c0_52 = arith.constant 0 : index
    %72 = vector.load %arg4[%c1_50, %c16_51, %c0_52] : memref<8x96x32xf32, #tpu.memory_space<vmem>>, vector<1x16x32xf32>
    %73 = vector.shape_cast %72 : vector<1x16x32xf32> to vector<16x32xf32>
    %cst_53 = arith.constant dense<0.000000e+00> : vector<80x32xf32>
    %74 = tpu.matmul %68, %73, %cst_53 {dimension_numbers = #tpu.dot_dimension_numbers<[1], [0], [0], [1], [0, 0, 1, 1], [], []>} : vector<80x16xf32>, vector<16x32xf32>, vector<80x32xf32> -> vector<80x32xf32>
    %75 = arith.addf %71, %74 : vector<80x32xf32>
    %c1_54 = arith.constant 1 : index
    %c0_55 = arith.constant 0 : index
    %c0_56 = arith.constant 0 : index
    %76 = vector.load %arg5[%c1_54, %c0_55, %c0_56] : memref<8x1x112xf32, #tpu.memory_space<vmem>>, vector<1x1x32xf32>
    %77 = vector.shape_cast %76 : vector<1x1x32xf32> to vector<1x32xf32>
    %78 = vector.broadcast %77 : vector<1x32xf32> to vector<80x32xf32>
    %79 = arith.addf %75, %78 : vector<80x32xf32>
    %80 = vector.extract_strided_slice %79 {offsets = [0, 0], sizes = [80, 16], strides = [1, 1]} : vector<80x32xf32> to vector<80x16xf32>
    %81 = math.tanh %80 : vector<80x16xf32>
    %82 = vector.extract_strided_slice %79 {offsets = [0, 16], sizes = [80, 16], strides = [1, 1]} : vector<80x32xf32> to vector<80x16xf32>
    %83 = arith.negf %82 : vector<80x16xf32>
    %84 = math.exp %83 : vector<80x16xf32>
    %cst_57 = arith.constant 1.000000e+00 : f32
    %85 = vector.broadcast %cst_57 : f32 to vector<80x16xf32>
    %86 = arith.addf %85, %84 : vector<80x16xf32>
    %87 = arith.divf %85, %86 : vector<80x16xf32>
    %88 = arith.mulf %81, %87 : vector<80x16xf32>
    %89 = vector.extract_strided_slice %88 {offsets = [72, 0], sizes = [8, 16], strides = [1, 1]} : vector<80x16xf32> to vector<8x16xf32>
    %c1_58 = arith.constant 1 : index
    %c32_59 = arith.constant 32 : index
    %c0_60 = arith.constant 0 : index
    %90 = vector.load %arg4[%c1_58, %c32_59, %c0_60] : memref<8x96x32xf32, #tpu.memory_space<vmem>>, vector<1x16x32xf32>
    %91 = vector.shape_cast %90 : vector<1x16x32xf32> to vector<16x32xf32>
    %cst_61 = arith.constant dense<0.000000e+00> : vector<8x32xf32>
    %92 = tpu.matmul %89, %91, %cst_61 {dimension_numbers = #tpu.dot_dimension_numbers<[1], [0], [0], [1], [0, 0, 1, 1], [], []>} : vector<8x16xf32>, vector<16x32xf32>, vector<8x32xf32> -> vector<8x32xf32>
    %c1_62 = arith.constant 1 : index
    %c0_63 = arith.constant 0 : index
    %c32_64 = arith.constant 32 : index
    %93 = vector.load %arg5[%c1_62, %c0_63, %c32_64] : memref<8x1x112xf32, #tpu.memory_space<vmem>>, vector<1x1x32xf32>
    %94 = vector.shape_cast %93 : vector<1x1x32xf32> to vector<1x32xf32>
    %95 = vector.broadcast %94 : vector<1x32xf32> to vector<8x32xf32>
    %96 = arith.addf %92, %95 : vector<8x32xf32>
    %97 = arith.addf %36, %96 : vector<8x32xf32>
    %c0_65 = arith.constant 0 : index
    %c0_66 = arith.constant 0 : index
    %c0_67 = arith.constant 0 : index
    %98 = vector.load %arg2[%c0_65, %c0_66, %c0_67] : memref<2x96x96xf32, #tpu.memory_space<vmem>>, vector<1x80x80xf32>
    %99 = vector.shape_cast %98 : vector<1x80x80xf32> to vector<80x80xf32>
    %cst_68 = arith.constant dense<0.000000e+00> : vector<80x16xf32>
    %100 = tpu.matmul %99, %88, %cst_68 {dimension_numbers = #tpu.dot_dimension_numbers<[1], [0], [0], [1], [0, 0, 1, 1], [], []>} : vector<80x80xf32>, vector<80x16xf32>, vector<80x16xf32> -> vector<80x16xf32>
    %c1_69 = arith.constant 1 : index
    %c0_70 = arith.constant 0 : index
    %c0_71 = arith.constant 0 : index
    %101 = vector.load %arg2[%c1_69, %c0_70, %c0_71] : memref<2x96x96xf32, #tpu.memory_space<vmem>>, vector<1x80x80xf32>
    %102 = vector.shape_cast %101 : vector<1x80x80xf32> to vector<80x80xf32>
    %cst_72 = arith.constant dense<0.000000e+00> : vector<80x16xf32>
    %103 = tpu.matmul %102, %88, %cst_72 {dimension_numbers = #tpu.dot_dimension_numbers<[1], [0], [0], [1], [0, 0, 1, 1], [], []>} : vector<80x80xf32>, vector<80x16xf32>, vector<80x16xf32> -> vector<80x16xf32>
    %c1_73 = arith.constant 1 : index
    %c48_74 = arith.constant 48 : index
    %c0_75 = arith.constant 0 : index
    %104 = vector.load %arg4[%c1_73, %c48_74, %c0_75] : memref<8x96x32xf32, #tpu.memory_space<vmem>>, vector<1x16x16xf32>
    %105 = vector.shape_cast %104 : vector<1x16x16xf32> to vector<16x16xf32>
    %cst_76 = arith.constant dense<0.000000e+00> : vector<80x16xf32>
    %106 = tpu.matmul %88, %105, %cst_76 {dimension_numbers = #tpu.dot_dimension_numbers<[1], [0], [0], [1], [0, 0, 1, 1], [], []>} : vector<80x16xf32>, vector<16x16xf32>, vector<80x16xf32> -> vector<80x16xf32>
    %c1_77 = arith.constant 1 : index
    %c64_78 = arith.constant 64 : index
    %c0_79 = arith.constant 0 : index
    %107 = vector.load %arg4[%c1_77, %c64_78, %c0_79] : memref<8x96x32xf32, #tpu.memory_space<vmem>>, vector<1x16x16xf32>
    %108 = vector.shape_cast %107 : vector<1x16x16xf32> to vector<16x16xf32>
    %cst_80 = arith.constant dense<0.000000e+00> : vector<80x16xf32>
    %109 = tpu.matmul %100, %108, %cst_80 {dimension_numbers = #tpu.dot_dimension_numbers<[1], [0], [0], [1], [0, 0, 1, 1], [], []>} : vector<80x16xf32>, vector<16x16xf32>, vector<80x16xf32> -> vector<80x16xf32>
    %110 = arith.addf %106, %109 : vector<80x16xf32>
    %c1_81 = arith.constant 1 : index
    %c80_82 = arith.constant 80 : index
    %c0_83 = arith.constant 0 : index
    %111 = vector.load %arg4[%c1_81, %c80_82, %c0_83] : memref<8x96x32xf32, #tpu.memory_space<vmem>>, vector<1x16x16xf32>
    %112 = vector.shape_cast %111 : vector<1x16x16xf32> to vector<16x16xf32>
    %cst_84 = arith.constant dense<0.000000e+00> : vector<80x16xf32>
    %113 = tpu.matmul %103, %112, %cst_84 {dimension_numbers = #tpu.dot_dimension_numbers<[1], [0], [0], [1], [0, 0, 1, 1], [], []>} : vector<80x16xf32>, vector<16x16xf32>, vector<80x16xf32> -> vector<80x16xf32>
    %114 = arith.addf %110, %113 : vector<80x16xf32>
    %c1_85 = arith.constant 1 : index
    %c0_86 = arith.constant 0 : index
    %c64_87 = arith.constant 64 : index
    %115 = vector.load %arg5[%c1_85, %c0_86, %c64_87] : memref<8x1x112xf32, #tpu.memory_space<vmem>>, vector<1x1x16xf32>
    %116 = vector.shape_cast %115 : vector<1x1x16xf32> to vector<1x16xf32>
    %117 = vector.broadcast %116 : vector<1x16xf32> to vector<80x16xf32>
    %118 = arith.addf %114, %117 : vector<80x16xf32>
    %c1_88 = arith.constant 1 : index
    %c0_89 = arith.constant 0 : index
    %c80_90 = arith.constant 80 : index
    %119 = vector.load %arg5[%c1_88, %c0_89, %c80_90] : memref<8x1x112xf32, #tpu.memory_space<vmem>>, vector<1x1x16xf32>
    %120 = vector.shape_cast %119 : vector<1x1x16xf32> to vector<1x16xf32>
    %c1_91 = arith.constant 1 : index
    %c0_92 = arith.constant 0 : index
    %c96_93 = arith.constant 96 : index
    %121 = vector.load %arg5[%c1_91, %c0_92, %c96_93] : memref<8x1x112xf32, #tpu.memory_space<vmem>>, vector<1x1x16xf32>
    %122 = vector.shape_cast %121 : vector<1x1x16xf32> to vector<1x16xf32>
    %123 = arith.addf %118, %68 : vector<80x16xf32>
    %124 = vector.broadcast %120 : vector<1x16xf32> to vector<80x16xf32>
    %125 = arith.mulf %123, %124 : vector<80x16xf32>
    %126 = vector.broadcast %122 : vector<1x16xf32> to vector<80x16xf32>
    %127 = arith.addf %125, %126 : vector<80x16xf32>
    %128 = vector.extract_strided_slice %127 {offsets = [0, 0], sizes = [72, 16], strides = [1, 1]} : vector<80x16xf32> to vector<72x16xf32>
    %129 = vector.extract_strided_slice %127 {offsets = [8, 0], sizes = [72, 16], strides = [1, 1]} : vector<80x16xf32> to vector<72x16xf32>
    %c2 = arith.constant 2 : index
    %c0_94 = arith.constant 0 : index
    %c0_95 = arith.constant 0 : index
    %130 = vector.load %arg4[%c2, %c0_94, %c0_95] : memref<8x96x32xf32, #tpu.memory_space<vmem>>, vector<1x16x32xf32>
    %131 = vector.shape_cast %130 : vector<1x16x32xf32> to vector<16x32xf32>
    %cst_96 = arith.constant dense<0.000000e+00> : vector<72x32xf32>
    %132 = tpu.matmul %128, %131, %cst_96 {dimension_numbers = #tpu.dot_dimension_numbers<[1], [0], [0], [1], [0, 0, 1, 1], [], []>} : vector<72x16xf32>, vector<16x32xf32>, vector<72x32xf32> -> vector<72x32xf32>
    %c2_97 = arith.constant 2 : index
    %c16_98 = arith.constant 16 : index
    %c0_99 = arith.constant 0 : index
    %133 = vector.load %arg4[%c2_97, %c16_98, %c0_99] : memref<8x96x32xf32, #tpu.memory_space<vmem>>, vector<1x16x32xf32>
    %134 = vector.shape_cast %133 : vector<1x16x32xf32> to vector<16x32xf32>
    %cst_100 = arith.constant dense<0.000000e+00> : vector<72x32xf32>
    %135 = tpu.matmul %129, %134, %cst_100 {dimension_numbers = #tpu.dot_dimension_numbers<[1], [0], [0], [1], [0, 0, 1, 1], [], []>} : vector<72x16xf32>, vector<16x32xf32>, vector<72x32xf32> -> vector<72x32xf32>
    %136 = arith.addf %132, %135 : vector<72x32xf32>
    %c2_101 = arith.constant 2 : index
    %c0_102 = arith.constant 0 : index
    %c0_103 = arith.constant 0 : index
    %137 = vector.load %arg5[%c2_101, %c0_102, %c0_103] : memref<8x1x112xf32, #tpu.memory_space<vmem>>, vector<1x1x32xf32>
    %138 = vector.shape_cast %137 : vector<1x1x32xf32> to vector<1x32xf32>
    %139 = vector.broadcast %138 : vector<1x32xf32> to vector<72x32xf32>
    %140 = arith.addf %136, %139 : vector<72x32xf32>
    %141 = vector.extract_strided_slice %140 {offsets = [0, 0], sizes = [72, 16], strides = [1, 1]} : vector<72x32xf32> to vector<72x16xf32>
    %142 = math.tanh %141 : vector<72x16xf32>
    %143 = vector.extract_strided_slice %140 {offsets = [0, 16], sizes = [72, 16], strides = [1, 1]} : vector<72x32xf32> to vector<72x16xf32>
    %144 = arith.negf %143 : vector<72x16xf32>
    %145 = math.exp %144 : vector<72x16xf32>
    %cst_104 = arith.constant 1.000000e+00 : f32
    %146 = vector.broadcast %cst_104 : f32 to vector<72x16xf32>
    %147 = arith.addf %146, %145 : vector<72x16xf32>
    %148 = arith.divf %146, %147 : vector<72x16xf32>
    %149 = arith.mulf %142, %148 : vector<72x16xf32>
    %150 = vector.extract_strided_slice %149 {offsets = [64, 0], sizes = [8, 16], strides = [1, 1]} : vector<72x16xf32> to vector<8x16xf32>
    %c2_105 = arith.constant 2 : index
    %c32_106 = arith.constant 32 : index
    %c0_107 = arith.constant 0 : index
    %151 = vector.load %arg4[%c2_105, %c32_106, %c0_107] : memref<8x96x32xf32, #tpu.memory_space<vmem>>, vector<1x16x32xf32>
    %152 = vector.shape_cast %151 : vector<1x16x32xf32> to vector<16x32xf32>
    %cst_108 = arith.constant dense<0.000000e+00> : vector<8x32xf32>
    %153 = tpu.matmul %150, %152, %cst_108 {dimension_numbers = #tpu.dot_dimension_numbers<[1], [0], [0], [1], [0, 0, 1, 1], [], []>} : vector<8x16xf32>, vector<16x32xf32>, vector<8x32xf32> -> vector<8x32xf32>
    %c2_109 = arith.constant 2 : index
    %c0_110 = arith.constant 0 : index
    %c32_111 = arith.constant 32 : index
    %154 = vector.load %arg5[%c2_109, %c0_110, %c32_111] : memref<8x1x112xf32, #tpu.memory_space<vmem>>, vector<1x1x32xf32>
    %155 = vector.shape_cast %154 : vector<1x1x32xf32> to vector<1x32xf32>
    %156 = vector.broadcast %155 : vector<1x32xf32> to vector<8x32xf32>
    %157 = arith.addf %153, %156 : vector<8x32xf32>
    %158 = arith.addf %97, %157 : vector<8x32xf32>
    %c0_112 = arith.constant 0 : index
    %c0_113 = arith.constant 0 : index
    %c0_114 = arith.constant 0 : index
    %159 = vector.load %arg2[%c0_112, %c0_113, %c0_114] : memref<2x96x96xf32, #tpu.memory_space<vmem>>, vector<1x72x72xf32>
    %160 = vector.shape_cast %159 : vector<1x72x72xf32> to vector<72x72xf32>
    %cst_115 = arith.constant dense<0.000000e+00> : vector<72x16xf32>
    %161 = tpu.matmul %160, %149, %cst_115 {dimension_numbers = #tpu.dot_dimension_numbers<[1], [0], [0], [1], [0, 0, 1, 1], [], []>} : vector<72x72xf32>, vector<72x16xf32>, vector<72x16xf32> -> vector<72x16xf32>
    %c1_116 = arith.constant 1 : index
    %c0_117 = arith.constant 0 : index
    %c0_118 = arith.constant 0 : index
    %162 = vector.load %arg2[%c1_116, %c0_117, %c0_118] : memref<2x96x96xf32, #tpu.memory_space<vmem>>, vector<1x72x72xf32>
    %163 = vector.shape_cast %162 : vector<1x72x72xf32> to vector<72x72xf32>
    %cst_119 = arith.constant dense<0.000000e+00> : vector<72x16xf32>
    %164 = tpu.matmul %163, %149, %cst_119 {dimension_numbers = #tpu.dot_dimension_numbers<[1], [0], [0], [1], [0, 0, 1, 1], [], []>} : vector<72x72xf32>, vector<72x16xf32>, vector<72x16xf32> -> vector<72x16xf32>
    %c2_120 = arith.constant 2 : index
    %c48_121 = arith.constant 48 : index
    %c0_122 = arith.constant 0 : index
    %165 = vector.load %arg4[%c2_120, %c48_121, %c0_122] : memref<8x96x32xf32, #tpu.memory_space<vmem>>, vector<1x16x16xf32>
    %166 = vector.shape_cast %165 : vector<1x16x16xf32> to vector<16x16xf32>
    %cst_123 = arith.constant dense<0.000000e+00> : vector<72x16xf32>
    %167 = tpu.matmul %149, %166, %cst_123 {dimension_numbers = #tpu.dot_dimension_numbers<[1], [0], [0], [1], [0, 0, 1, 1], [], []>} : vector<72x16xf32>, vector<16x16xf32>, vector<72x16xf32> -> vector<72x16xf32>
    %c2_124 = arith.constant 2 : index
    %c64_125 = arith.constant 64 : index
    %c0_126 = arith.constant 0 : index
    %168 = vector.load %arg4[%c2_124, %c64_125, %c0_126] : memref<8x96x32xf32, #tpu.memory_space<vmem>>, vector<1x16x16xf32>
    %169 = vector.shape_cast %168 : vector<1x16x16xf32> to vector<16x16xf32>
    %cst_127 = arith.constant dense<0.000000e+00> : vector<72x16xf32>
    %170 = tpu.matmul %161, %169, %cst_127 {dimension_numbers = #tpu.dot_dimension_numbers<[1], [0], [0], [1], [0, 0, 1, 1], [], []>} : vector<72x16xf32>, vector<16x16xf32>, vector<72x16xf32> -> vector<72x16xf32>
    %171 = arith.addf %167, %170 : vector<72x16xf32>
    %c2_128 = arith.constant 2 : index
    %c80_129 = arith.constant 80 : index
    %c0_130 = arith.constant 0 : index
    %172 = vector.load %arg4[%c2_128, %c80_129, %c0_130] : memref<8x96x32xf32, #tpu.memory_space<vmem>>, vector<1x16x16xf32>
    %173 = vector.shape_cast %172 : vector<1x16x16xf32> to vector<16x16xf32>
    %cst_131 = arith.constant dense<0.000000e+00> : vector<72x16xf32>
    %174 = tpu.matmul %164, %173, %cst_131 {dimension_numbers = #tpu.dot_dimension_numbers<[1], [0], [0], [1], [0, 0, 1, 1], [], []>} : vector<72x16xf32>, vector<16x16xf32>, vector<72x16xf32> -> vector<72x16xf32>
    %175 = arith.addf %171, %174 : vector<72x16xf32>
    %c2_132 = arith.constant 2 : index
    %c0_133 = arith.constant 0 : index
    %c64_134 = arith.constant 64 : index
    %176 = vector.load %arg5[%c2_132, %c0_133, %c64_134] : memref<8x1x112xf32, #tpu.memory_space<vmem>>, vector<1x1x16xf32>
    %177 = vector.shape_cast %176 : vector<1x1x16xf32> to vector<1x16xf32>
    %178 = vector.broadcast %177 : vector<1x16xf32> to vector<72x16xf32>
    %179 = arith.addf %175, %178 : vector<72x16xf32>
    %c2_135 = arith.constant 2 : index
    %c0_136 = arith.constant 0 : index
    %c80_137 = arith.constant 80 : index
    %180 = vector.load %arg5[%c2_135, %c0_136, %c80_137] : memref<8x1x112xf32, #tpu.memory_space<vmem>>, vector<1x1x16xf32>
    %181 = vector.shape_cast %180 : vector<1x1x16xf32> to vector<1x16xf32>
    %c2_138 = arith.constant 2 : index
    %c0_139 = arith.constant 0 : index
    %c96_140 = arith.constant 96 : index
    %182 = vector.load %arg5[%c2_138, %c0_139, %c96_140] : memref<8x1x112xf32, #tpu.memory_space<vmem>>, vector<1x1x16xf32>
    %183 = vector.shape_cast %182 : vector<1x1x16xf32> to vector<1x16xf32>
    %184 = arith.addf %179, %129 : vector<72x16xf32>
    %185 = vector.broadcast %181 : vector<1x16xf32> to vector<72x16xf32>
    %186 = arith.mulf %184, %185 : vector<72x16xf32>
    %187 = vector.broadcast %183 : vector<1x16xf32> to vector<72x16xf32>
    %188 = arith.addf %186, %187 : vector<72x16xf32>
    %189 = vector.extract_strided_slice %188 {offsets = [0, 0], sizes = [56, 16], strides = [1, 1]} : vector<72x16xf32> to vector<56x16xf32>
    %190 = vector.extract_strided_slice %188 {offsets = [16, 0], sizes = [56, 16], strides = [1, 1]} : vector<72x16xf32> to vector<56x16xf32>
    %c3 = arith.constant 3 : index
    %c0_141 = arith.constant 0 : index
    %c0_142 = arith.constant 0 : index
    %191 = vector.load %arg4[%c3, %c0_141, %c0_142] : memref<8x96x32xf32, #tpu.memory_space<vmem>>, vector<1x16x32xf32>
    %192 = vector.shape_cast %191 : vector<1x16x32xf32> to vector<16x32xf32>
    %cst_143 = arith.constant dense<0.000000e+00> : vector<56x32xf32>
    %193 = tpu.matmul %189, %192, %cst_143 {dimension_numbers = #tpu.dot_dimension_numbers<[1], [0], [0], [1], [0, 0, 1, 1], [], []>} : vector<56x16xf32>, vector<16x32xf32>, vector<56x32xf32> -> vector<56x32xf32>
    %c3_144 = arith.constant 3 : index
    %c16_145 = arith.constant 16 : index
    %c0_146 = arith.constant 0 : index
    %194 = vector.load %arg4[%c3_144, %c16_145, %c0_146] : memref<8x96x32xf32, #tpu.memory_space<vmem>>, vector<1x16x32xf32>
    %195 = vector.shape_cast %194 : vector<1x16x32xf32> to vector<16x32xf32>
    %cst_147 = arith.constant dense<0.000000e+00> : vector<56x32xf32>
    %196 = tpu.matmul %190, %195, %cst_147 {dimension_numbers = #tpu.dot_dimension_numbers<[1], [0], [0], [1], [0, 0, 1, 1], [], []>} : vector<56x16xf32>, vector<16x32xf32>, vector<56x32xf32> -> vector<56x32xf32>
    %197 = arith.addf %193, %196 : vector<56x32xf32>
    %c3_148 = arith.constant 3 : index
    %c0_149 = arith.constant 0 : index
    %c0_150 = arith.constant 0 : index
    %198 = vector.load %arg5[%c3_148, %c0_149, %c0_150] : memref<8x1x112xf32, #tpu.memory_space<vmem>>, vector<1x1x32xf32>
    %199 = vector.shape_cast %198 : vector<1x1x32xf32> to vector<1x32xf32>
    %200 = vector.broadcast %199 : vector<1x32xf32> to vector<56x32xf32>
    %201 = arith.addf %197, %200 : vector<56x32xf32>
    %202 = vector.extract_strided_slice %201 {offsets = [0, 0], sizes = [56, 16], strides = [1, 1]} : vector<56x32xf32> to vector<56x16xf32>
    %203 = math.tanh %202 : vector<56x16xf32>
    %204 = vector.extract_strided_slice %201 {offsets = [0, 16], sizes = [56, 16], strides = [1, 1]} : vector<56x32xf32> to vector<56x16xf32>
    %205 = arith.negf %204 : vector<56x16xf32>
    %206 = math.exp %205 : vector<56x16xf32>
    %cst_151 = arith.constant 1.000000e+00 : f32
    %207 = vector.broadcast %cst_151 : f32 to vector<56x16xf32>
    %208 = arith.addf %207, %206 : vector<56x16xf32>
    %209 = arith.divf %207, %208 : vector<56x16xf32>
    %210 = arith.mulf %203, %209 : vector<56x16xf32>
    %211 = vector.extract_strided_slice %210 {offsets = [48, 0], sizes = [8, 16], strides = [1, 1]} : vector<56x16xf32> to vector<8x16xf32>
    %c3_152 = arith.constant 3 : index
    %c32_153 = arith.constant 32 : index
    %c0_154 = arith.constant 0 : index
    %212 = vector.load %arg4[%c3_152, %c32_153, %c0_154] : memref<8x96x32xf32, #tpu.memory_space<vmem>>, vector<1x16x32xf32>
    %213 = vector.shape_cast %212 : vector<1x16x32xf32> to vector<16x32xf32>
    %cst_155 = arith.constant dense<0.000000e+00> : vector<8x32xf32>
    %214 = tpu.matmul %211, %213, %cst_155 {dimension_numbers = #tpu.dot_dimension_numbers<[1], [0], [0], [1], [0, 0, 1, 1], [], []>} : vector<8x16xf32>, vector<16x32xf32>, vector<8x32xf32> -> vector<8x32xf32>
    %c3_156 = arith.constant 3 : index
    %c0_157 = arith.constant 0 : index
    %c32_158 = arith.constant 32 : index
    %215 = vector.load %arg5[%c3_156, %c0_157, %c32_158] : memref<8x1x112xf32, #tpu.memory_space<vmem>>, vector<1x1x32xf32>
    %216 = vector.shape_cast %215 : vector<1x1x32xf32> to vector<1x32xf32>
    %217 = vector.broadcast %216 : vector<1x32xf32> to vector<8x32xf32>
    %218 = arith.addf %214, %217 : vector<8x32xf32>
    %219 = arith.addf %158, %218 : vector<8x32xf32>
    %c0_159 = arith.constant 0 : index
    %c0_160 = arith.constant 0 : index
    %c0_161 = arith.constant 0 : index
    %220 = vector.load %arg2[%c0_159, %c0_160, %c0_161] : memref<2x96x96xf32, #tpu.memory_space<vmem>>, vector<1x56x56xf32>
    %221 = vector.shape_cast %220 : vector<1x56x56xf32> to vector<56x56xf32>
    %cst_162 = arith.constant dense<0.000000e+00> : vector<56x16xf32>
    %222 = tpu.matmul %221, %210, %cst_162 {dimension_numbers = #tpu.dot_dimension_numbers<[1], [0], [0], [1], [0, 0, 1, 1], [], []>} : vector<56x56xf32>, vector<56x16xf32>, vector<56x16xf32> -> vector<56x16xf32>
    %c1_163 = arith.constant 1 : index
    %c0_164 = arith.constant 0 : index
    %c0_165 = arith.constant 0 : index
    %223 = vector.load %arg2[%c1_163, %c0_164, %c0_165] : memref<2x96x96xf32, #tpu.memory_space<vmem>>, vector<1x56x56xf32>
    %224 = vector.shape_cast %223 : vector<1x56x56xf32> to vector<56x56xf32>
    %cst_166 = arith.constant dense<0.000000e+00> : vector<56x16xf32>
    %225 = tpu.matmul %224, %210, %cst_166 {dimension_numbers = #tpu.dot_dimension_numbers<[1], [0], [0], [1], [0, 0, 1, 1], [], []>} : vector<56x56xf32>, vector<56x16xf32>, vector<56x16xf32> -> vector<56x16xf32>
    %c3_167 = arith.constant 3 : index
    %c48_168 = arith.constant 48 : index
    %c0_169 = arith.constant 0 : index
    %226 = vector.load %arg4[%c3_167, %c48_168, %c0_169] : memref<8x96x32xf32, #tpu.memory_space<vmem>>, vector<1x16x16xf32>
    %227 = vector.shape_cast %226 : vector<1x16x16xf32> to vector<16x16xf32>
    %cst_170 = arith.constant dense<0.000000e+00> : vector<56x16xf32>
    %228 = tpu.matmul %210, %227, %cst_170 {dimension_numbers = #tpu.dot_dimension_numbers<[1], [0], [0], [1], [0, 0, 1, 1], [], []>} : vector<56x16xf32>, vector<16x16xf32>, vector<56x16xf32> -> vector<56x16xf32>
    %c3_171 = arith.constant 3 : index
    %c64_172 = arith.constant 64 : index
    %c0_173 = arith.constant 0 : index
    %229 = vector.load %arg4[%c3_171, %c64_172, %c0_173] : memref<8x96x32xf32, #tpu.memory_space<vmem>>, vector<1x16x16xf32>
    %230 = vector.shape_cast %229 : vector<1x16x16xf32> to vector<16x16xf32>
    %cst_174 = arith.constant dense<0.000000e+00> : vector<56x16xf32>
    %231 = tpu.matmul %222, %230, %cst_174 {dimension_numbers = #tpu.dot_dimension_numbers<[1], [0], [0], [1], [0, 0, 1, 1], [], []>} : vector<56x16xf32>, vector<16x16xf32>, vector<56x16xf32> -> vector<56x16xf32>
    %232 = arith.addf %228, %231 : vector<56x16xf32>
    %c3_175 = arith.constant 3 : index
    %c80_176 = arith.constant 80 : index
    %c0_177 = arith.constant 0 : index
    %233 = vector.load %arg4[%c3_175, %c80_176, %c0_177] : memref<8x96x32xf32, #tpu.memory_space<vmem>>, vector<1x16x16xf32>
    %234 = vector.shape_cast %233 : vector<1x16x16xf32> to vector<16x16xf32>
    %cst_178 = arith.constant dense<0.000000e+00> : vector<56x16xf32>
    %235 = tpu.matmul %225, %234, %cst_178 {dimension_numbers = #tpu.dot_dimension_numbers<[1], [0], [0], [1], [0, 0, 1, 1], [], []>} : vector<56x16xf32>, vector<16x16xf32>, vector<56x16xf32> -> vector<56x16xf32>
    %236 = arith.addf %232, %235 : vector<56x16xf32>
    %c3_179 = arith.constant 3 : index
    %c0_180 = arith.constant 0 : index
    %c64_181 = arith.constant 64 : index
    %237 = vector.load %arg5[%c3_179, %c0_180, %c64_181] : memref<8x1x112xf32, #tpu.memory_space<vmem>>, vector<1x1x16xf32>
    %238 = vector.shape_cast %237 : vector<1x1x16xf32> to vector<1x16xf32>
    %239 = vector.broadcast %238 : vector<1x16xf32> to vector<56x16xf32>
    %240 = arith.addf %236, %239 : vector<56x16xf32>
    %c3_182 = arith.constant 3 : index
    %c0_183 = arith.constant 0 : index
    %c80_184 = arith.constant 80 : index
    %241 = vector.load %arg5[%c3_182, %c0_183, %c80_184] : memref<8x1x112xf32, #tpu.memory_space<vmem>>, vector<1x1x16xf32>
    %242 = vector.shape_cast %241 : vector<1x1x16xf32> to vector<1x16xf32>
    %c3_185 = arith.constant 3 : index
    %c0_186 = arith.constant 0 : index
    %c96_187 = arith.constant 96 : index
    %243 = vector.load %arg5[%c3_185, %c0_186, %c96_187] : memref<8x1x112xf32, #tpu.memory_space<vmem>>, vector<1x1x16xf32>
    %244 = vector.shape_cast %243 : vector<1x1x16xf32> to vector<1x16xf32>
    %245 = arith.addf %240, %190 : vector<56x16xf32>
    %246 = vector.broadcast %242 : vector<1x16xf32> to vector<56x16xf32>
    %247 = arith.mulf %245, %246 : vector<56x16xf32>
    %248 = vector.broadcast %244 : vector<1x16xf32> to vector<56x16xf32>
    %249 = arith.addf %247, %248 : vector<56x16xf32>
    %250 = vector.extract_strided_slice %249 {offsets = [0, 0], sizes = [48, 16], strides = [1, 1]} : vector<56x16xf32> to vector<48x16xf32>
    %251 = vector.extract_strided_slice %249 {offsets = [8, 0], sizes = [48, 16], strides = [1, 1]} : vector<56x16xf32> to vector<48x16xf32>
    %c4 = arith.constant 4 : index
    %c0_188 = arith.constant 0 : index
    %c0_189 = arith.constant 0 : index
    %252 = vector.load %arg4[%c4, %c0_188, %c0_189] : memref<8x96x32xf32, #tpu.memory_space<vmem>>, vector<1x16x32xf32>
    %253 = vector.shape_cast %252 : vector<1x16x32xf32> to vector<16x32xf32>
    %cst_190 = arith.constant dense<0.000000e+00> : vector<48x32xf32>
    %254 = tpu.matmul %250, %253, %cst_190 {dimension_numbers = #tpu.dot_dimension_numbers<[1], [0], [0], [1], [0, 0, 1, 1], [], []>} : vector<48x16xf32>, vector<16x32xf32>, vector<48x32xf32> -> vector<48x32xf32>
    %c4_191 = arith.constant 4 : index
    %c16_192 = arith.constant 16 : index
    %c0_193 = arith.constant 0 : index
    %255 = vector.load %arg4[%c4_191, %c16_192, %c0_193] : memref<8x96x32xf32, #tpu.memory_space<vmem>>, vector<1x16x32xf32>
    %256 = vector.shape_cast %255 : vector<1x16x32xf32> to vector<16x32xf32>
    %cst_194 = arith.constant dense<0.000000e+00> : vector<48x32xf32>
    %257 = tpu.matmul %251, %256, %cst_194 {dimension_numbers = #tpu.dot_dimension_numbers<[1], [0], [0], [1], [0, 0, 1, 1], [], []>} : vector<48x16xf32>, vector<16x32xf32>, vector<48x32xf32> -> vector<48x32xf32>
    %258 = arith.addf %254, %257 : vector<48x32xf32>
    %c4_195 = arith.constant 4 : index
    %c0_196 = arith.constant 0 : index
    %c0_197 = arith.constant 0 : index
    %259 = vector.load %arg5[%c4_195, %c0_196, %c0_197] : memref<8x1x112xf32, #tpu.memory_space<vmem>>, vector<1x1x32xf32>
    %260 = vector.shape_cast %259 : vector<1x1x32xf32> to vector<1x32xf32>
    %261 = vector.broadcast %260 : vector<1x32xf32> to vector<48x32xf32>
    %262 = arith.addf %258, %261 : vector<48x32xf32>
    %263 = vector.extract_strided_slice %262 {offsets = [0, 0], sizes = [48, 16], strides = [1, 1]} : vector<48x32xf32> to vector<48x16xf32>
    %264 = math.tanh %263 : vector<48x16xf32>
    %265 = vector.extract_strided_slice %262 {offsets = [0, 16], sizes = [48, 16], strides = [1, 1]} : vector<48x32xf32> to vector<48x16xf32>
    %266 = arith.negf %265 : vector<48x16xf32>
    %267 = math.exp %266 : vector<48x16xf32>
    %cst_198 = arith.constant 1.000000e+00 : f32
    %268 = vector.broadcast %cst_198 : f32 to vector<48x16xf32>
    %269 = arith.addf %268, %267 : vector<48x16xf32>
    %270 = arith.divf %268, %269 : vector<48x16xf32>
    %271 = arith.mulf %264, %270 : vector<48x16xf32>
    %272 = vector.extract_strided_slice %271 {offsets = [40, 0], sizes = [8, 16], strides = [1, 1]} : vector<48x16xf32> to vector<8x16xf32>
    %c4_199 = arith.constant 4 : index
    %c32_200 = arith.constant 32 : index
    %c0_201 = arith.constant 0 : index
    %273 = vector.load %arg4[%c4_199, %c32_200, %c0_201] : memref<8x96x32xf32, #tpu.memory_space<vmem>>, vector<1x16x32xf32>
    %274 = vector.shape_cast %273 : vector<1x16x32xf32> to vector<16x32xf32>
    %cst_202 = arith.constant dense<0.000000e+00> : vector<8x32xf32>
    %275 = tpu.matmul %272, %274, %cst_202 {dimension_numbers = #tpu.dot_dimension_numbers<[1], [0], [0], [1], [0, 0, 1, 1], [], []>} : vector<8x16xf32>, vector<16x32xf32>, vector<8x32xf32> -> vector<8x32xf32>
    %c4_203 = arith.constant 4 : index
    %c0_204 = arith.constant 0 : index
    %c32_205 = arith.constant 32 : index
    %276 = vector.load %arg5[%c4_203, %c0_204, %c32_205] : memref<8x1x112xf32, #tpu.memory_space<vmem>>, vector<1x1x32xf32>
    %277 = vector.shape_cast %276 : vector<1x1x32xf32> to vector<1x32xf32>
    %278 = vector.broadcast %277 : vector<1x32xf32> to vector<8x32xf32>
    %279 = arith.addf %275, %278 : vector<8x32xf32>
    %280 = arith.addf %219, %279 : vector<8x32xf32>
    %c0_206 = arith.constant 0 : index
    %c0_207 = arith.constant 0 : index
    %c0_208 = arith.constant 0 : index
    %281 = vector.load %arg2[%c0_206, %c0_207, %c0_208] : memref<2x96x96xf32, #tpu.memory_space<vmem>>, vector<1x48x48xf32>
    %282 = vector.shape_cast %281 : vector<1x48x48xf32> to vector<48x48xf32>
    %cst_209 = arith.constant dense<0.000000e+00> : vector<48x16xf32>
    %283 = tpu.matmul %282, %271, %cst_209 {dimension_numbers = #tpu.dot_dimension_numbers<[1], [0], [0], [1], [0, 0, 1, 1], [], []>} : vector<48x48xf32>, vector<48x16xf32>, vector<48x16xf32> -> vector<48x16xf32>
    %c1_210 = arith.constant 1 : index
    %c0_211 = arith.constant 0 : index
    %c0_212 = arith.constant 0 : index
    %284 = vector.load %arg2[%c1_210, %c0_211, %c0_212] : memref<2x96x96xf32, #tpu.memory_space<vmem>>, vector<1x48x48xf32>
    %285 = vector.shape_cast %284 : vector<1x48x48xf32> to vector<48x48xf32>
    %cst_213 = arith.constant dense<0.000000e+00> : vector<48x16xf32>
    %286 = tpu.matmul %285, %271, %cst_213 {dimension_numbers = #tpu.dot_dimension_numbers<[1], [0], [0], [1], [0, 0, 1, 1], [], []>} : vector<48x48xf32>, vector<48x16xf32>, vector<48x16xf32> -> vector<48x16xf32>
    %c4_214 = arith.constant 4 : index
    %c48_215 = arith.constant 48 : index
    %c0_216 = arith.constant 0 : index
    %287 = vector.load %arg4[%c4_214, %c48_215, %c0_216] : memref<8x96x32xf32, #tpu.memory_space<vmem>>, vector<1x16x16xf32>
    %288 = vector.shape_cast %287 : vector<1x16x16xf32> to vector<16x16xf32>
    %cst_217 = arith.constant dense<0.000000e+00> : vector<48x16xf32>
    %289 = tpu.matmul %271, %288, %cst_217 {dimension_numbers = #tpu.dot_dimension_numbers<[1], [0], [0], [1], [0, 0, 1, 1], [], []>} : vector<48x16xf32>, vector<16x16xf32>, vector<48x16xf32> -> vector<48x16xf32>
    %c4_218 = arith.constant 4 : index
    %c64_219 = arith.constant 64 : index
    %c0_220 = arith.constant 0 : index
    %290 = vector.load %arg4[%c4_218, %c64_219, %c0_220] : memref<8x96x32xf32, #tpu.memory_space<vmem>>, vector<1x16x16xf32>
    %291 = vector.shape_cast %290 : vector<1x16x16xf32> to vector<16x16xf32>
    %cst_221 = arith.constant dense<0.000000e+00> : vector<48x16xf32>
    %292 = tpu.matmul %283, %291, %cst_221 {dimension_numbers = #tpu.dot_dimension_numbers<[1], [0], [0], [1], [0, 0, 1, 1], [], []>} : vector<48x16xf32>, vector<16x16xf32>, vector<48x16xf32> -> vector<48x16xf32>
    %293 = arith.addf %289, %292 : vector<48x16xf32>
    %c4_222 = arith.constant 4 : index
    %c80_223 = arith.constant 80 : index
    %c0_224 = arith.constant 0 : index
    %294 = vector.load %arg4[%c4_222, %c80_223, %c0_224] : memref<8x96x32xf32, #tpu.memory_space<vmem>>, vector<1x16x16xf32>
    %295 = vector.shape_cast %294 : vector<1x16x16xf32> to vector<16x16xf32>
    %cst_225 = arith.constant dense<0.000000e+00> : vector<48x16xf32>
    %296 = tpu.matmul %286, %295, %cst_225 {dimension_numbers = #tpu.dot_dimension_numbers<[1], [0], [0], [1], [0, 0, 1, 1], [], []>} : vector<48x16xf32>, vector<16x16xf32>, vector<48x16xf32> -> vector<48x16xf32>
    %297 = arith.addf %293, %296 : vector<48x16xf32>
    %c4_226 = arith.constant 4 : index
    %c0_227 = arith.constant 0 : index
    %c64_228 = arith.constant 64 : index
    %298 = vector.load %arg5[%c4_226, %c0_227, %c64_228] : memref<8x1x112xf32, #tpu.memory_space<vmem>>, vector<1x1x16xf32>
    %299 = vector.shape_cast %298 : vector<1x1x16xf32> to vector<1x16xf32>
    %300 = vector.broadcast %299 : vector<1x16xf32> to vector<48x16xf32>
    %301 = arith.addf %297, %300 : vector<48x16xf32>
    %c4_229 = arith.constant 4 : index
    %c0_230 = arith.constant 0 : index
    %c80_231 = arith.constant 80 : index
    %302 = vector.load %arg5[%c4_229, %c0_230, %c80_231] : memref<8x1x112xf32, #tpu.memory_space<vmem>>, vector<1x1x16xf32>
    %303 = vector.shape_cast %302 : vector<1x1x16xf32> to vector<1x16xf32>
    %c4_232 = arith.constant 4 : index
    %c0_233 = arith.constant 0 : index
    %c96_234 = arith.constant 96 : index
    %304 = vector.load %arg5[%c4_232, %c0_233, %c96_234] : memref<8x1x112xf32, #tpu.memory_space<vmem>>, vector<1x1x16xf32>
    %305 = vector.shape_cast %304 : vector<1x1x16xf32> to vector<1x16xf32>
    %306 = arith.addf %301, %251 : vector<48x16xf32>
    %307 = vector.broadcast %303 : vector<1x16xf32> to vector<48x16xf32>
    %308 = arith.mulf %306, %307 : vector<48x16xf32>
    %309 = vector.broadcast %305 : vector<1x16xf32> to vector<48x16xf32>
    %310 = arith.addf %308, %309 : vector<48x16xf32>
    %311 = vector.extract_strided_slice %310 {offsets = [0, 0], sizes = [32, 16], strides = [1, 1]} : vector<48x16xf32> to vector<32x16xf32>
    %312 = vector.extract_strided_slice %310 {offsets = [16, 0], sizes = [32, 16], strides = [1, 1]} : vector<48x16xf32> to vector<32x16xf32>
    %c5 = arith.constant 5 : index
    %c0_235 = arith.constant 0 : index
    %c0_236 = arith.constant 0 : index
    %313 = vector.load %arg4[%c5, %c0_235, %c0_236] : memref<8x96x32xf32, #tpu.memory_space<vmem>>, vector<1x16x32xf32>
    %314 = vector.shape_cast %313 : vector<1x16x32xf32> to vector<16x32xf32>
    %cst_237 = arith.constant dense<0.000000e+00> : vector<32x32xf32>
    %315 = tpu.matmul %311, %314, %cst_237 {dimension_numbers = #tpu.dot_dimension_numbers<[1], [0], [0], [1], [0, 0, 1, 1], [], []>} : vector<32x16xf32>, vector<16x32xf32>, vector<32x32xf32> -> vector<32x32xf32>
    %c5_238 = arith.constant 5 : index
    %c16_239 = arith.constant 16 : index
    %c0_240 = arith.constant 0 : index
    %316 = vector.load %arg4[%c5_238, %c16_239, %c0_240] : memref<8x96x32xf32, #tpu.memory_space<vmem>>, vector<1x16x32xf32>
    %317 = vector.shape_cast %316 : vector<1x16x32xf32> to vector<16x32xf32>
    %cst_241 = arith.constant dense<0.000000e+00> : vector<32x32xf32>
    %318 = tpu.matmul %312, %317, %cst_241 {dimension_numbers = #tpu.dot_dimension_numbers<[1], [0], [0], [1], [0, 0, 1, 1], [], []>} : vector<32x16xf32>, vector<16x32xf32>, vector<32x32xf32> -> vector<32x32xf32>
    %319 = arith.addf %315, %318 : vector<32x32xf32>
    %c5_242 = arith.constant 5 : index
    %c0_243 = arith.constant 0 : index
    %c0_244 = arith.constant 0 : index
    %320 = vector.load %arg5[%c5_242, %c0_243, %c0_244] : memref<8x1x112xf32, #tpu.memory_space<vmem>>, vector<1x1x32xf32>
    %321 = vector.shape_cast %320 : vector<1x1x32xf32> to vector<1x32xf32>
    %322 = vector.broadcast %321 : vector<1x32xf32> to vector<32x32xf32>
    %323 = arith.addf %319, %322 : vector<32x32xf32>
    %324 = vector.extract_strided_slice %323 {offsets = [0, 0], sizes = [32, 16], strides = [1, 1]} : vector<32x32xf32> to vector<32x16xf32>
    %325 = math.tanh %324 : vector<32x16xf32>
    %326 = vector.extract_strided_slice %323 {offsets = [0, 16], sizes = [32, 16], strides = [1, 1]} : vector<32x32xf32> to vector<32x16xf32>
    %327 = arith.negf %326 : vector<32x16xf32>
    %328 = math.exp %327 : vector<32x16xf32>
    %cst_245 = arith.constant 1.000000e+00 : f32
    %329 = vector.broadcast %cst_245 : f32 to vector<32x16xf32>
    %330 = arith.addf %329, %328 : vector<32x16xf32>
    %331 = arith.divf %329, %330 : vector<32x16xf32>
    %332 = arith.mulf %325, %331 : vector<32x16xf32>
    %333 = vector.extract_strided_slice %332 {offsets = [24, 0], sizes = [8, 16], strides = [1, 1]} : vector<32x16xf32> to vector<8x16xf32>
    %c5_246 = arith.constant 5 : index
    %c32_247 = arith.constant 32 : index
    %c0_248 = arith.constant 0 : index
    %334 = vector.load %arg4[%c5_246, %c32_247, %c0_248] : memref<8x96x32xf32, #tpu.memory_space<vmem>>, vector<1x16x32xf32>
    %335 = vector.shape_cast %334 : vector<1x16x32xf32> to vector<16x32xf32>
    %cst_249 = arith.constant dense<0.000000e+00> : vector<8x32xf32>
    %336 = tpu.matmul %333, %335, %cst_249 {dimension_numbers = #tpu.dot_dimension_numbers<[1], [0], [0], [1], [0, 0, 1, 1], [], []>} : vector<8x16xf32>, vector<16x32xf32>, vector<8x32xf32> -> vector<8x32xf32>
    %c5_250 = arith.constant 5 : index
    %c0_251 = arith.constant 0 : index
    %c32_252 = arith.constant 32 : index
    %337 = vector.load %arg5[%c5_250, %c0_251, %c32_252] : memref<8x1x112xf32, #tpu.memory_space<vmem>>, vector<1x1x32xf32>
    %338 = vector.shape_cast %337 : vector<1x1x32xf32> to vector<1x32xf32>
    %339 = vector.broadcast %338 : vector<1x32xf32> to vector<8x32xf32>
    %340 = arith.addf %336, %339 : vector<8x32xf32>
    %341 = arith.addf %280, %340 : vector<8x32xf32>
    %c0_253 = arith.constant 0 : index
    %c0_254 = arith.constant 0 : index
    %c0_255 = arith.constant 0 : index
    %342 = vector.load %arg2[%c0_253, %c0_254, %c0_255] : memref<2x96x96xf32, #tpu.memory_space<vmem>>, vector<1x32x32xf32>
    %343 = vector.shape_cast %342 : vector<1x32x32xf32> to vector<32x32xf32>
    %cst_256 = arith.constant dense<0.000000e+00> : vector<32x16xf32>
    %344 = tpu.matmul %343, %332, %cst_256 {dimension_numbers = #tpu.dot_dimension_numbers<[1], [0], [0], [1], [0, 0, 1, 1], [], []>} : vector<32x32xf32>, vector<32x16xf32>, vector<32x16xf32> -> vector<32x16xf32>
    %c1_257 = arith.constant 1 : index
    %c0_258 = arith.constant 0 : index
    %c0_259 = arith.constant 0 : index
    %345 = vector.load %arg2[%c1_257, %c0_258, %c0_259] : memref<2x96x96xf32, #tpu.memory_space<vmem>>, vector<1x32x32xf32>
    %346 = vector.shape_cast %345 : vector<1x32x32xf32> to vector<32x32xf32>
    %cst_260 = arith.constant dense<0.000000e+00> : vector<32x16xf32>
    %347 = tpu.matmul %346, %332, %cst_260 {dimension_numbers = #tpu.dot_dimension_numbers<[1], [0], [0], [1], [0, 0, 1, 1], [], []>} : vector<32x32xf32>, vector<32x16xf32>, vector<32x16xf32> -> vector<32x16xf32>
    %c5_261 = arith.constant 5 : index
    %c48_262 = arith.constant 48 : index
    %c0_263 = arith.constant 0 : index
    %348 = vector.load %arg4[%c5_261, %c48_262, %c0_263] : memref<8x96x32xf32, #tpu.memory_space<vmem>>, vector<1x16x16xf32>
    %349 = vector.shape_cast %348 : vector<1x16x16xf32> to vector<16x16xf32>
    %cst_264 = arith.constant dense<0.000000e+00> : vector<32x16xf32>
    %350 = tpu.matmul %332, %349, %cst_264 {dimension_numbers = #tpu.dot_dimension_numbers<[1], [0], [0], [1], [0, 0, 1, 1], [], []>} : vector<32x16xf32>, vector<16x16xf32>, vector<32x16xf32> -> vector<32x16xf32>
    %c5_265 = arith.constant 5 : index
    %c64_266 = arith.constant 64 : index
    %c0_267 = arith.constant 0 : index
    %351 = vector.load %arg4[%c5_265, %c64_266, %c0_267] : memref<8x96x32xf32, #tpu.memory_space<vmem>>, vector<1x16x16xf32>
    %352 = vector.shape_cast %351 : vector<1x16x16xf32> to vector<16x16xf32>
    %cst_268 = arith.constant dense<0.000000e+00> : vector<32x16xf32>
    %353 = tpu.matmul %344, %352, %cst_268 {dimension_numbers = #tpu.dot_dimension_numbers<[1], [0], [0], [1], [0, 0, 1, 1], [], []>} : vector<32x16xf32>, vector<16x16xf32>, vector<32x16xf32> -> vector<32x16xf32>
    %354 = arith.addf %350, %353 : vector<32x16xf32>
    %c5_269 = arith.constant 5 : index
    %c80_270 = arith.constant 80 : index
    %c0_271 = arith.constant 0 : index
    %355 = vector.load %arg4[%c5_269, %c80_270, %c0_271] : memref<8x96x32xf32, #tpu.memory_space<vmem>>, vector<1x16x16xf32>
    %356 = vector.shape_cast %355 : vector<1x16x16xf32> to vector<16x16xf32>
    %cst_272 = arith.constant dense<0.000000e+00> : vector<32x16xf32>
    %357 = tpu.matmul %347, %356, %cst_272 {dimension_numbers = #tpu.dot_dimension_numbers<[1], [0], [0], [1], [0, 0, 1, 1], [], []>} : vector<32x16xf32>, vector<16x16xf32>, vector<32x16xf32> -> vector<32x16xf32>
    %358 = arith.addf %354, %357 : vector<32x16xf32>
    %c5_273 = arith.constant 5 : index
    %c0_274 = arith.constant 0 : index
    %c64_275 = arith.constant 64 : index
    %359 = vector.load %arg5[%c5_273, %c0_274, %c64_275] : memref<8x1x112xf32, #tpu.memory_space<vmem>>, vector<1x1x16xf32>
    %360 = vector.shape_cast %359 : vector<1x1x16xf32> to vector<1x16xf32>
    %361 = vector.broadcast %360 : vector<1x16xf32> to vector<32x16xf32>
    %362 = arith.addf %358, %361 : vector<32x16xf32>
    %c5_276 = arith.constant 5 : index
    %c0_277 = arith.constant 0 : index
    %c80_278 = arith.constant 80 : index
    %363 = vector.load %arg5[%c5_276, %c0_277, %c80_278] : memref<8x1x112xf32, #tpu.memory_space<vmem>>, vector<1x1x16xf32>
    %364 = vector.shape_cast %363 : vector<1x1x16xf32> to vector<1x16xf32>
    %c5_279 = arith.constant 5 : index
    %c0_280 = arith.constant 0 : index
    %c96_281 = arith.constant 96 : index
    %365 = vector.load %arg5[%c5_279, %c0_280, %c96_281] : memref<8x1x112xf32, #tpu.memory_space<vmem>>, vector<1x1x16xf32>
    %366 = vector.shape_cast %365 : vector<1x1x16xf32> to vector<1x16xf32>
    %367 = arith.addf %362, %312 : vector<32x16xf32>
    %368 = vector.broadcast %364 : vector<1x16xf32> to vector<32x16xf32>
    %369 = arith.mulf %367, %368 : vector<32x16xf32>
    %370 = vector.broadcast %366 : vector<1x16xf32> to vector<32x16xf32>
    %371 = arith.addf %369, %370 : vector<32x16xf32>
    %372 = vector.extract_strided_slice %371 {offsets = [0, 0], sizes = [24, 16], strides = [1, 1]} : vector<32x16xf32> to vector<24x16xf32>
    %373 = vector.extract_strided_slice %371 {offsets = [8, 0], sizes = [24, 16], strides = [1, 1]} : vector<32x16xf32> to vector<24x16xf32>
    %c6 = arith.constant 6 : index
    %c0_282 = arith.constant 0 : index
    %c0_283 = arith.constant 0 : index
    %374 = vector.load %arg4[%c6, %c0_282, %c0_283] : memref<8x96x32xf32, #tpu.memory_space<vmem>>, vector<1x16x32xf32>
    %375 = vector.shape_cast %374 : vector<1x16x32xf32> to vector<16x32xf32>
    %cst_284 = arith.constant dense<0.000000e+00> : vector<24x32xf32>
    %376 = tpu.matmul %372, %375, %cst_284 {dimension_numbers = #tpu.dot_dimension_numbers<[1], [0], [0], [1], [0, 0, 1, 1], [], []>} : vector<24x16xf32>, vector<16x32xf32>, vector<24x32xf32> -> vector<24x32xf32>
    %c6_285 = arith.constant 6 : index
    %c16_286 = arith.constant 16 : index
    %c0_287 = arith.constant 0 : index
    %377 = vector.load %arg4[%c6_285, %c16_286, %c0_287] : memref<8x96x32xf32, #tpu.memory_space<vmem>>, vector<1x16x32xf32>
    %378 = vector.shape_cast %377 : vector<1x16x32xf32> to vector<16x32xf32>
    %cst_288 = arith.constant dense<0.000000e+00> : vector<24x32xf32>
    %379 = tpu.matmul %373, %378, %cst_288 {dimension_numbers = #tpu.dot_dimension_numbers<[1], [0], [0], [1], [0, 0, 1, 1], [], []>} : vector<24x16xf32>, vector<16x32xf32>, vector<24x32xf32> -> vector<24x32xf32>
    %380 = arith.addf %376, %379 : vector<24x32xf32>
    %c6_289 = arith.constant 6 : index
    %c0_290 = arith.constant 0 : index
    %c0_291 = arith.constant 0 : index
    %381 = vector.load %arg5[%c6_289, %c0_290, %c0_291] : memref<8x1x112xf32, #tpu.memory_space<vmem>>, vector<1x1x32xf32>
    %382 = vector.shape_cast %381 : vector<1x1x32xf32> to vector<1x32xf32>
    %383 = vector.broadcast %382 : vector<1x32xf32> to vector<24x32xf32>
    %384 = arith.addf %380, %383 : vector<24x32xf32>
    %385 = vector.extract_strided_slice %384 {offsets = [0, 0], sizes = [24, 16], strides = [1, 1]} : vector<24x32xf32> to vector<24x16xf32>
    %386 = math.tanh %385 : vector<24x16xf32>
    %387 = vector.extract_strided_slice %384 {offsets = [0, 16], sizes = [24, 16], strides = [1, 1]} : vector<24x32xf32> to vector<24x16xf32>
    %388 = arith.negf %387 : vector<24x16xf32>
    %389 = math.exp %388 : vector<24x16xf32>
    %cst_292 = arith.constant 1.000000e+00 : f32
    %390 = vector.broadcast %cst_292 : f32 to vector<24x16xf32>
    %391 = arith.addf %390, %389 : vector<24x16xf32>
    %392 = arith.divf %390, %391 : vector<24x16xf32>
    %393 = arith.mulf %386, %392 : vector<24x16xf32>
    %394 = vector.extract_strided_slice %393 {offsets = [16, 0], sizes = [8, 16], strides = [1, 1]} : vector<24x16xf32> to vector<8x16xf32>
    %c6_293 = arith.constant 6 : index
    %c32_294 = arith.constant 32 : index
    %c0_295 = arith.constant 0 : index
    %395 = vector.load %arg4[%c6_293, %c32_294, %c0_295] : memref<8x96x32xf32, #tpu.memory_space<vmem>>, vector<1x16x32xf32>
    %396 = vector.shape_cast %395 : vector<1x16x32xf32> to vector<16x32xf32>
    %cst_296 = arith.constant dense<0.000000e+00> : vector<8x32xf32>
    %397 = tpu.matmul %394, %396, %cst_296 {dimension_numbers = #tpu.dot_dimension_numbers<[1], [0], [0], [1], [0, 0, 1, 1], [], []>} : vector<8x16xf32>, vector<16x32xf32>, vector<8x32xf32> -> vector<8x32xf32>
    %c6_297 = arith.constant 6 : index
    %c0_298 = arith.constant 0 : index
    %c32_299 = arith.constant 32 : index
    %398 = vector.load %arg5[%c6_297, %c0_298, %c32_299] : memref<8x1x112xf32, #tpu.memory_space<vmem>>, vector<1x1x32xf32>
    %399 = vector.shape_cast %398 : vector<1x1x32xf32> to vector<1x32xf32>
    %400 = vector.broadcast %399 : vector<1x32xf32> to vector<8x32xf32>
    %401 = arith.addf %397, %400 : vector<8x32xf32>
    %402 = arith.addf %341, %401 : vector<8x32xf32>
    %c0_300 = arith.constant 0 : index
    %c0_301 = arith.constant 0 : index
    %c0_302 = arith.constant 0 : index
    %403 = vector.load %arg2[%c0_300, %c0_301, %c0_302] : memref<2x96x96xf32, #tpu.memory_space<vmem>>, vector<1x24x24xf32>
    %404 = vector.shape_cast %403 : vector<1x24x24xf32> to vector<24x24xf32>
    %cst_303 = arith.constant dense<0.000000e+00> : vector<24x16xf32>
    %405 = tpu.matmul %404, %393, %cst_303 {dimension_numbers = #tpu.dot_dimension_numbers<[1], [0], [0], [1], [0, 0, 1, 1], [], []>} : vector<24x24xf32>, vector<24x16xf32>, vector<24x16xf32> -> vector<24x16xf32>
    %c1_304 = arith.constant 1 : index
    %c0_305 = arith.constant 0 : index
    %c0_306 = arith.constant 0 : index
    %406 = vector.load %arg2[%c1_304, %c0_305, %c0_306] : memref<2x96x96xf32, #tpu.memory_space<vmem>>, vector<1x24x24xf32>
    %407 = vector.shape_cast %406 : vector<1x24x24xf32> to vector<24x24xf32>
    %cst_307 = arith.constant dense<0.000000e+00> : vector<24x16xf32>
    %408 = tpu.matmul %407, %393, %cst_307 {dimension_numbers = #tpu.dot_dimension_numbers<[1], [0], [0], [1], [0, 0, 1, 1], [], []>} : vector<24x24xf32>, vector<24x16xf32>, vector<24x16xf32> -> vector<24x16xf32>
    %c6_308 = arith.constant 6 : index
    %c48_309 = arith.constant 48 : index
    %c0_310 = arith.constant 0 : index
    %409 = vector.load %arg4[%c6_308, %c48_309, %c0_310] : memref<8x96x32xf32, #tpu.memory_space<vmem>>, vector<1x16x16xf32>
    %410 = vector.shape_cast %409 : vector<1x16x16xf32> to vector<16x16xf32>
    %cst_311 = arith.constant dense<0.000000e+00> : vector<24x16xf32>
    %411 = tpu.matmul %393, %410, %cst_311 {dimension_numbers = #tpu.dot_dimension_numbers<[1], [0], [0], [1], [0, 0, 1, 1], [], []>} : vector<24x16xf32>, vector<16x16xf32>, vector<24x16xf32> -> vector<24x16xf32>
    %c6_312 = arith.constant 6 : index
    %c64_313 = arith.constant 64 : index
    %c0_314 = arith.constant 0 : index
    %412 = vector.load %arg4[%c6_312, %c64_313, %c0_314] : memref<8x96x32xf32, #tpu.memory_space<vmem>>, vector<1x16x16xf32>
    %413 = vector.shape_cast %412 : vector<1x16x16xf32> to vector<16x16xf32>
    %cst_315 = arith.constant dense<0.000000e+00> : vector<24x16xf32>
    %414 = tpu.matmul %405, %413, %cst_315 {dimension_numbers = #tpu.dot_dimension_numbers<[1], [0], [0], [1], [0, 0, 1, 1], [], []>} : vector<24x16xf32>, vector<16x16xf32>, vector<24x16xf32> -> vector<24x16xf32>
    %415 = arith.addf %411, %414 : vector<24x16xf32>
    %c6_316 = arith.constant 6 : index
    %c80_317 = arith.constant 80 : index
    %c0_318 = arith.constant 0 : index
    %416 = vector.load %arg4[%c6_316, %c80_317, %c0_318] : memref<8x96x32xf32, #tpu.memory_space<vmem>>, vector<1x16x16xf32>
    %417 = vector.shape_cast %416 : vector<1x16x16xf32> to vector<16x16xf32>
    %cst_319 = arith.constant dense<0.000000e+00> : vector<24x16xf32>
    %418 = tpu.matmul %408, %417, %cst_319 {dimension_numbers = #tpu.dot_dimension_numbers<[1], [0], [0], [1], [0, 0, 1, 1], [], []>} : vector<24x16xf32>, vector<16x16xf32>, vector<24x16xf32> -> vector<24x16xf32>
    %419 = arith.addf %415, %418 : vector<24x16xf32>
    %c6_320 = arith.constant 6 : index
    %c0_321 = arith.constant 0 : index
    %c64_322 = arith.constant 64 : index
    %420 = vector.load %arg5[%c6_320, %c0_321, %c64_322] : memref<8x1x112xf32, #tpu.memory_space<vmem>>, vector<1x1x16xf32>
    %421 = vector.shape_cast %420 : vector<1x1x16xf32> to vector<1x16xf32>
    %422 = vector.broadcast %421 : vector<1x16xf32> to vector<24x16xf32>
    %423 = arith.addf %419, %422 : vector<24x16xf32>
    %c6_323 = arith.constant 6 : index
    %c0_324 = arith.constant 0 : index
    %c80_325 = arith.constant 80 : index
    %424 = vector.load %arg5[%c6_323, %c0_324, %c80_325] : memref<8x1x112xf32, #tpu.memory_space<vmem>>, vector<1x1x16xf32>
    %425 = vector.shape_cast %424 : vector<1x1x16xf32> to vector<1x16xf32>
    %c6_326 = arith.constant 6 : index
    %c0_327 = arith.constant 0 : index
    %c96_328 = arith.constant 96 : index
    %426 = vector.load %arg5[%c6_326, %c0_327, %c96_328] : memref<8x1x112xf32, #tpu.memory_space<vmem>>, vector<1x1x16xf32>
    %427 = vector.shape_cast %426 : vector<1x1x16xf32> to vector<1x16xf32>
    %428 = arith.addf %423, %373 : vector<24x16xf32>
    %429 = vector.broadcast %425 : vector<1x16xf32> to vector<24x16xf32>
    %430 = arith.mulf %428, %429 : vector<24x16xf32>
    %431 = vector.broadcast %427 : vector<1x16xf32> to vector<24x16xf32>
    %432 = arith.addf %430, %431 : vector<24x16xf32>
    %433 = vector.extract_strided_slice %432 {offsets = [0, 0], sizes = [8, 16], strides = [1, 1]} : vector<24x16xf32> to vector<8x16xf32>
    %434 = vector.extract_strided_slice %432 {offsets = [16, 0], sizes = [8, 16], strides = [1, 1]} : vector<24x16xf32> to vector<8x16xf32>
    %c7 = arith.constant 7 : index
    %c0_329 = arith.constant 0 : index
    %c0_330 = arith.constant 0 : index
    %435 = vector.load %arg4[%c7, %c0_329, %c0_330] : memref<8x96x32xf32, #tpu.memory_space<vmem>>, vector<1x16x32xf32>
    %436 = vector.shape_cast %435 : vector<1x16x32xf32> to vector<16x32xf32>
    %cst_331 = arith.constant dense<0.000000e+00> : vector<8x32xf32>
    %437 = tpu.matmul %433, %436, %cst_331 {dimension_numbers = #tpu.dot_dimension_numbers<[1], [0], [0], [1], [0, 0, 1, 1], [], []>} : vector<8x16xf32>, vector<16x32xf32>, vector<8x32xf32> -> vector<8x32xf32>
    %c7_332 = arith.constant 7 : index
    %c16_333 = arith.constant 16 : index
    %c0_334 = arith.constant 0 : index
    %438 = vector.load %arg4[%c7_332, %c16_333, %c0_334] : memref<8x96x32xf32, #tpu.memory_space<vmem>>, vector<1x16x32xf32>
    %439 = vector.shape_cast %438 : vector<1x16x32xf32> to vector<16x32xf32>
    %cst_335 = arith.constant dense<0.000000e+00> : vector<8x32xf32>
    %440 = tpu.matmul %434, %439, %cst_335 {dimension_numbers = #tpu.dot_dimension_numbers<[1], [0], [0], [1], [0, 0, 1, 1], [], []>} : vector<8x16xf32>, vector<16x32xf32>, vector<8x32xf32> -> vector<8x32xf32>
    %441 = arith.addf %437, %440 : vector<8x32xf32>
    %c7_336 = arith.constant 7 : index
    %c0_337 = arith.constant 0 : index
    %c0_338 = arith.constant 0 : index
    %442 = vector.load %arg5[%c7_336, %c0_337, %c0_338] : memref<8x1x112xf32, #tpu.memory_space<vmem>>, vector<1x1x32xf32>
    %443 = vector.shape_cast %442 : vector<1x1x32xf32> to vector<1x32xf32>
    %444 = vector.broadcast %443 : vector<1x32xf32> to vector<8x32xf32>
    %445 = arith.addf %441, %444 : vector<8x32xf32>
    %446 = vector.extract_strided_slice %445 {offsets = [0, 0], sizes = [8, 16], strides = [1, 1]} : vector<8x32xf32> to vector<8x16xf32>
    %447 = math.tanh %446 : vector<8x16xf32>
    %448 = vector.extract_strided_slice %445 {offsets = [0, 16], sizes = [8, 16], strides = [1, 1]} : vector<8x32xf32> to vector<8x16xf32>
    %449 = arith.negf %448 : vector<8x16xf32>
    %450 = math.exp %449 : vector<8x16xf32>
    %cst_339 = arith.constant 1.000000e+00 : f32
    %451 = vector.broadcast %cst_339 : f32 to vector<8x16xf32>
    %452 = arith.addf %451, %450 : vector<8x16xf32>
    %453 = arith.divf %451, %452 : vector<8x16xf32>
    %454 = arith.mulf %447, %453 : vector<8x16xf32>
    %c7_340 = arith.constant 7 : index
    %c32_341 = arith.constant 32 : index
    %c0_342 = arith.constant 0 : index
    %455 = vector.load %arg4[%c7_340, %c32_341, %c0_342] : memref<8x96x32xf32, #tpu.memory_space<vmem>>, vector<1x16x32xf32>
    %456 = vector.shape_cast %455 : vector<1x16x32xf32> to vector<16x32xf32>
    %cst_343 = arith.constant dense<0.000000e+00> : vector<8x32xf32>
    %457 = tpu.matmul %454, %456, %cst_343 {dimension_numbers = #tpu.dot_dimension_numbers<[1], [0], [0], [1], [0, 0, 1, 1], [], []>} : vector<8x16xf32>, vector<16x32xf32>, vector<8x32xf32> -> vector<8x32xf32>
    %c7_344 = arith.constant 7 : index
    %c0_345 = arith.constant 0 : index
    %c32_346 = arith.constant 32 : index
    %458 = vector.load %arg5[%c7_344, %c0_345, %c32_346] : memref<8x1x112xf32, #tpu.memory_space<vmem>>, vector<1x1x32xf32>
    %459 = vector.shape_cast %458 : vector<1x1x32xf32> to vector<1x32xf32>
    %460 = vector.broadcast %459 : vector<1x32xf32> to vector<8x32xf32>
    %461 = arith.addf %457, %460 : vector<8x32xf32>
    %462 = arith.addf %402, %461 : vector<8x32xf32>
    %cst_347 = arith.constant 0.000000e+00 : f32
    %463 = vector.broadcast %cst_347 : f32 to vector<8x32xf32>
    %464 = arith.maximumf %462, %463 : vector<8x32xf32>
    %c0_348 = arith.constant 0 : index
    %c0_349 = arith.constant 0 : index
    %465 = vector.load %arg6[%c0_348, %c0_349] : memref<33x64xf32, #tpu.memory_space<vmem>>, vector<32x64xf32>
    %cst_350 = arith.constant dense<0.000000e+00> : vector<8x64xf32>
    %466 = tpu.matmul %464, %465, %cst_350 {dimension_numbers = #tpu.dot_dimension_numbers<[1], [0], [0], [1], [0, 0, 1, 1], [], []>} : vector<8x32xf32>, vector<32x64xf32>, vector<8x64xf32> -> vector<8x64xf32>
    %c32_351 = arith.constant 32 : index
    %c0_352 = arith.constant 0 : index
    %467 = vector.load %arg6[%c32_351, %c0_352] : memref<33x64xf32, #tpu.memory_space<vmem>>, vector<1x64xf32>
    %468 = vector.broadcast %467 : vector<1x64xf32> to vector<8x64xf32>
    %469 = arith.addf %466, %468 : vector<8x64xf32>
    %cst_353 = arith.constant 0.000000e+00 : f32
    %470 = vector.broadcast %cst_353 : f32 to vector<8x64xf32>
    %471 = arith.maximumf %469, %470 : vector<8x64xf32>
    %c0_354 = arith.constant 0 : index
    %c0_355 = arith.constant 0 : index
    %472 = vector.load %arg7[%c0_354, %c0_355] : memref<65x12xf32, #tpu.memory_space<vmem>>, vector<64x12xf32>
    %cst_356 = arith.constant dense<0.000000e+00> : vector<8x12xf32>
    %473 = tpu.matmul %471, %472, %cst_356 {dimension_numbers = #tpu.dot_dimension_numbers<[1], [0], [0], [1], [0, 0, 1, 1], [], []>} : vector<8x64xf32>, vector<64x12xf32>, vector<8x12xf32> -> vector<8x12xf32>
    %c64_357 = arith.constant 64 : index
    %c0_358 = arith.constant 0 : index
    %474 = vector.load %arg7[%c64_357, %c0_358] : memref<65x12xf32, #tpu.memory_space<vmem>>, vector<1x12xf32>
    %475 = vector.broadcast %474 : vector<1x12xf32> to vector<8x12xf32>
    %476 = arith.addf %473, %475 : vector<8x12xf32>
    %c0_359 = arith.constant 0 : index
    %c0_360 = arith.constant 0 : index
    %c0_361 = arith.constant 0 : index
    %477 = vector.load %arg8[%c0_359, %c0_360, %c0_361] : memref<1x8x12xf32, #tpu.memory_space<vmem>>, vector<1x8x12xf32>
    %478 = vector.shape_cast %477 : vector<1x8x12xf32> to vector<8x12xf32>
    %479 = vector.shape_cast %476 : vector<8x12xf32> to vector<1x8x12xf32>
    tpu.vector_store %arg8[%c0_359, %c0_360, %c0_361], %479 {strides = array<i32>} : memref<1x8x12xf32, #tpu.memory_space<vmem>>, vector<1x8x12xf32>,
    return
  }
  func.func @transform_0(%arg0: i32) -> (i32, i32, i32) {
    %c0_i32 = arith.constant 0 : i32
    %c0_i32_0 = arith.constant 0 : i32
    %c0_i32_1 = arith.constant 0 : i32
    return %arg0, %c0_i32, %c0_i32_0 : i32, i32, i32
  }
  func.func @transform_1(%arg0: i32) -> (i32, i32, i32) {
    %c0_i32 = arith.constant 0 : i32
    %c0_i32_0 = arith.constant 0 : i32
    %c0_i32_1 = arith.constant 0 : i32
    %c0_i32_2 = arith.constant 0 : i32
    return %c0_i32, %c0_i32_0, %c0_i32_1 : i32, i32, i32
  }
  func.func @transform_2(%arg0: i32) -> (i32, i32) {
    %c0_i32 = arith.constant 0 : i32
    %c0_i32_0 = arith.constant 0 : i32
    %c0_i32_1 = arith.constant 0 : i32
    return %c0_i32, %c0_i32_0 : i32, i32
  }
  func.func @transform_3(%arg0: i32) -> (i32, i32, i32) {
    %c0_i32 = arith.constant 0 : i32
    %c0_i32_0 = arith.constant 0 : i32
    %c0_i32_1 = arith.constant 0 : i32
    %c0_i32_2 = arith.constant 0 : i32
    return %c0_i32, %c0_i32_0, %c0_i32_1 : i32, i32, i32
  }
  func.func @transform_4(%arg0: i32) -> (i32, i32, i32) {
    %c0_i32 = arith.constant 0 : i32
    %c0_i32_0 = arith.constant 0 : i32
    %c0_i32_1 = arith.constant 0 : i32
    %c0_i32_2 = arith.constant 0 : i32
    return %c0_i32, %c0_i32_0, %c0_i32_1 : i32, i32, i32
  }
  func.func @transform_5(%arg0: i32) -> (i32, i32) {
    %c0_i32 = arith.constant 0 : i32
    %c0_i32_0 = arith.constant 0 : i32
    %c0_i32_1 = arith.constant 0 : i32
    return %c0_i32, %c0_i32_0 : i32, i32
  }
  func.func @transform_6(%arg0: i32) -> (i32, i32) {
    %c0_i32 = arith.constant 0 : i32
    %c0_i32_0 = arith.constant 0 : i32
    %c0_i32_1 = arith.constant 0 : i32
    return %c0_i32, %c0_i32_0 : i32, i32
  }
  func.func @transform_7(%arg0: i32) -> (i32, i32, i32) {
    %c0_i32 = arith.constant 0 : i32
    %c0_i32_0 = arith.constant 0 : i32
    %c0_i32_1 = arith.constant 0 : i32
    return %arg0, %c0_i32, %c0_i32_0 : i32, i32, i32
  }
}

</mosaic_0001>

<bundles_post_ra>
// kernel: _lambda_.1
= control target key start
LH: loop header
LB: loop body
LE: loop exit
PB: predicated region body
PF: predicated region fallthrough
CT: control target
= control target key end

     0   :  { %12 = vsyncpa [#allocation3], 0  ;;  %s14031_s0 = inlined_call_operand.vmem [shape: f32[2,104,8], index: 0, kind: input, shape index: {}]   ;;  %s14032_s1 = inlined_call_operand.vmem [shape: f32[2,96,96], index: 1, kind: input, shape index: {}]   ;;  %s14033_s2 = inlined_call_operand.vmem [shape: f32[9,16], index: 2, kind: input, shape index: {}]   ;;  %s14034_s3 = inlined_call_operand.vmem [shape: f32[8,96,32], index: 3, kind: input, shape index: {}]   ;;  %s14035_s4 = inlined_call_operand.vmem [shape: f32[8,1,112], index: 4, kind: input, shape index: {}]   ;;  %s14036_s5 = inlined_call_operand.vmem [shape: f32[33,64], index: 5, kind: input, shape index: {}]   ;;  %s14037_s6 = inlined_call_operand.vmem [shape: f32[65,12], index: 6, kind: input, shape index: {}]   ;;  %s14038_s7 = inlined_call_operand.hbm [shape: f32[2,8,12], index: 7, kind: output, shape index: {}]  }
   0x1   :  { %14 = vsyncpa [#allocation3 + $0x1], 0  ;;  %s11499_s24 = smov 0   ;;  %s11501_s25 = smov 0  }
   0x2   :  { %s11503_s26 = smov 0   ;;  %s11505_s27 = smov 0  }
   0x3 LB: > { %s11520_s28 = sadd.s32 4294967295, %s11449_s27   ;;  %s8627_s29 = sadd.s32 4294967294, %s11449_s27   ;;  %s11449_s27 = sphi %s11505_s27, %s14061_s27   ;;  %s11445_s26 = sphi %s11503_s26, %s14060_s26   ;;  %s11441_s25 = sphi %s11501_s25, %s14059_s25   ;;  %s11437_s24 = sphi %s11499_s24, %s14058_s24  }
   0x4   : > { %s11524_s30 = sadd.s32 1, %s11449_s27   ;;  %s179_s8 = sadd.s32 1, %s11445_s26 }
   0x5   : > { %s176_s9 = ssub.s32 %s11449_s27, %s11524_s30  ;;  %p189_p0 = scmp.ne.s32.totalorder %s11445_s26, %s11441_s25 }
   0x6   : > { %p177_p1 = scmp.eq.s32.totalorder %s176_s9, 0  ;;  %p190_p2 = scmp.eq.s32.totalorder %s11520_s28, 1 }
   0x7   : > { %p195_p3 = scmp.ne.s32.totalorder %s11441_s25, %s11437_s24  ;;  %p196_p4 = scmp.eq.s32.totalorder %s8627_s29, 1 }
   0x8   : > { %s11535_s10 = scalar_select %p177_p1, %s11445_s26, %s179_s8  }
   0x9   : > { %p11537_p5 = por %p190_p2, %p189_p0  ;;  %p11541_p6 = por %p196_p4, %p195_p3 }
   0xa   : > { %p8630_p7 = scmp.ge.s32.totalorder %s11449_s27, 1  ;;  %p240_p8 = scmp.lt.s32.totalorder %s11449_s27, 3 }
   0xc   : > { %p241_p9 = pnand %p8630_p7, %p240_p8 }
   0xe   : > { %244 = sbr.rel (%p241_p9) target bundleno = 6857 (0x1ac9), region = 48 }
  0x13   : > { %v290_v0 = vld [vmem:[%s14033_s2] sm:$0xff]  ;;  %p272_p10 = scmp.lt.s32.totalorder %s11520_s28, 1  ;;  %v14039_v1 = vmov 0.0   ;;  %vm11452_vm0 = vmmov 0   ;;  %vm296_vm1 = vcmask 64512   ;;  %v469_v15 = vld [vmem:[%s14034_s3 + $0x18] sm:$0xff] }
  0x14   : > { %9805 = vmatprep.subr.mxu0 %v14039_v1  ;;  %9807 = vmatprep.mubr.msk.f32.mxu0 %vm11452_vm0, %v14039_v1  ;;  %v468_v16 = vld [vmem:[%s14034_s3 + $0x10] sm:$0xff]  ;;  %v467_v17 = vld [vmem:[%s14034_s3 + $0x8] sm:$0xff]  ;;  %vm470_vm2 = vcmask 130048   ;;  %v466_v27 = vld [vmem:[%s14034_s3] sm:$0xff]  ;;  %s11453_s22 = smov 112   ;;  %vm1013_vm3 = vcmask 785408  }
  0x15   : > { %9806 = vmatpush3.msra.mxu0 %v290_v0  ;;  %s273_s15 = scalar_select %p272_p10, %s11520_s28, 1  ;;  %9846 = vmatprep.subr.mxu1 %v469_v15  ;;  %v8633_v20 = vld [vmem:[%s14033_s2 + $0x8] ss:$0 sm:$0xff]  ;;  %vm2402_vm4 = vcmask 654336   ;;  %vm3668_vm5 = vcmask 588800   ;;  %vm4837_vm6 = vcmask 457728  }
  0x16   : > { %9847 = vmatpush3.msra.mxu1 %v469_v15  ;;  %s11456_s17 = smov 32   ;;  %vm5884_vm7 = vcmask 392192   ;;  %vm6834_vm8 = vcmask 261120   ;;  %s11457_s13 = smov 96   ;;  %vm7662_vm9 = vcmask 195584   ;;  %vm8478_vm10 = vcmask 523264  }
  0x17   : > { %s11025_s16 = smul.u32 104, %s273_s15  ;;  %9848 = vmatprep.subr.mxu1 %v468_v16  ;;  %s11454_s15 = smov 64   ;;  %vm8552_vm11 = vcmask 97280  }
  0x18   : > { %9849 = vmatpush3.msra.mxu1 %v468_v16  ;;  %s269_s23 = sand.u32 1, %s11441_s25   ;;  %s9215_s9 = sshll.u32 %s11520_s28, 7 }
  0x19   : > { %s11558_s19 = scalar_lea.vmem %s14031_s0, %s11025_s16  ;;  %9868 = vmatprep.subr.mxu1 %v467_v17  ;;  %s11455_s16 = smov 48  }
  0x1a   : > { %v277_v2 = vld [vmem:[%s11558_s19] sm:$0xff]  ;;  %v278_v3 = vld [vmem:[%s11558_s19 + $0x8] sm:$0xff]  ;;  %v279_v4 = vld [vmem:[%s11558_s19 + $0x10] sm:$0xff]  ;;  %s8631_s29 = sshll.u32 %s269_s23, 3  ;;  %s11458_s28 = smov [#allocation2]  }
  0x1b   : > { %9808 = vmatmul.mubr.msk.f32.vlgmr.msra.gmra.mxu0 %vm296_vm1, %v277_v2  ;;  %v280_v5 = vld [vmem:[%s11558_s19 + $0x18] sm:$0xff]  ;;  %v281_v6 = vld [vmem:[%s11558_s19 + $0x20] sm:$0xff]  ;;  %v282_v7 = vld [vmem:[%s11558_s19 + $0x28] sm:$0xff]  ;;  %s271_s14 = scalar_lea.vmem [#allocation2], %s8631_s29  ;;  %s11393_s20 = sshll.u32 %s11458_s28, 4  ;;  %s11394_s20 = int_to_ptr.vmem [resolvable:$false] %s11393_s20 }
  0x1c   : > { %9810 = vmatprep.mubr.msk.f32.mxu0 %vm11452_vm0, %v14039_v1  ;;  %v283_v8 = vld [vmem:[%s11558_s19 + $0x30] sm:$0xff]  ;;  %v284_v9 = vld [vmem:[%s11558_s19 + $0x38] sm:$0xff]  ;;  %v285_v10 = vld [vmem:[%s11558_s19 + $0x40] sm:$0xff]  ;;  %s11395_s21 = scalar_lea.vmem %s11394_s20, 256 }
  0x1d   : > { %v286_v11 = vld [vmem:[%s11558_s19 + $0x48] sm:$0xff]  ;;  %v287_v12 = vld [vmem:[%s11558_s19 + $0x50] sm:$0xff]  ;;  %v288_v13 = vld [vmem:[%s11558_s19 + $0x58] sm:$0xff] }
  0x1e   : > { %v289_v14 = vld [vmem:[%s11558_s19 + $0x60] sm:$0xff]  ;;  %s13996_s19 = scalar_lea.hbm %s14038_s7, %s9215_s9 }
  0x1f   : > { %9811 = vmatmul.mubr.msk.f32.gmra.mxu0 %vm296_vm1, %v278_v3 }
  0x20   : > { %9813 = vmatprep.mubr.msk.f32.mxu0 %vm11452_vm0, %v14039_v1 }
  0x23   : > { %9814 = vmatmul.mubr.msk.f32.gmra.mxu0 %vm296_vm1, %v279_v4 }
  0x24   : > { %9816 = vmatprep.mubr.msk.f32.mxu0 %vm11452_vm0, %v14039_v1 }
  0x27   : > { %9817 = vmatmul.mubr.msk.f32.gmra.mxu0 %vm296_vm1, %v280_v5 }
  0x28   : > { %9819 = vmatprep.mubr.msk.f32.mxu0 %vm11452_vm0, %v14039_v1 }
  0x2b   : > { %9820 = vmatmul.mubr.msk.f32.gmra.mxu0 %vm296_vm1, %v281_v6 }
  0x2c   : > { %9822 = vmatprep.mubr.msk.f32.mxu0 %vm11452_vm0, %v14039_v1 }
  0x2f   : > { %9823 = vmatmul.mubr.msk.f32.gmra.mxu0 %vm296_vm1, %v282_v7 }
  0x30   : > { %9825 = vmatprep.mubr.msk.f32.mxu0 %vm11452_vm0, %v14039_v1 }
  0x33   : > { %9826 = vmatmul.mubr.msk.f32.gmra.mxu0 %vm296_vm1, %v283_v8 }
  0x34   : > { %9828 = vmatprep.mubr.msk.f32.mxu0 %vm11452_vm0, %v14039_v1 }
  0x37   : > { %9829 = vmatmul.mubr.msk.f32.gmra.mxu0 %vm296_vm1, %v284_v9 }
  0x38   : > { %9831 = vmatprep.mubr.msk.f32.mxu0 %vm11452_vm0, %v14039_v1 }
  0x3b   : > { %9832 = vmatmul.mubr.msk.f32.gmra.mxu0 %vm296_vm1, %v285_v10 }
  0x3c   : > { %9834 = vmatprep.mubr.msk.f32.mxu0 %vm11452_vm0, %v14039_v1 }
  0x3f   : > { %9835 = vmatmul.mubr.msk.f32.gmra.mxu0 %vm296_vm1, %v286_v11 }
  0x40   : > { %9837 = vmatprep.mubr.msk.f32.mxu0 %vm11452_vm0, %v14039_v1 }
  0x43   : > { %9838 = vmatmul.mubr.msk.f32.gmra.mxu0 %vm296_vm1, %v287_v12 }
  0x44   : > { %9840 = vmatprep.mubr.msk.f32.mxu0 %vm11452_vm0, %v14039_v1 }
  0x47   : > { %9841 = vmatmul.mubr.msk.f32.gmra.mxu0 %vm296_vm1, %v288_v13 }
  0x48   : > { %9843 = vmatprep.mubr.msk.f32.mxu0 %vm11452_vm0, %v14039_v1 }
  0x4b   : > { %9844 = vmatmul.mubr.msk.f32.gmra.mxu0 %vm296_vm1, %v289_v14 }
  0xdb   : > { %v402_v18 = vpop.f32.mrf.mxu0 }
  0xdc   : > { %v403_v57 = vadd.f32 %v8633_v20, %v402_v18 }
  0xdd   : > { %v9809_v19 = vpop.f32.mrf.mxu0 }
  0xde   : > { %v11702_v19 = vld [vmem:[%s14035_s4] ss:$0 sm:$0xff] }
  0xdf   : > { %v407_v21 = vpop.f32.mrf.mxu0 }
  0xe0   : > { %v11622_v22 = vadd.f32 %v8633_v20, %v407_v21 }
  0xe1   : > { %v9812_v23 = vpop.f32.mrf.mxu0 }
  0xe2   : > { %9850 = vmatprep.mubr.msk.f32.mxu1 %vm470_vm2, %v11622_v22 }
  0xe3   : > { %v412_v24 = vpop.f32.mrf.mxu0 }
  0xe4   : > { %v11626_v25 = vadd.f32 %v8633_v20, %v412_v24 }
  0xe5   : > { %v9815_v26 = vpop.f32.mrf.mxu0 }
  0xe6   : > { %9851 = vmatmul.mubr.msk.f32.vlgmr.msra.gmra.mxu1 %vm470_vm2, %v11626_v25 }
  0xe7   : > { %v417_v28 = vpop.f32.mrf.mxu0  ;;  %9869 = vmatpush3.msra.mxu1 %v467_v17 }
  0xe8   : > { %v11633_v29 = vadd.f32 %v8633_v20, %v417_v28  ;;  %9870 = vmatprep.subr.mxu1 %v466_v27 }
  0xe9   : > { %v9818_v30 = vpop.f32.mrf.mxu0  ;;  %9871 = vmatpush3.msra.mxu1 %v466_v27 }
  0xea   : > { %9853 = vmatprep.mubr.msk.f32.mxu1 %vm470_vm2, %v11633_v29  ;;  %9890 = vmatprep.subr.mxu1 %v14039_v1 }
  0xeb   : > { %v422_v31 = vpop.f32.mrf.mxu0 }
  0xec   : > { %v11638_v32 = vadd.f32 %v8633_v20, %v422_v31 }
  0xed   : > { %v9821_v33 = vpop.f32.mrf.mxu0 }
  0xee   : > { %9854 = vmatmul.mubr.msk.f32.gmra.mxu1 %vm470_vm2, %v11638_v32 }
  0xef   : > { %v427_v34 = vpop.f32.mrf.mxu0 }
  0xf0   : > { %v11642_v35 = vadd.f32 %v8633_v20, %v427_v34 }
  0xf1   : > { %v9824_v36 = vpop.f32.mrf.mxu0 }
  0xf2   : > { %9856 = vmatprep.mubr.msk.f32.mxu1 %vm470_vm2, %v11642_v35 }
  0xf3   : > { %v432_v37 = vpop.f32.mrf.mxu0 }
  0xf4   : > { %v11646_v38 = vadd.f32 %v8633_v20, %v432_v37 }
  0xf5   : > { %v9827_v39 = vpop.f32.mrf.mxu0 }
  0xf6   : > { %9857 = vmatmul.mubr.msk.f32.gmra.mxu1 %vm470_vm2, %v11646_v38 }
  0xf7   : > { %v437_v40 = vpop.f32.mrf.mxu0 }
  0xf8   : > { %v11650_v41 = vadd.f32 %v8633_v20, %v437_v40 }
  0xf9   : > { %v9830_v42 = vpop.f32.mrf.mxu0 }
  0xfa   : > { %9859 = vmatprep.mubr.msk.f32.mxu1 %vm470_vm2, %v11650_v41 }
  0xfb   : > { %v442_v43 = vpop.f32.mrf.mxu0 }
  0xfc   : > { %v11654_v44 = vadd.f32 %v8633_v20, %v442_v43 }
  0xfd   : > { %v9833_v45 = vpop.f32.mrf.mxu0 }
  0xfe   : > { %9860 = vmatmul.mubr.msk.f32.gmra.mxu1 %vm470_vm2, %v11654_v44 }
  0xff   : > { %v447_v46 = vpop.f32.mrf.mxu0 }
 0x100   : > { %v11658_v47 = vadd.f32 %v8633_v20, %v447_v46 }
 0x101   : > { %v9836_v48 = vpop.f32.mrf.mxu0 }
 0x102   : > { %9862 = vmatprep.mubr.msk.f32.mxu1 %vm470_vm2, %v11658_v47 }
 0x103   : > { %v452_v49 = vpop.f32.mrf.mxu0 }
 0x104   : > { %v11662_v50 = vadd.f32 %v8633_v20, %v452_v49 }
 0x105   : > { %v9839_v51 = vpop.f32.mrf.mxu0 }
 0x106   : > { %9863 = vmatmul.mubr.msk.f32.gmra.mxu1 %vm470_vm2, %v11662_v50 }
 0x107   : > { %v457_v52 = vpop.f32.mrf.mxu0 }
 0x108   : > { %v11666_v53 = vadd.f32 %v8633_v20, %v457_v52 }
 0x109   : > { %v9842_v54 = vpop.f32.mrf.mxu0 }
 0x10a   : > { %9865 = vmatprep.mubr.msk.f32.mxu1 %vm470_vm2, %v11666_v53 }
 0x10b   : > { %v462_v55 = vpop.f32.mrf.mxu0 }
 0x10c   : > { %v11670_v56 = vadd.f32 %v8633_v20, %v462_v55 }
 0x10d   : > { %v9845_v58 = vpop.f32.mrf.mxu0 }
 0x10e   : > { %9866 = vmatmul.mubr.msk.f32.gmra.mxu1 %vm470_vm2, %v11670_v56 }
 0x10f   : > { %9872 = vmatprep.mubr.msk.f32.mxu1 %vm470_vm2, %v403_v57 }
 0x112   : > { %9873 = vmatmul.mubr.msk.f32.vlgmr.msra.gmra.mxu1 %vm470_vm2, %v11622_v22 }
 0x113   : > { %9875 = vmatprep.mubr.msk.f32.mxu1 %vm470_vm2, %v11626_v25 }
 0x116   : > { %9876 = vmatmul.mubr.msk.f32.gmra.mxu1 %vm470_vm2, %v11633_v29 }
 0x117   : > { %9878 = vmatprep.mubr.msk.f32.mxu1 %vm470_vm2, %v11638_v32 }
 0x11a   : > { %9879 = vmatmul.mubr.msk.f32.gmra.mxu1 %vm470_vm2, %v11642_v35 }
 0x11b   : > { %9881 = vmatprep.mubr.msk.f32.mxu1 %vm470_vm2, %v11646_v38 }
 0x11e   : > { %9882 = vmatmul.mubr.msk.f32.gmra.mxu1 %vm470_vm2, %v11650_v41 }
 0x11f   : > { %9884 = vmatprep.mubr.msk.f32.mxu1 %vm470_vm2, %v11654_v44 }
 0x122   : > { %9885 = vmatmul.mubr.msk.f32.gmra.mxu1 %vm470_vm2, %v11658_v47 }
 0x123   : > { %9887 = vmatprep.mubr.msk.f32.mxu1 %vm470_vm2, %v11662_v50 }
 0x126   : > { %9888 = vmatmul.mubr.msk.f32.gmra.mxu1 %vm470_vm2, %v11666_v53 }
 0x127   : > { %9894 = vmatprep.mubr.msk.f32.mxu1 %vm11452_vm0, %v14039_v1 }
 0x1a6   : > { %v9852_v59 = vpop.f32.mrf.mxu1 }
 0x1a8   : > { %v573_v60 = vpop.f32.mrf.mxu1 }
 0x1ae   : > { %v9855_v61 = vpop.f32.mrf.mxu1 }
 0x1b0   : > { %v583_v62 = vpop.f32.mrf.mxu1 }
 0x1b6   : > { %v9858_v63 = vpop.f32.mrf.mxu1 }
 0x1b8   : > { %v593_v0 = vpop.f32.mrf.mxu1 }
 0x1be   : > { %v9861_v2 = vpop.f32.mrf.mxu1 }
 0x1c0   : > { %v603_v3 = vpop.f32.mrf.mxu1 }
 0x1c6   : > { %v9864_v4 = vpop.f32.mrf.mxu1 }
 0x1c8   : > { %v613_v5 = vpop.f32.mrf.mxu1 }
 0x1ce   : > { %v9867_v6 = vpop.f32.mrf.mxu1 }
 0x1d0   : > { %v623_v7 = vpop.f32.mrf.mxu1 }
 0x1d2   : > { %v9874_v8 = vpop.f32.mrf.mxu1 }
 0x1d4   : > { %v701_v9 = vpop.f32.mrf.mxu1 }
 0x1d5   : > { %v702_v45 = vadd.f32 %v701_v9, %v573_v60  ;;  %v924_v9 = vld [vmem:[%s14034_s3 + $0x28] sm:$0xff] }
 0x1d6   : > { %v9877_v10 = vpop.f32.mrf.mxu1  ;;  %9891 = vmatpush3.msra.mxu1 %v924_v9 }
 0x1d7   : > { %v11734_v55 = vadd.f32 %v11702_v19, %v702_v45  ;;  %v717_v58 = vadd.f32 %v9877_v10, %v9855_v61  ;;  %9892 = vmatprep.subr.mxu1 %v14039_v1 }
 0x1d8   : > { %v711_v11 = vpop.f32.mrf.mxu1 }
 0x1d9   : > { %v712_v31 = vadd.f32 %v711_v11, %v583_v62 }
 0x1da   : > { %v9880_v12 = vpop.f32.mrf.mxu1 }
 0x1db   : > { %v11723_v46 = vadd.f32 %v11702_v19, %v712_v31  ;;  %v727_v48 = vadd.f32 %v9880_v12, %v9858_v63 }
 0x1dc   : > { %v721_v13 = vpop.f32.mrf.mxu1 }
 0x1dd   : > { %v722_v21 = vadd.f32 %v721_v13, %v593_v0  ;;  %v8674_v57 = vmul.f32 -1.442695, %v11723_v46  ;;  %v11738_v60 = vadd.f32 %v11702_v19, %v727_v48  ;;  %v707_v0 = vadd.f32 %v9874_v8, %v9852_v59 }
 0x1de   : > { %v9883_v14 = vpop.f32.mrf.mxu1 }
 0x1df   : > { %v11715_v36 = vadd.f32 %v11702_v19, %v722_v21  ;;  %v737_v37 = vadd.f32 %v9883_v14, %v9861_v2  ;;  %v8672_v2 = vmul.f32 -1.442695, %v11734_v55  ;;  %v923_v21 = vld [vmem:[%s14034_s3 + $0x20] sm:$0xff] }
 0x1e0   : > { %v731_v15 = vpop.f32.mrf.mxu1  ;;  %9893 = vmatpush3.msra.mxu1 %v923_v21 }
 0x1e1   : > { %v732_v16 = vadd.f32 %v731_v15, %v603_v3  ;;  %v8676_v49 = vmul.f32 -1.442695, %v11715_v36  ;;  %v11727_v51 = vadd.f32 %v11702_v19, %v737_v37  ;;  %v11744_v3 = vadd.f32 %v11702_v19, %v717_v58 }
 0x1e2   : > { %v9886_v17 = vpop.f32.mrf.mxu1 }
 0x1e3   : > { %v747_v18 = vadd.f32 %v9886_v17, %v9864_v4  ;;  %v11705_v23 = vadd.f32 %v11702_v19, %v732_v16  ;;  %v8679_v62 = vmul.f32 -1.442695, %v11727_v51  ;;  %v8677_v4 = vmul.f32 -1.442695, %v11738_v60 }
 0x1e4   : > { %v741_v20 = vpop.f32.mrf.mxu1 }
 0x1e5   : > { %v11708_v24 = vadd.f32 %v11702_v19, %v747_v18  ;;  %v742_v26 = vadd.f32 %v741_v20, %v613_v5  ;;  %v8678_v39 = vmul.f32 -1.442695, %v11705_v23  ;;  %v11748_v5 = vadd.f32 %v11702_v19, %v707_v0 }
 0x1e6   : > { %v9889_v27 = vpop.f32.mrf.mxu1 }
 0x1e7   : > { %v8681_v28 = vmul.f32 -1.442695, %v11708_v24  ;;  %v11712_v30 = vadd.f32 %v11702_v19, %v742_v26  ;;  %v757_v33 = vadd.f32 %v9889_v27, %v9867_v6  ;;  %v8673_v10 = vmul.f32 -1.442695, %v11748_v5 }
 0x1e8   : > { %v751_v34 = vpop.f32.mrf.mxu1 }
 0x1e9   : > { %11072 = vpow2.f32 %v8681_v28  ;;  %v8680_v40 = vmul.f32 -1.442695, %v11712_v30  ;;  %v11720_v42 = vadd.f32 %v11702_v19, %v757_v33  ;;  %v752_v43 = vadd.f32 %v751_v34, %v623_v7 }
 0x1ea   : > { %11074 = vpow2.f32 %v8678_v39  ;;  %v8675_v7 = vmul.f32 -1.442695, %v11744_v3 }
 0x1eb   : > { %11076 = vpow2.f32 %v8680_v40  ;;  %v8683_v52 = vmul.f32 -1.442695, %v11720_v42  ;;  %v11731_v54 = vadd.f32 %v11702_v19, %v752_v43 }
 0x1ec   : > { %11078 = vpow2.f32 %v8676_v49 }
 0x1ed   : > { %11080 = vpow2.f32 %v8683_v52  ;;  %v8682_v63 = vmul.f32 -1.442695, %v11731_v54 }
 0x1ee   : > { %11082 = vpow2.f32 %v8674_v57 }
 0x1ef   : > { %11084 = vpow2.f32 %v8679_v62 }
 0x1f0   : > { %11086 = vpow2.f32 %v8682_v63 }
 0x1f1   : > { %11088 = vpow2.f32 %v8672_v2 }
 0x1f2   : > { %11090 = vpow2.f32 %v8677_v4 }
 0x1f6   : > { %v11073_v61 = vpop.eup %11072 }
 0x1f7   : > { %v836_v6 = vadd.f32 1.0, %v11073_v61  ;;  %v11075_v59 = vpop.eup %11074  ;;  %v11772_v61 = vld [vmem:[%s14032_s1] sm:$0xff] }
 0x1f8   : > { %v11077_v8 = vpop.eup %11076  ;;  %v833_v12 = vadd.f32 1.0, %v11075_v59  ;;  %9921 = vmatprep.mubr.msk.f32.mxu0 %vm1013_vm3, %v11772_v61 }
 0x1f9   : > { %11092 = vrcp.f32 %v836_v6  ;;  %v835_v11 = vadd.f32 1.0, %v11077_v8  ;;  %v11079_v13 = vpop.eup %11078 }
 0x1fa   : > { %11094 = vpow2.f32 %v8675_v7  ;;  %v11081_v14 = vpop.eup %11080  ;;  %v831_v17 = vadd.f32 1.0, %v11079_v13 }
 0x1fb   : > { %11096 = vrcp.f32 %v835_v11  ;;  %v838_v15 = vadd.f32 1.0, %v11081_v14  ;;  %v11083_v16 = vpop.eup %11082 }
 0x1fc   : > { %11098 = vpow2.f32 %v8673_v10  ;;  %v11085_v18 = vpop.eup %11084  ;;  %v829_v28 = vadd.f32 1.0, %v11083_v16 }
 0x1fd   : > { %11100 = vrcp.f32 %v833_v12  ;;  %v11087_v20 = vpop.eup %11086  ;;  %v834_v33 = vadd.f32 1.0, %v11085_v18 }
 0x1fe   : > { %11102 = vrcp.f32 %v838_v15  ;;  %v837_v26 = vadd.f32 1.0, %v11087_v20  ;;  %v11089_v27 = vpop.eup %11088 }
 0x1ff   : > { %11104 = vrcp.f32 %v831_v17  ;;  %v11091_v31 = vpop.eup %11090  ;;  %v827_v37 = vadd.f32 1.0, %v11089_v27 }
 0x200   : > { %11106 = vrcp.f32 %v837_v26  ;;  %v832_v40 = vadd.f32 1.0, %v11091_v31 }
 0x201   : > { %11108 = vrcp.f32 %v829_v28 }
 0x202   : > { %11110 = vrcp.f32 %v834_v33 }
 0x203   : > { %11112 = vrcp.f32 %v827_v37 }
 0x204   : > { %11114 = vrcp.f32 %v832_v40 }
 0x206   : > { %v11093_v34 = vpop.eup %11092 }
 0x207   : > { %893 = vrot.lane.b32.xlu1 %v11093_v34, %s11453_s22  ;;  %v11095_v39 = vpop.eup %11094 }
 0x208   : > { %v11097_v43 = vpop.eup %11096  ;;  %v830_v49 = vadd.f32 1.0, %v11095_v39 }
 0x209   : > { %v11099_v45 = vpop.eup %11098 }
 0x20a   : > { %v11101_v48 = vpop.eup %11100  ;;  %v828_v58 = vadd.f32 1.0, %v11099_v45  ;;  %11116 = vrcp.f32 %v830_v49  ;;  %v11873_v49 = vld [vmem:[%s14032_s1 + $0x68] sm:$0xff] }
 0x20b   : > { %891 = vrot.lane.b32.xlu1 %v11097_v43, %s11453_s22  ;;  %v11103_v52 = vpop.eup %11102 }
 0x20c   : > { %897 = vrot.lane.b32.xlu0 %v11103_v52, %s11453_s22  ;;  %v11105_v57 = vpop.eup %11104  ;;  %11118 = vrcp.f32 %v828_v58  ;;  %v11878_v52 = vld [vmem:[%s14032_s1 + $0x10] sm:$0xff]  ;;  %v1350_v58 = vld [vmem:[%s14034_s3 + $0x38] sm:$0xff] }
 0x20d   : > { %v11107_v62 = vpop.eup %11106  ;;  %11120 = vtanh.f32 %v11720_v42  ;;  %v11790_v42 = vld [vmem:[%s14032_s1 + $0x60] sm:$0xff] }
 0x20e   : > { %v11109_v63 = vpop.eup %11108  ;;  %11122 = vtanh.f32 %v11731_v54 }
 0x20f   : > { %887 = vrot.lane.b32.xlu1 %v11101_v48, %s11453_s22  ;;  %v11111_v0 = vpop.eup %11110  ;;  %11124 = vtanh.f32 %v11708_v24  ;;  %v11868_v48 = vld [vmem:[%s14032_s1 + $0x8] sm:$0xff] }
 0x210   : > { %895 = vrot.lane.b32.xlu0 %v11107_v62, %s11453_s22  ;;  %v11113_v2 = vpop.eup %11112  ;;  %11126 = vtanh.f32 %v11712_v30  ;;  %v11899_v62 = vld [vmem:[%s14032_s1 + $0x18] sm:$0xff] }
 0x211   : > { %v11115_v4 = vpop.eup %11114  ;;  %11128 = vtanh.f32 %v11727_v51 }
 0x212   : > { %11130 = vtanh.f32 %v11705_v23 }
 0x213   : > { %883 = vrot.lane.b32.xlu1 %v11105_v57, %s11453_s22  ;;  %11132 = vtanh.f32 %v11738_v60  ;;  %v11883_v57 = vld [vmem:[%s14032_s1 + $0x70] sm:$0xff] }
 0x214   : > { %889 = vrot.lane.b32.xlu0 %v11111_v0, %s11453_s22  ;;  %11134 = vtanh.f32 %v11715_v36  ;;  %v11909_v0 = vld [vmem:[%s14032_s1 + $0x20] sm:$0xff] }
 0x215   : > { %11136 = vtanh.f32 %v11744_v3 }
 0x216   : > { %11138 = vtanh.f32 %v11723_v46 }
 0x217   : > { %879 = vrot.lane.b32.xlu1 %v11109_v63, %s11453_s22  ;;  %v11117_v6 = vpop.eup %11116  ;;  %11140 = vtanh.f32 %v11748_v5  ;;  %v11904_v63 = vld [vmem:[%s14032_s1 + $0x78] sm:$0xff] }
 0x218   : > { %885 = vrot.lane.b32.xlu0 %v11115_v4, %s11453_s22  ;;  %11142 = vtanh.f32 %v11734_v55  ;;  %v1349_v4 = vld [vmem:[%s14034_s3 + $0x30] sm:$0xff] }
 0x219   : > { %v11119_v7 = vpop.eup %11118 }
 0x21a   : > { %v11121_v9 = vpop.eup %11120 }
 0x21b   : > { %875 = vrot.lane.b32.xlu1 %v11113_v2, %s11453_s22  ;;  %v11123_v24 = vpop.eup %11122  ;;  %v11914_v2 = vld [vmem:[%s14032_s1 + $0x80] sm:$0xff] }
 0x21c   : > { %881 = vrot.lane.b32.xlu0 %v11117_v6, %s11453_s22  ;;  %v11125_v36 = vpop.eup %11124  ;;  %v11930_v6 = vld [vmem:[%s14032_s1 + $0x28] sm:$0xff] }
 0x21d   : > { %v11127_v60 = vpop.eup %11126 }
 0x21e   : > { %v11129_v46 = vpop.eup %11128 }
 0x21f   : > { %v11131_v5 = vpop.eup %11130  ;;  %1874 = vrot.lane.b32.xlu1 %v11702_v19, %s11455_s16 }
 0x220   : > { %877 = vrot.lane.b32.xlu0 %v11119_v7, %s11453_s22  ;;  %v11133_v17 = vpop.eup %11132  ;;  %v11935_v7 = vld [vmem:[%s14032_s1 + $0x88] sm:$0xff] }
 0x221   : > { %v11135_v18 = vpop.eup %11134 }
 0x222   : > { %v11137_v27 = vpop.eup %11136 }
 0x223   : > { %v11139_v31 = vpop.eup %11138 }
 0x224   : > { %v11141_v37 = vpop.eup %11140  ;;  %1847 = vrot.lane.b32.xlu0 %v11702_v19, %s11454_s15 }
 0x225   : > { %v11143_v43 = vpop.eup %11142 }
 0x228   : > { %1889 = vrot.lane.b32.xlu0 %v11702_v19, %s11456_s17 }
 0x279   : > { %v894_v59 = vpop.permute.xlu1 %893 }
 0x27a   : > { %v11805_v54 = vmul.f32 %v11125_v36, %v894_v59  ;;  %v11940_v59 = vld [vmem:[%s14032_s1 + $0x30] sm:$0xff]  ;;  %v11991_v36 = vld [vmem:[%s14032_s1 + $0xa8] sm:$0xff] }
 0x27b   : > { %14050 = vst [vmem:[#allocation8_spill] sm:$0xff] %v11991_v36 }
 0x27d   : > { %v892_v8 = vpop.permute.xlu1 %891 }
 0x27e   : > { %v898_v10 = vpop.permute.xlu0 %897  ;;  %v11812_v3 = vmul.f32 %v11127_v60, %v892_v8  ;;  %v11945_v8 = vld [vmem:[%s14032_s1 + $0x90] sm:$0xff] }
 0x27f   : > { %v11785_v11 = vmul.f32 %v11121_v9, %v898_v10  ;;  %v11958_v9 = vld [vmem:[%s14032_s1 + $0x38] sm:$0xff]  ;;  %v1011_v60 = vld [vmem:[%s14032_s1 + $0x50] sm:$0xff] }
 0x280   : > { %v11963_v10 = vld [vmem:[%s14032_s1 + $0x98] sm:$0xff] }
 0x281   : > { %9895 = vmatmul.mubr.msk.f32.vlgmr.msra.gmra.mxu1 %vm470_vm2, %v11785_v11  ;;  %9897 = vmatprep.subr.mxu0 %v11785_v11  ;;  %v888_v30 = vpop.permute.xlu1 %887 }
 0x282   : > { %9939 = vmatprep.subr.mxu1 %v11785_v11  ;;  %9898 = vmatpush3.msra.mxu0 %v11785_v11  ;;  %v896_v23 = vpop.permute.xlu0 %895  ;;  %v11825_v16 = vmul.f32 %v11131_v5, %v888_v30  ;;  %v11986_v30 = vld [vmem:[%s14032_s1 + $0x48] sm:$0xff] }
 0x283   : > { %9940 = vmatpush3.msra.mxu1 %v11785_v11  ;;  %v11800_v51 = vmul.f32 %v11123_v24, %v896_v23  ;;  %9963 = vmatprep.mubr.msk.f32.mxu1 %vm1013_vm3, %v11790_v42  ;;  %v11968_v24 = vld [vmem:[%s14032_s1 + $0x40] sm:$0xff]  ;;  %14049 = vst [vmem:[#allocation7_spill] sm:$0xff] %v11986_v30  ;;  %v1352_v5 = vld [vmem:[%s14034_s3 + $0x48] sm:$0xff] }
 0x284   : > { %14047 = vst [vmem:[#allocation5_spill] sm:$0xff] %v11968_v24  ;;  %v11973_v23 = vld [vmem:[%s14032_s1 + $0xa0] sm:$0xff] }
 0x285   : > { %9899 = vmatprep.subr.mxu0 %v11800_v51  ;;  %9941 = vmatprep.subr.mxu1 %v11800_v51  ;;  %v884_v13 = vpop.permute.xlu1 %883  ;;  %14048 = vst [vmem:[#allocation6_spill] sm:$0xff] %v11973_v23 }
 0x286   : > { %v890_v12 = vpop.permute.xlu0 %889  ;;  %9900 = vmatpush3.msra.mxu0 %v11800_v51  ;;  %9942 = vmatpush3.msra.mxu1 %v11800_v51  ;;  %v11837_v26 = vmul.f32 %v11135_v18, %v884_v13  ;;  %v8708_v13 = vld [vmem:[%s14032_s1 + $0xb8] sm:$0xff] }
 0x287   : > { %9901 = vmatprep.subr.mxu0 %v11805_v54  ;;  %9943 = vmatprep.subr.mxu1 %v11805_v54  ;;  %v11819_v14 = vmul.f32 %v11129_v46, %v890_v12  ;;  %v8707_v12 = vld [vmem:[%s14032_s1 + $0xb0] sm:$0xff]  ;;  %v1012_v46 = vld [vmem:[%s14032_s1 + $0x58] sm:$0xff] }
 0x288   : > { %9902 = vmatpush3.msra.mxu0 %v11805_v54  ;;  %9944 = vmatpush3.msra.mxu1 %v11805_v54 }
 0x289   : > { %9903 = vmatprep.subr.mxu0 %v11812_v3  ;;  %9945 = vmatprep.subr.mxu1 %v11812_v3  ;;  %v880_v20 = vpop.permute.xlu1 %879 }
 0x28a   : > { %v886_v15 = vpop.permute.xlu0 %885  ;;  %9904 = vmatpush3.msra.mxu0 %v11812_v3  ;;  %9946 = vmatpush3.msra.mxu1 %v11812_v3  ;;  %v11849_v34 = vmul.f32 %v11139_v31, %v880_v20 }
 0x28b   : > { %9905 = vmatprep.subr.mxu0 %v11819_v14  ;;  %9947 = vmatprep.subr.mxu1 %v11819_v14  ;;  %v11831_v55 = vmul.f32 %v11133_v17, %v886_v15  ;;  %v1672_v17 = vld [vmem:[%s14034_s3 + $0x50] sm:$0xff] }
 0x28c   : > { %9906 = vmatpush3.msra.mxu0 %v11819_v14  ;;  %9948 = vmatpush3.msra.mxu1 %v11819_v14 }
 0x28d   : > { %9907 = vmatprep.subr.mxu0 %v11825_v16  ;;  %9949 = vmatprep.subr.mxu1 %v11825_v16  ;;  %v876_v39 = vpop.permute.xlu1 %875 }
 0x28e   : > { %v882_v21 = vpop.permute.xlu0 %881  ;;  %9908 = vmatpush3.msra.mxu0 %v11825_v16  ;;  %9950 = vmatpush3.msra.mxu1 %v11825_v16  ;;  %v911_v45 = vmul.f32 %v11143_v43, %v876_v39 }
 0x28f   : > { %9909 = vmatprep.subr.mxu0 %v11831_v55  ;;  %9951 = vmatprep.subr.mxu1 %v11831_v55  ;;  %v11843_v28 = vmul.f32 %v11137_v27, %v882_v21 }
 0x290   : > { %9910 = vmatpush3.msra.mxu0 %v11831_v55  ;;  %9952 = vmatpush3.msra.mxu1 %v11831_v55 }
 0x291   : > { %9911 = vmatprep.subr.mxu0 %v11837_v26  ;;  %9953 = vmatprep.subr.mxu1 %v11837_v26 }
 0x292   : > { %v878_v33 = vpop.permute.xlu0 %877  ;;  %9912 = vmatpush3.msra.mxu0 %v11837_v26  ;;  %9954 = vmatpush3.msra.mxu1 %v11837_v26 }
 0x293   : > { %9913 = vmatprep.subr.mxu0 %v11843_v28  ;;  %9955 = vmatprep.subr.mxu1 %v11843_v28  ;;  %v11855_v40 = vmul.f32 %v11141_v37, %v878_v33 }
 0x294   : > { %9914 = vmatpush3.msra.mxu0 %v11843_v28  ;;  %9956 = vmatpush3.msra.mxu1 %v11843_v28 }
 0x295   : > { %9915 = vmatprep.subr.mxu0 %v11849_v34  ;;  %9957 = vmatprep.subr.mxu1 %v11849_v34 }
 0x296   : > { %9916 = vmatpush3.msra.mxu0 %v11849_v34  ;;  %9958 = vmatpush3.msra.mxu1 %v11849_v34 }
 0x297   : > { %9917 = vmatprep.subr.mxu0 %v11855_v40  ;;  %9959 = vmatprep.subr.mxu1 %v11855_v40 }
 0x298   : > { %9918 = vmatpush3.msra.mxu0 %v11855_v40  ;;  %9960 = vmatpush3.msra.mxu1 %v11855_v40 }
 0x299   : > { %9919 = vmatprep.subr.mxu0 %v911_v45  ;;  %9961 = vmatprep.subr.mxu1 %v911_v45 }
 0x29a   : > { %9920 = vmatpush3.msra.mxu0 %v911_v45  ;;  %9962 = vmatpush3.msra.mxu1 %v911_v45 }
 0x29b   : > { %9922 = vmatmul.mubr.msk.f32.vlgmr.msra.gmra.mxu0 %vm1013_vm3, %v11868_v48  ;;  %9964 = vmatmul.mubr.msk.f32.vlgmr.msra.gmra.mxu1 %vm1013_vm3, %v11873_v49 }
 0x29c   : > { %9924 = vmatprep.mubr.msk.f32.mxu0 %vm1013_vm3, %v11878_v52  ;;  %9966 = vmatprep.mubr.msk.f32.mxu1 %vm1013_vm3, %v11883_v57 }
 0x29d   : > { %10003 = vmatprep.subr.mxu1 %v1350_v58  ;;  %9981 = vmatprep.subr.mxu0 %v1352_v5 }
 0x29e   : > { %10004 = vmatpush3.msra.mxu1 %v1350_v58  ;;  %9982 = vmatpush3.msra.mxu0 %v1352_v5  ;;  %v8757_v5 = vld [vmem:[%s14034_s3 + $0x60] sm:$0xff] }
 0x29f   : > { %9925 = vmatmul.mubr.msk.f32.gmra.mxu0 %vm1013_vm3, %v11899_v62  ;;  %9967 = vmatmul.mubr.msk.f32.gmra.mxu1 %vm1013_vm3, %v11904_v63 }
 0x2a0   : > { %9927 = vmatprep.mubr.msk.f32.mxu0 %vm1013_vm3, %v11909_v0  ;;  %9969 = vmatprep.mubr.msk.f32.mxu1 %vm1013_vm3, %v11914_v2 }
 0x2a1   : > { %10005 = vmatprep.subr.mxu1 %v1349_v4 }
 0x2a2   : > { %10006 = vmatpush3.msra.mxu1 %v1349_v4 }
 0x2a3   : > { %9928 = vmatmul.mubr.msk.f32.gmra.mxu0 %vm1013_vm3, %v11930_v6  ;;  %9970 = vmatmul.mubr.msk.f32.gmra.mxu1 %vm1013_vm3, %v11935_v7 }
 0x2a4   : > { %9930 = vmatprep.mubr.msk.f32.mxu0 %vm1013_vm3, %v11940_v59  ;;  %9972 = vmatprep.mubr.msk.f32.mxu1 %vm1013_vm3, %v11945_v8 }
 0x2a7   : > { %9931 = vmatmul.mubr.msk.f32.gmra.mxu0 %vm1013_vm3, %v11958_v9  ;;  %9973 = vmatmul.mubr.msk.f32.gmra.mxu1 %vm1013_vm3, %v11963_v10 }
 0x2a8   : > { %9933 = vmatprep.mubr.msk.f32.mxu0 %vm1013_vm3, %v11968_v24  ;;  %9975 = vmatprep.mubr.msk.f32.mxu1 %vm1013_vm3, %v11973_v23 }
 0x2ab   : > { %9934 = vmatmul.mubr.msk.f32.gmra.mxu0 %vm1013_vm3, %v11986_v30  ;;  %9976 = vmatmul.mubr.msk.f32.gmra.mxu1 %vm1013_vm3, %v11991_v36  ;;  %v12101_v30 = vpop.permute.xlu1 %1874 }
 0x2ac   : > { %9936 = vmatprep.mubr.msk.f32.mxu0 %vm1013_vm3, %v1011_v60  ;;  %9978 = vmatprep.mubr.msk.f32.mxu1 %vm1013_vm3, %v8707_v12 }
 0x2af   : > { %9937 = vmatmul.mubr.msk.f32.gmra.mxu0 %vm1013_vm3, %v1012_v46  ;;  %9979 = vmatmul.mubr.msk.f32.gmra.mxu1 %vm1013_vm3, %v8708_v13  ;;  %v8758_v13 = vld [vmem:[%s14034_s3 + $0x68] sm:$0xff] }
 0x2b0   : > { %10007 = vmatprep.mubr.msk.f32.mxu1 %vm470_vm2, %v911_v45 }
 0x2b3   : > { %10008 = vmatmul.mubr.msk.f32.vlgmr.msra.gmra.mxu1 %vm470_vm2, %v11855_v40 }
 0x2b4   : > { %10010 = vmatprep.mubr.msk.f32.mxu1 %vm470_vm2, %v11849_v34 }
 0x2b7   : > { %10011 = vmatmul.mubr.msk.f32.gmra.mxu1 %vm470_vm2, %v11843_v28 }
 0x2b8   : > { %10013 = vmatprep.mubr.msk.f32.mxu1 %vm470_vm2, %v11837_v26 }
 0x2bb   : > { %10014 = vmatmul.mubr.msk.f32.gmra.mxu1 %vm470_vm2, %v11831_v55 }
 0x2bc   : > { %10016 = vmatprep.mubr.msk.f32.mxu1 %vm470_vm2, %v11825_v16 }
 0x2bf   : > { %10017 = vmatmul.mubr.msk.f32.gmra.mxu1 %vm470_vm2, %v11819_v14  ;;  %v1351_v14 = vld [vmem:[%s14034_s3 + $0x40] sm:$0xff] }
 0x2c0   : > { %10019 = vmatprep.mubr.msk.f32.mxu1 %vm470_vm2, %v11812_v3  ;;  %9983 = vmatprep.subr.mxu0 %v1351_v14 }
 0x2c1   : > { %9984 = vmatpush3.msra.mxu0 %v1351_v14  ;;  %v8760_v14 = vld [vmem:[%s14034_s3 + $0x78] sm:$0xff] }
 0x2c2   : > { %10047 = vmatprep.subr.mxu1 %v8760_v14 }
 0x2c3   : > { %10020 = vmatmul.mubr.msk.f32.gmra.mxu1 %vm470_vm2, %v11805_v54  ;;  %v1673_v54 = vld [vmem:[%s14034_s3 + $0x58] sm:$0xff] }
 0x2c4   : > { %10022 = vmatprep.mubr.msk.f32.mxu1 %vm470_vm2, %v11800_v51  ;;  %10025 = vmatprep.subr.mxu0 %v1673_v54 }
 0x2c5   : > { %10048 = vmatpush3.msra.mxu1 %v8760_v14 }
 0x2c7   : > { %10023 = vmatmul.mubr.msk.f32.gmra.mxu1 %vm470_vm2, %v11785_v11 }
 0x341   : > { %v12051_v11 = vpop.f32.mrf.mxu1 }
 0x342   : > { %14051 = vst [vmem:[#allocation9_spill] sm:$0xff] %v12051_v11 }
 0x343   : > { %v9896_v51 = vpop.f32.mrf.mxu1 }
 0x35b   : > { %v9923_v3 = vpop.f32.mrf.mxu0  ;;  %v9965_v15 = vpop.f32.mrf.mxu1 }
 0x35d   : > { %v1116_v16 = vpop.f32.mrf.mxu0  ;;  %v1290_v55 = vpop.f32.mrf.mxu1 }
 0x35e   : > { %9985 = vmatprep.mubr.msk.f32.mxu0 %vm470_vm2, %v1116_v16 }
 0x35f   : > { %v9926_v18 = vpop.f32.mrf.mxu0  ;;  %9986 = vmatmul.mubr.msk.f32.vlgmr.msra.gmra.mxu0 %vm470_vm2, %v9923_v3  ;;  %v9968_v19 = vpop.f32.mrf.mxu1 }
 0x360   : > { %10026 = vmatpush3.msra.mxu0 %v1673_v54  ;;  %v8759_v54 = vld [vmem:[%s14034_s3 + $0x70] sm:$0xff] }
 0x361   : > { %v1126_v20 = vpop.f32.mrf.mxu0  ;;  %10027 = vmatprep.subr.mxu0 %v1672_v17  ;;  %v1300_v27 = vpop.f32.mrf.mxu1  ;;  %10049 = vmatprep.subr.mxu1 %v8759_v54 }
 0x362   : > { %9988 = vmatprep.mubr.msk.f32.mxu0 %vm470_vm2, %v1126_v20  ;;  %10028 = vmatpush3.msra.mxu0 %v1672_v17 }
 0x363   : > { %v9929_v21 = vpop.f32.mrf.mxu0  ;;  %9989 = vmatmul.mubr.msk.f32.gmra.mxu0 %vm470_vm2, %v9926_v18  ;;  %v9971_v33 = vpop.f32.mrf.mxu1  ;;  %10066 = vmatprep.subr.mxu0 %v8758_v13 }
 0x364   : > { %10050 = vmatpush3.msra.mxu1 %v8759_v54 }
 0x365   : > { %v1136_v26 = vpop.f32.mrf.mxu0  ;;  %v1310_v39 = vpop.f32.mrf.mxu1  ;;  %10085 = vmatprep.subr.mxu1 %v14039_v1 }
 0x366   : > { %9991 = vmatprep.mubr.msk.f32.mxu0 %vm470_vm2, %v1136_v26 }
 0x367   : > { %v9932_v28 = vpop.f32.mrf.mxu0  ;;  %9992 = vmatmul.mubr.msk.f32.gmra.mxu0 %vm470_vm2, %v9929_v21  ;;  %v9974_v45 = vpop.f32.mrf.mxu1 }
 0x369   : > { %v1146_v31 = vpop.f32.mrf.mxu0  ;;  %v1320_v58 = vpop.f32.mrf.mxu1 }
 0x36a   : > { %9994 = vmatprep.mubr.msk.f32.mxu0 %vm470_vm2, %v1146_v31 }
 0x36b   : > { %v9935_v34 = vpop.f32.mrf.mxu0  ;;  %9995 = vmatmul.mubr.msk.f32.gmra.mxu0 %vm470_vm2, %v9932_v28  ;;  %v9977_v4 = vpop.f32.mrf.mxu1 }
 0x36d   : > { %v1156_v37 = vpop.f32.mrf.mxu0  ;;  %v1330_v60 = vpop.f32.mrf.mxu1 }
 0x36e   : > { %9997 = vmatprep.mubr.msk.f32.mxu0 %vm470_vm2, %v1156_v37 }
 0x36f   : > { %v9938_v40 = vpop.f32.mrf.mxu0  ;;  %9998 = vmatmul.mubr.msk.f32.gmra.mxu0 %vm470_vm2, %v9935_v34  ;;  %v9980_v12 = vpop.f32.mrf.mxu1 }
 0x371   : > { %v1166_v43 = vpop.f32.mrf.mxu0  ;;  %v1340_v46 = vpop.f32.mrf.mxu1 }
 0x372   : > { %10000 = vmatprep.mubr.msk.f32.mxu0 %vm470_vm2, %v1166_v43 }
 0x373   : > { %10001 = vmatmul.mubr.msk.f32.gmra.mxu0 %vm470_vm2, %v9938_v40  ;;  %v10009_v51 = vpop.f32.mrf.mxu1 }
 0x374   : > { %10029 = vmatprep.mubr.msk.f32.mxu0 %vm470_vm2, %v1290_v55 }
 0x375   : > { %v1613_v16 = vpop.f32.mrf.mxu1 }
 0x377   : > { %10030 = vmatmul.mubr.msk.f32.vlgmr.msra.gmra.mxu0 %vm470_vm2, %v9965_v15  ;;  %v10012_v18 = vpop.f32.mrf.mxu1 }
 0x378   : > { %10032 = vmatprep.mubr.msk.f32.mxu0 %vm470_vm2, %v1300_v27  ;;  %10067 = vmatpush3.msra.mxu0 %v8758_v13 }
 0x379   : > { %10068 = vmatprep.subr.mxu0 %v8757_v5  ;;  %v1623_v21 = vpop.f32.mrf.mxu1 }
 0x37a   : > { %10069 = vmatpush3.msra.mxu0 %v8757_v5 }
 0x37b   : > { %10033 = vmatmul.mubr.msk.f32.gmra.mxu0 %vm470_vm2, %v9968_v19  ;;  %v10015_v28 = vpop.f32.mrf.mxu1 }
 0x37c   : > { %10035 = vmatprep.mubr.msk.f32.mxu0 %vm470_vm2, %v1310_v39 }
 0x37d   : > { %v1633_v34 = vpop.f32.mrf.mxu1 }
 0x37f   : > { %10036 = vmatmul.mubr.msk.f32.gmra.mxu0 %vm470_vm2, %v9971_v33  ;;  %v10018_v40 = vpop.f32.mrf.mxu1 }
 0x380   : > { %10038 = vmatprep.mubr.msk.f32.mxu0 %vm470_vm2, %v1320_v58  ;;  %v12097_v58 = vpop.permute.xlu0 %1847 }
 0x383   : > { %10039 = vmatmul.mubr.msk.f32.gmra.mxu0 %vm470_vm2, %v9974_v45 }
 0x384   : > { %10041 = vmatprep.mubr.msk.f32.mxu0 %vm470_vm2, %v1330_v60 }
 0x387   : > { %10042 = vmatmul.mubr.msk.f32.gmra.mxu0 %vm470_vm2, %v9977_v4 }
 0x388   : > { %10044 = vmatprep.mubr.msk.f32.mxu0 %vm470_vm2, %v1340_v46  ;;  %v1643_v46 = vpop.f32.mrf.mxu1 }
 0x38a   : > { %v10021_v23 = vpop.f32.mrf.mxu1 }
 0x38b   : > { %10045 = vmatmul.mubr.msk.f32.gmra.mxu0 %vm470_vm2, %v9980_v12 }
 0x41f   : > { %v9987_v3 = vpop.f32.mrf.mxu0 }
 0x420   : > { %v1619_v43 = vadd.f32 %v10009_v51, %v9987_v3 }
 0x421   : > { %v1455_v15 = vpop.f32.mrf.mxu0 }
 0x422   : > { %v1614_v4 = vadd.f32 %v1613_v16, %v1455_v15 }
 0x423   : > { %v9990_v17 = vpop.f32.mrf.mxu0 }
 0x424   : > { %v1629_v13 = vadd.f32 %v10012_v18, %v9990_v17 }
 0x425   : > { %v1465_v55 = vpop.f32.mrf.mxu0 }
 0x426   : > { %v1624_v1 = vadd.f32 %v1623_v21, %v1465_v55 }
 0x427   : > { %v9993_v20 = vpop.f32.mrf.mxu0 }
 0x428   : > { %v1639_v24 = vadd.f32 %v10015_v28, %v9993_v20  ;;  %v1653_v28 = vpop.f32.mrf.mxu1 }
 0x429   : > { %v1475_v19 = vpop.f32.mrf.mxu0 }
 0x42a   : > { %v1634_v18 = vadd.f32 %v1633_v34, %v1475_v19 }
 0x42b   : > { %v9996_v26 = vpop.f32.mrf.mxu0 }
 0x42d   : > { %v1485_v27 = vpop.f32.mrf.mxu0 }
 0x42e   : > { %v1644_v19 = vadd.f32 %v1643_v46, %v1485_v27 }
 0x42f   : > { %v9999_v31 = vpop.f32.mrf.mxu0 }
 0x431   : > { %v1495_v33 = vpop.f32.mrf.mxu0 }
 0x433   : > { %v12093_v37 = vpop.f32.mrf.mxu0 }
 0x435   : > { %v12095_v39 = vpop.f32.mrf.mxu0 }
 0x437   : > { %v10031_v45 = vpop.f32.mrf.mxu0 }
 0x438   : > { %v1836_v60 = vadd.f32 %v10031_v45, %v1619_v43 }
 0x439   : > { %v1776_v12 = vpop.f32.mrf.mxu0 }
 0x43a   : > { %v1835_v5 = vadd.f32 %v1776_v12, %v1614_v4  ;;  %v1851_v14 = vadd.f32 %v12097_v58, %v1836_v60  ;;  %v12109_v4 = vpop.permute.xlu0 %1889  ;;  %v1649_v12 = vadd.f32 %v10018_v40, %v9996_v26 }
 0x43b   : > { %v10034_v54 = vpop.f32.mrf.mxu0 }
 0x43c   : > { %v1850_v11 = vadd.f32 %v12097_v58, %v1835_v5  ;;  %v1838_v36 = vadd.f32 %v10034_v54, %v1629_v13  ;;  %v1863_v51 = vadd.f32 %v1851_v14, %v11626_v25  ;;  %v10024_v14 = vpop.f32.mrf.mxu1  ;;  %v1659_v54 = vadd.f32 %v10021_v23, %v9999_v31 }
 0x43d   : > { %v1786_v3 = vpop.f32.mrf.mxu0 }
 0x43e   : > { %v1862_v15 = vadd.f32 %v1850_v11, %v11622_v22  ;;  %v1853_v16 = vadd.f32 %v12097_v58, %v1838_v36  ;;  %v1837_v17 = vadd.f32 %v1786_v3, %v1624_v1  ;;  %v1878_v45 = vmul.f32 %v12101_v30, %v1863_v51 }
 0x43f   : > { %v10037_v43 = vpop.f32.mrf.mxu0  ;;  %v1654_v3 = vadd.f32 %v1653_v28, %v1495_v33  ;;  %v1663_v33 = vpop.f32.mrf.mxu1 }
 0x440   : > { %v1865_v55 = vadd.f32 %v1853_v16, %v11638_v32  ;;  %v1852_v21 = vadd.f32 %v12097_v58, %v1837_v17  ;;  %v1840_v60 = vadd.f32 %v10037_v43, %v1639_v24  ;;  %v1877_v25 = vmul.f32 %v12101_v30, %v1862_v15 }
 0x441   : > { %v1796_v20 = vpop.f32.mrf.mxu0  ;;  %v1893_v32 = vadd.f32 %v12109_v4, %v1878_v45  ;;  %v1669_v45 = vadd.f32 %v10024_v14, %v12093_v37  ;;  %v8794_v14 = vld [vmem:[%s14034_s3 + $0x88] sm:$0xff] }
 0x442   : > { %v1864_v22 = vadd.f32 %v1852_v21, %v11633_v29  ;;  %v1855_v1 = vadd.f32 %v12097_v58, %v1840_v60  ;;  %v1839_v36 = vadd.f32 %v1796_v20, %v1634_v18  ;;  %v1892_v11 = vadd.f32 %v12109_v4, %v1877_v25 }
 0x443   : > { %v10040_v34 = vpop.f32.mrf.mxu0  ;;  %v1880_v13 = vmul.f32 %v12101_v30, %v1865_v55 }
 0x444   : > { %v1879_v24 = vmul.f32 %v12101_v30, %v1864_v22  ;;  %v1867_v5 = vadd.f32 %v1855_v1, %v11646_v38  ;;  %v1854_v26 = vadd.f32 %v12097_v58, %v1839_v36  ;;  %v1842_v40 = vadd.f32 %v10040_v34, %v1649_v12  ;;  %10070 = vmatprep.mubr.msk.f32.mxu0 %vm470_vm2, %v1892_v11 }
 0x445   : > { %v1806_v29 = vpop.f32.mrf.mxu0  ;;  %10071 = vmatmul.mubr.msk.f32.vlgmr.msra.gmra.mxu0 %vm470_vm2, %v1893_v32  ;;  %v12129_v17 = vadd.f32 %v12109_v4, %v1880_v13 }
 0x446   : > { %v1866_v27 = vadd.f32 %v1854_v26, %v11642_v35  ;;  %v1857_v46 = vadd.f32 %v12097_v58, %v1842_v40  ;;  %v1841_v51 = vadd.f32 %v1806_v29, %v1644_v19  ;;  %v1882_v15 = vmul.f32 %v12101_v30, %v1867_v5 }
 0x447   : > { %v10043_v16 = vpop.f32.mrf.mxu0  ;;  %v12126_v38 = vadd.f32 %v12109_v4, %v1879_v24  ;;  %v14052_v29 = vmov 0.0  }
 0x448   : > { %v1881_v18 = vmul.f32 %v12101_v30, %v1866_v27  ;;  %v1869_v43 = vadd.f32 %v1857_v46, %v11654_v44  ;;  %v1856_v23 = vadd.f32 %v12097_v58, %v1841_v51  ;;  %v1844_v35 = vadd.f32 %v10043_v16, %v1659_v54 }
 0x449   : > { %10051 = vmatprep.mubr.msk.f32.mxu1 %vm470_vm2, %v12126_v38  ;;  %10073 = vmatprep.mubr.msk.f32.mxu0 %vm470_vm2, %v12126_v38  ;;  %v1816_v31 = vpop.f32.mrf.mxu0  ;;  %v1664_v44 = vadd.f32 %v1663_v33, %v12095_v39  ;;  %v12151_v37 = vadd.f32 %v12109_v4, %v1882_v15 }
 0x44a   : > { %v1868_v55 = vadd.f32 %v1856_v23, %v11650_v41  ;;  %v1859_v21 = vadd.f32 %v12097_v58, %v1844_v35  ;;  %v1843_v60 = vadd.f32 %v1816_v31, %v1654_v3  ;;  %10052 = vmatmul.mubr.msk.f32.vlgmr.msra.gmra.mxu1 %vm470_vm2, %v12129_v17  ;;  %v1884_v25 = vmul.f32 %v12101_v30, %v1869_v43 }
 0x44b   : > { %10074 = vmatmul.mubr.msk.f32.gmra.mxu0 %vm470_vm2, %v12129_v17  ;;  %v10046_v12 = vpop.f32.mrf.mxu0  ;;  %v12148_v20 = vadd.f32 %v12109_v4, %v1881_v18  ;;  %10086 = vmatpush3.msra.mxu1 %v8794_v14 }
 0x44c   : > { %v1883_v41 = vmul.f32 %v12101_v30, %v1868_v55  ;;  %v1871_v28 = vadd.f32 %v1859_v21, %v11662_v50  ;;  %v1858_v22 = vadd.f32 %v12097_v58, %v1843_v60  ;;  %v1846_v1 = vadd.f32 %v10046_v12, %v1669_v45  ;;  %10087 = vmatprep.subr.mxu1 %v14052_v29  ;;  %v12220_v21 = vld [vmem:[%s14035_s4 + $0x1] ss:$0 sm:$0xff] }
 0x44d   : > { %10054 = vmatprep.mubr.msk.f32.mxu1 %vm470_vm2, %v12148_v20  ;;  %10076 = vmatprep.mubr.msk.f32.mxu0 %vm470_vm2, %v12148_v20  ;;  %v1826_v39 = vpop.f32.mrf.mxu0  ;;  %v12170_v34 = vadd.f32 %v12109_v4, %v1884_v25 }
 0x44e   : > { %v1870_v36 = vadd.f32 %v1858_v22, %v11658_v47  ;;  %v1861_v11 = vadd.f32 %v12097_v58, %v1846_v1  ;;  %v1845_v19 = vadd.f32 %v1826_v39, %v1664_v44  ;;  %10055 = vmatmul.mubr.msk.f32.gmra.mxu1 %vm470_vm2, %v12151_v37  ;;  %v12167_v50 = vadd.f32 %v12109_v4, %v1883_v41 }
 0x44f   : > { %10077 = vmatmul.mubr.msk.f32.gmra.mxu0 %vm470_vm2, %v12151_v37  ;;  %v1886_v32 = vmul.f32 %v12101_v30, %v1871_v28 }
 0x450   : > { %v1885_v13 = vmul.f32 %v12101_v30, %v1870_v36  ;;  %v1873_v47 = vadd.f32 %v1861_v11, %v11670_v56  ;;  %v1860_v24 = vadd.f32 %v12097_v58, %v1845_v19  ;;  %10057 = vmatprep.mubr.msk.f32.mxu1 %vm470_vm2, %v12167_v50  ;;  %10079 = vmatprep.mubr.msk.f32.mxu0 %vm470_vm2, %v12167_v50 }
 0x452   : > { %v1872_v5 = vadd.f32 %v1860_v24, %v11666_v53  ;;  %10058 = vmatmul.mubr.msk.f32.gmra.mxu1 %vm470_vm2, %v12170_v34  ;;  %v12184_v26 = vadd.f32 %v12109_v4, %v1885_v13  ;;  %v1888_v56 = vmul.f32 %v12101_v30, %v1873_v47  ;;  %v12195_v53 = vadd.f32 %v12109_v4, %v1886_v32 }
 0x453   : > { %10080 = vmatmul.mubr.msk.f32.gmra.mxu0 %vm470_vm2, %v12170_v34 }
 0x454   : > { %v1887_v58 = vmul.f32 %v12101_v30, %v1872_v5  ;;  %10060 = vmatprep.mubr.msk.f32.mxu1 %vm470_vm2, %v12184_v26  ;;  %10082 = vmatprep.mubr.msk.f32.mxu0 %vm470_vm2, %v12184_v26  ;;  %v12207_v30 = vadd.f32 %v12109_v4, %v1888_v56 }
 0x456   : > { %10061 = vmatmul.mubr.msk.f32.gmra.mxu1 %vm470_vm2, %v12195_v53  ;;  %v12200_v40 = vadd.f32 %v12109_v4, %v1887_v58 }
 0x457   : > { %10083 = vmatmul.mubr.msk.f32.gmra.mxu0 %vm470_vm2, %v12195_v53 }
 0x458   : > { %10063 = vmatprep.mubr.msk.f32.mxu1 %vm470_vm2, %v12200_v40  ;;  %10112 = vmatprep.mubr.msk.f32.mxu0 %vm2402_vm4, %v11772_v61 }
 0x45a   : > { %10064 = vmatmul.mubr.msk.f32.gmra.mxu1 %vm470_vm2, %v12207_v30 }
 0x45b   : > { %10089 = vmatprep.mubr.msk.f32.mxu1 %vm11452_vm0, %v14052_v29 }
 0x505   : > { %v10072_v54 = vpop.f32.mrf.mxu0 }
 0x507   : > { %v2126_v27 = vpop.f32.mrf.mxu0 }
 0x50a   : > { %v10053_v46 = vpop.f32.mrf.mxu1 }
 0x50b   : > { %v10075_v51 = vpop.f32.mrf.mxu0  ;;  %v2132_v14 = vadd.f32 %v10072_v54, %v10053_v46 }
 0x50c   : > { %v2005_v3 = vpop.f32.mrf.mxu1 }
 0x50d   : > { %v2136_v4 = vpop.f32.mrf.mxu0 }
 0x50e   : > { %v10056_v15 = vpop.f32.mrf.mxu1 }
 0x50f   : > { %v10078_v16 = vpop.f32.mrf.mxu0  ;;  %v2142_v1 = vadd.f32 %v10075_v51, %v10056_v15 }
 0x510   : > { %v2015_v18 = vpop.f32.mrf.mxu1 }
 0x511   : > { %v2146_v43 = vpop.f32.mrf.mxu0  ;;  %v12241_v51 = vadd.f32 %v12220_v21, %v2142_v1 }
 0x512   : > { %v10059_v23 = vpop.f32.mrf.mxu1 }
 0x513   : > { %v10081_v35 = vpop.f32.mrf.mxu0  ;;  %v2152_v60 = vadd.f32 %v10078_v16, %v10059_v23  ;;  %v2137_v16 = vadd.f32 %v2136_v4, %v2015_v18  ;;  %v8786_v54 = vmul.f32 -1.442695, %v12241_v51 }
 0x514   : > { %v2025_v31 = vpop.f32.mrf.mxu1 }
 0x515   : > { %v2156_v33 = vpop.f32.mrf.mxu0  ;;  %v12226_v39 = vadd.f32 %v12220_v21, %v2152_v60  ;;  %v2147_v24 = vadd.f32 %v2146_v43, %v2025_v31  ;;  %v2127_v31 = vadd.f32 %v2126_v27, %v2005_v3  ;;  %v12253_v46 = vadd.f32 %v12220_v21, %v2137_v16 }
 0x516   : > { %v10062_v45 = vpop.f32.mrf.mxu1 }
 0x517   : > { %v2162_v55 = vadd.f32 %v10081_v35, %v10062_v45  ;;  %v10084_v44 = vpop.f32.mrf.mxu0  ;;  %v8788_v58 = vmul.f32 -1.442695, %v12226_v39  ;;  %v12245_v23 = vadd.f32 %v12220_v21, %v2147_v24  ;;  %v12249_v35 = vadd.f32 %v12220_v21, %v2132_v14 }
 0x518   : > { %v2035_v25 = vpop.f32.mrf.mxu1  ;;  %v12258_v18 = vadd.f32 %v12220_v21, %v2127_v31  ;;  %v8785_v45 = vmul.f32 -1.442695, %v12253_v46 }
 0x519   : > { %v12223_v12 = vadd.f32 %v12220_v21, %v2162_v55  ;;  %v2157_v41 = vadd.f32 %v2156_v33, %v2035_v25  ;;  %v2166_v36 = vpop.f32.mrf.mxu0  ;;  %v8787_v33 = vmul.f32 -1.442695, %v12245_v23  ;;  %v8784_v4 = vmul.f32 -1.442695, %v12249_v35 }
 0x51a   : > { %v10065_v28 = vpop.f32.mrf.mxu1  ;;  %v8783_v27 = vmul.f32 -1.442695, %v12258_v18 }
 0x51b   : > { %v2172_v22 = vadd.f32 %v10084_v44, %v10065_v28  ;;  %v8790_v19 = vmul.f32 -1.442695, %v12223_v12  ;;  %v12230_v32 = vadd.f32 %v12220_v21, %v2157_v41 }
 0x51c   : > { %v2045_v11 = vpop.f32.mrf.mxu1 }
 0x51d   : > { %v12233_v13 = vadd.f32 %v12220_v21, %v2172_v22  ;;  %v2167_v47 = vadd.f32 %v2166_v36, %v2045_v11  ;;  %11144 = vpow2.f32 %v8790_v19  ;;  %v8789_v15 = vmul.f32 -1.442695, %v12230_v32  ;;  %v8793_v22 = vld [vmem:[%s14034_s3 + $0x80] sm:$0xff] }
 0x51e   : > { %10088 = vmatpush3.msra.mxu1 %v8793_v22 }
 0x51f   : > { %v8792_v5 = vmul.f32 -1.442695, %v12233_v13  ;;  %v12237_v56 = vadd.f32 %v12220_v21, %v2167_v47 }
 0x521   : > { %11146 = vpow2.f32 %v8792_v5  ;;  %v8791_v43 = vmul.f32 -1.442695, %v12237_v56 }
 0x522   : > { %11148 = vpow2.f32 %v8788_v58 }
 0x523   : > { %11150 = vpow2.f32 %v8789_v15 }
 0x524   : > { %11152 = vpow2.f32 %v8791_v43 }
 0x525   : > { %11154 = vpow2.f32 %v8786_v54 }
 0x526   : > { %11156 = vpow2.f32 %v8787_v33 }
 0x527   : > { %11158 = vpow2.f32 %v8784_v4 }
 0x528   : > { %11160 = vpow2.f32 %v8785_v45 }
 0x529   : > { %11162 = vpow2.f32 %v8783_v27 }
 0x52a   : > { %v11145_v3 = vpop.eup %11144 }
 0x52b   : > { %v2240_v25 = vadd.f32 1.0, %v11145_v3 }
 0x52e   : > { %v11147_v55 = vpop.eup %11146 }
 0x52f   : > { %v2242_v60 = vadd.f32 1.0, %v11147_v55  ;;  %v11149_v44 = vpop.eup %11148 }
 0x530   : > { %v11151_v41 = vpop.eup %11150  ;;  %v2238_v36 = vadd.f32 1.0, %v11149_v44 }
 0x531   : > { %11164 = vrcp.f32 %v2242_v60  ;;  %v11153_v28 = vpop.eup %11152  ;;  %v2239_v19 = vadd.f32 1.0, %v11151_v41 }
 0x532   : > { %v2241_v1 = vadd.f32 1.0, %v11153_v28  ;;  %11166 = vrcp.f32 %v2240_v25  ;;  %v11155_v11 = vpop.eup %11154 }
 0x533   : > { %v11157_v47 = vpop.eup %11156  ;;  %v2236_v24 = vadd.f32 1.0, %v11155_v11 }
 0x534   : > { %11168 = vrcp.f32 %v2241_v1  ;;  %v11159_v5 = vpop.eup %11158  ;;  %v2237_v58 = vadd.f32 1.0, %v11157_v47 }
 0x535   : > { %11170 = vrcp.f32 %v2238_v36  ;;  %v11161_v14 = vpop.eup %11160  ;;  %v2234_v15 = vadd.f32 1.0, %v11159_v5 }
 0x536   : > { %11172 = vrcp.f32 %v2239_v19  ;;  %v11163_v16 = vpop.eup %11162  ;;  %v2235_v43 = vadd.f32 1.0, %v11161_v14 }
 0x537   : > { %11174 = vrcp.f32 %v2236_v24  ;;  %v2233_v33 = vadd.f32 1.0, %v11163_v16 }
 0x538   : > { %11176 = vrcp.f32 %v2237_v58 }
 0x539   : > { %11178 = vrcp.f32 %v2234_v15 }
 0x53a   : > { %11180 = vrcp.f32 %v2235_v43 }
 0x53b   : > { %11182 = vrcp.f32 %v2233_v33  ;;  %v8827_v33 = vld [vmem:[%s14034_s3 + $0x98] sm:$0xff] }
 0x53c   : > { %11184 = vtanh.f32 %v12233_v13 }
 0x53d   : > { %11186 = vtanh.f32 %v12223_v12 }
 0x53e   : > { %v11165_v31 = vpop.eup %11164  ;;  %11188 = vtanh.f32 %v12237_v56 }
 0x53f   : > { %2291 = vrot.lane.b32.xlu1 %v11165_v31, %s11453_s22  ;;  %v11167_v54 = vpop.eup %11166  ;;  %11190 = vtanh.f32 %v12226_v39 }
 0x540   : > { %11192 = vtanh.f32 %v12230_v32 }
 0x541   : > { %v11169_v4 = vpop.eup %11168  ;;  %11194 = vtanh.f32 %v12241_v51 }
 0x542   : > { %2289 = vrot.lane.b32.xlu0 %v11169_v4, %s11453_s22  ;;  %v11171_v45 = vpop.eup %11170  ;;  %11196 = vtanh.f32 %v12245_v23  ;;  %v8826_v4 = vld [vmem:[%s14034_s3 + $0x90] sm:$0xff] }
 0x543   : > { %2287 = vrot.lane.b32.xlu1 %v11167_v54, %s11453_s22  ;;  %v11173_v27 = vpop.eup %11172  ;;  %11198 = vtanh.f32 %v12249_v35 }
 0x544   : > { %v11175_v3 = vpop.eup %11174  ;;  %11200 = vtanh.f32 %v12253_v46 }
 0x545   : > { %v11177_v55 = vpop.eup %11176  ;;  %11202 = vtanh.f32 %v12258_v18 }
 0x546   : > { %2285 = vrot.lane.b32.xlu0 %v11173_v27, %s11453_s22  ;;  %v11179_v60 = vpop.eup %11178 }
 0x547   : > { %2283 = vrot.lane.b32.xlu1 %v11171_v45, %s11453_s22  ;;  %v11181_v44 = vpop.eup %11180 }
 0x548   : > { %v11183_v25 = vpop.eup %11182 }
 0x549   : > { %v11185_v61 = vpop.eup %11184 }
 0x54a   : > { %2281 = vrot.lane.b32.xlu0 %v11177_v55, %s11453_s22 }
 0x54b   : > { %2279 = vrot.lane.b32.xlu1 %v11175_v3, %s11453_s22 }
 0x54e   : > { %2277 = vrot.lane.b32.xlu0 %v11181_v44, %s11453_s22 }
 0x54f   : > { %2275 = vrot.lane.b32.xlu1 %v11179_v60, %s11453_s22 }
 0x552   : > { %2273 = vrot.lane.b32.xlu0 %v11183_v25, %s11453_s22 }
 0x553   : > { %3151 = vrot.lane.b32.xlu1 %v12220_v21, %s11454_s15 }
 0x556   : > { %3174 = vrot.lane.b32.xlu0 %v12220_v21, %s11455_s16 }
 0x557   : > { %3187 = vrot.lane.b32.xlu1 %v12220_v21, %s11456_s17  ;;  %v11187_v21 = vpop.eup %11186 }
 0x558   : > { %v11189_v12 = vpop.eup %11188 }
 0x559   : > { %v11191_v51 = vpop.eup %11190 }
 0x55a   : > { %v11193_v23 = vpop.eup %11192 }
 0x55b   : > { %v11195_v18 = vpop.eup %11194 }
 0x55c   : > { %v11197_v1 = vpop.eup %11196 }
 0x55d   : > { %v11199_v24 = vpop.eup %11198 }
 0x55e   : > { %v11201_v5 = vpop.eup %11200 }
 0x55f   : > { %v11203_v43 = vpop.eup %11202 }
 0x5b1   : > { %v2292_v41 = vpop.permute.xlu1 %2291 }
 0x5b2   : > { %v12290_v28 = vmul.f32 %v11185_v61, %v2292_v41 }
 0x5b4   : > { %10090 = vmatmul.mubr.msk.f32.vlgmr.msra.gmra.mxu1 %vm470_vm2, %v12290_v28  ;;  %10092 = vmatprep.subr.mxu0 %v12290_v28  ;;  %v2290_v39 = vpop.permute.xlu0 %2289 }
 0x5b5   : > { %10127 = vmatprep.subr.mxu1 %v12290_v28  ;;  %v2288_v32 = vpop.permute.xlu1 %2287  ;;  %10093 = vmatpush3.msra.mxu0 %v12290_v28  ;;  %v12299_v13 = vmul.f32 %v11189_v12, %v2290_v39 }
 0x5b6   : > { %v12301_v56 = vmul.f32 %v11187_v21, %v2288_v32  ;;  %10128 = vmatpush3.msra.mxu1 %v12290_v28  ;;  %10147 = vmatprep.mubr.msk.f32.mxu1 %vm2402_vm4, %v11790_v42 }
 0x5b7   : > { %10094 = vmatprep.subr.mxu0 %v12299_v13  ;;  %10129 = vmatprep.subr.mxu1 %v12299_v13 }
 0x5b8   : > { %v2286_v35 = vpop.permute.xlu0 %2285  ;;  %10095 = vmatpush3.msra.mxu0 %v12299_v13  ;;  %10130 = vmatpush3.msra.mxu1 %v12299_v13 }
 0x5b9   : > { %v2284_v46 = vpop.permute.xlu1 %2283  ;;  %v12311_v22 = vmul.f32 %v11193_v23, %v2286_v35  ;;  %10096 = vmatprep.subr.mxu0 %v12301_v56  ;;  %10131 = vmatprep.subr.mxu1 %v12301_v56  ;;  %v8864_v23 = vld [vmem:[%s14034_s3 + $0xd0] sm:$0xff]  ;;  %v8863_v35 = vld [vmem:[%s14034_s3 + $0xc8] sm:$0xff] }
 0x5ba   : > { %v12315_v42 = vmul.f32 %v11191_v51, %v2284_v46  ;;  %10097 = vmatpush3.msra.mxu0 %v12301_v56  ;;  %10132 = vmatpush3.msra.mxu1 %v12301_v56  ;;  %v8865_v51 = vld [vmem:[%s14034_s3 + $0xd8] sm:$0xff]  ;;  %v8862_v46 = vld [vmem:[%s14034_s3 + $0xc0] sm:$0xff] }
 0x5bb   : > { %10098 = vmatprep.subr.mxu0 %v12311_v22  ;;  %10133 = vmatprep.subr.mxu1 %v12311_v22 }
 0x5bc   : > { %v2282_v36 = vpop.permute.xlu0 %2281  ;;  %10099 = vmatpush3.msra.mxu0 %v12311_v22  ;;  %10134 = vmatpush3.msra.mxu1 %v12311_v22 }
 0x5bd   : > { %v2280_v11 = vpop.permute.xlu1 %2279  ;;  %v12323_v19 = vmul.f32 %v11197_v1, %v2282_v36  ;;  %10100 = vmatprep.subr.mxu0 %v12315_v42  ;;  %10135 = vmatprep.subr.mxu1 %v12315_v42 }
 0x5be   : > { %v2306_v47 = vmul.f32 %v11195_v18, %v2280_v11  ;;  %10101 = vmatpush3.msra.mxu0 %v12315_v42  ;;  %10136 = vmatpush3.msra.mxu1 %v12315_v42 }
 0x5bf   : > { %10102 = vmatprep.subr.mxu0 %v12323_v19  ;;  %10137 = vmatprep.subr.mxu1 %v12323_v19 }
 0x5c0   : > { %v2278_v58 = vpop.permute.xlu0 %2277  ;;  %10103 = vmatpush3.msra.mxu0 %v12323_v19  ;;  %10138 = vmatpush3.msra.mxu1 %v12323_v19 }
 0x5c1   : > { %v2276_v14 = vpop.permute.xlu1 %2275  ;;  %v2305_v15 = vmul.f32 %v11201_v5, %v2278_v58  ;;  %10104 = vmatprep.subr.mxu0 %v2306_v47  ;;  %10139 = vmatprep.subr.mxu1 %v2306_v47 }
 0x5c2   : > { %v2304_v16 = vmul.f32 %v11199_v24, %v2276_v14  ;;  %10105 = vmatpush3.msra.mxu0 %v2306_v47  ;;  %10140 = vmatpush3.msra.mxu1 %v2306_v47 }
 0x5c3   : > { %10106 = vmatprep.subr.mxu0 %v2305_v15  ;;  %10141 = vmatprep.subr.mxu1 %v2305_v15 }
 0x5c4   : > { %v2274_v31 = vpop.permute.xlu0 %2273  ;;  %10107 = vmatpush3.msra.mxu0 %v2305_v15  ;;  %10142 = vmatpush3.msra.mxu1 %v2305_v15 }
 0x5c5   : > { %v2303_v54 = vmul.f32 %v11203_v43, %v2274_v31  ;;  %10108 = vmatprep.subr.mxu0 %v2304_v16  ;;  %10143 = vmatprep.subr.mxu1 %v2304_v16 }
 0x5c6   : > { %10109 = vmatpush3.msra.mxu0 %v2304_v16  ;;  %10144 = vmatpush3.msra.mxu1 %v2304_v16 }
 0x5c7   : > { %10110 = vmatprep.subr.mxu0 %v2303_v54  ;;  %10145 = vmatprep.subr.mxu1 %v2303_v54 }
 0x5c8   : > { %10111 = vmatpush3.msra.mxu0 %v2303_v54  ;;  %10146 = vmatpush3.msra.mxu1 %v2303_v54 }
 0x5c9   : > { %10113 = vmatmul.mubr.msk.f32.vlgmr.msra.gmra.mxu0 %vm2402_vm4, %v11868_v48  ;;  %10148 = vmatmul.mubr.msk.f32.vlgmr.msra.gmra.mxu1 %vm2402_vm4, %v11873_v49  ;;  %v14053_v48 = vld [vmem:[#allocation5_spill] sm:$0xff]  ;;  %v14054_v49 = vld [vmem:[#allocation6_spill] sm:$0xff] }
 0x5ca   : > { %10115 = vmatprep.mubr.msk.f32.mxu0 %vm2402_vm4, %v11878_v52  ;;  %10150 = vmatprep.mubr.msk.f32.mxu1 %vm2402_vm4, %v11883_v57  ;;  %v14055_v52 = vld [vmem:[#allocation7_spill] sm:$0xff]  ;;  %v14056_v57 = vld [vmem:[#allocation8_spill] sm:$0xff] }
 0x5cb   : > { %10181 = vmatprep.subr.mxu1 %v8827_v33 }
 0x5cc   : > { %10182 = vmatpush3.msra.mxu1 %v8827_v33 }
 0x5cd   : > { %10116 = vmatmul.mubr.msk.f32.gmra.mxu0 %vm2402_vm4, %v11899_v62  ;;  %10151 = vmatmul.mubr.msk.f32.gmra.mxu1 %vm2402_vm4, %v11904_v63  ;;  %v8829_v62 = vld [vmem:[%s14034_s3 + $0xa8] sm:$0xff]  ;;  %v8828_v63 = vld [vmem:[%s14034_s3 + $0xa0] sm:$0xff] }
 0x5ce   : > { %10118 = vmatprep.mubr.msk.f32.mxu0 %vm2402_vm4, %v11909_v0  ;;  %10153 = vmatprep.mubr.msk.f32.mxu1 %vm2402_vm4, %v11914_v2  ;;  %v8851_v0 = vld [vmem:[%s14034_s3 + $0xb8] sm:$0xff] }
 0x5cf   : > { %10183 = vmatprep.subr.mxu1 %v8826_v4  ;;  %10162 = vmatprep.subr.mxu0 %v8829_v62 }
 0x5d0   : > { %10184 = vmatpush3.msra.mxu1 %v8826_v4  ;;  %10163 = vmatpush3.msra.mxu0 %v8829_v62 }
 0x5d1   : > { %10119 = vmatmul.mubr.msk.f32.gmra.mxu0 %vm2402_vm4, %v11930_v6  ;;  %10154 = vmatmul.mubr.msk.f32.gmra.mxu1 %vm2402_vm4, %v11935_v7 }
 0x5d2   : > { %10121 = vmatprep.mubr.msk.f32.mxu0 %vm2402_vm4, %v11940_v59  ;;  %10156 = vmatprep.mubr.msk.f32.mxu1 %vm2402_vm4, %v11945_v8 }
 0x5d3   : > { %10219 = vmatprep.subr.mxu1 %v14052_v29  ;;  %10164 = vmatprep.subr.mxu0 %v8828_v63 }
 0x5d4   : > { %10165 = vmatpush3.msra.mxu0 %v8828_v63 }
 0x5d5   : > { %10122 = vmatmul.mubr.msk.f32.gmra.mxu0 %vm2402_vm4, %v11958_v9  ;;  %10157 = vmatmul.mubr.msk.f32.gmra.mxu1 %vm2402_vm4, %v11963_v10  ;;  %v8850_v9 = vld [vmem:[%s14034_s3 + $0xb0] sm:$0xff] }
 0x5d6   : > { %10124 = vmatprep.mubr.msk.f32.mxu0 %vm2402_vm4, %v14053_v48  ;;  %10159 = vmatprep.mubr.msk.f32.mxu1 %vm2402_vm4, %v14054_v49 }
 0x5d7   : > { %10200 = vmatprep.subr.mxu0 %v8851_v0 }
 0x5d9   : > { %10125 = vmatmul.mubr.msk.f32.gmra.mxu0 %vm2402_vm4, %v14055_v52  ;;  %10160 = vmatmul.mubr.msk.f32.gmra.mxu1 %vm2402_vm4, %v14056_v57 }
 0x5da   : > { %10185 = vmatprep.mubr.msk.f32.mxu1 %vm470_vm2, %v2303_v54  ;;  %v12451_v54 = vpop.permute.xlu1 %3151 }
 0x5dd   : > { %10186 = vmatmul.mubr.msk.f32.vlgmr.msra.gmra.mxu1 %vm470_vm2, %v2304_v16 }
 0x5de   : > { %10188 = vmatprep.mubr.msk.f32.mxu1 %vm470_vm2, %v2305_v15  ;;  %10220 = vmatpush3.msra.mxu1 %v8865_v51 }
 0x5df   : > { %10221 = vmatprep.subr.mxu1 %v14052_v29 }
 0x5e0   : > { %10222 = vmatpush3.msra.mxu1 %v8864_v23 }
 0x5e1   : > { %10189 = vmatmul.mubr.msk.f32.gmra.mxu1 %vm470_vm2, %v2306_v47  ;;  %10281 = vmatprep.subr.mxu1 %v14052_v29 }
 0x5e2   : > { %10191 = vmatprep.mubr.msk.f32.mxu1 %vm470_vm2, %v12323_v19 }
 0x5e5   : > { %10192 = vmatmul.mubr.msk.f32.gmra.mxu1 %vm470_vm2, %v12315_v42 }
 0x5e6   : > { %10194 = vmatprep.mubr.msk.f32.mxu1 %vm470_vm2, %v12311_v22 }
 0x5e9   : > { %10195 = vmatmul.mubr.msk.f32.gmra.mxu1 %vm470_vm2, %v12301_v56 }
 0x5ea   : > { %10197 = vmatprep.mubr.msk.f32.mxu1 %vm470_vm2, %v12299_v13 }
 0x5ed   : > { %10198 = vmatmul.mubr.msk.f32.gmra.mxu1 %vm470_vm2, %v12290_v28 }
 0x5ee   : > { %10223 = vmatprep.mubr.msk.f32.mxu1 %vm11452_vm0, %v14052_v29 }
 0x674   : > { %v12403_v2 = vpop.f32.mrf.mxu1 }
 0x676   : > { %v10091_v6 = vpop.f32.mrf.mxu1 }
 0x689   : > { %v10114_v7 = vpop.f32.mrf.mxu0  ;;  %v10149_v59 = vpop.f32.mrf.mxu1 }
 0x68b   : > { %v2499_v8 = vpop.f32.mrf.mxu0  ;;  %v2654_v10 = vpop.f32.mrf.mxu1 }
 0x68c   : > { %10166 = vmatprep.mubr.msk.f32.mxu0 %vm470_vm2, %v2499_v8 }
 0x68d   : > { %v10117_v45 = vpop.f32.mrf.mxu0  ;;  %10167 = vmatmul.mubr.msk.f32.vlgmr.msra.gmra.mxu0 %vm470_vm2, %v10114_v7  ;;  %v10152_v3 = vpop.f32.mrf.mxu1 }
 0x68e   : > { %10201 = vmatpush3.msra.mxu0 %v8851_v0  ;;  %v12454_v0 = vpop.permute.xlu0 %3174 }
 0x68f   : > { %v2509_v27 = vpop.f32.mrf.mxu0  ;;  %10202 = vmatprep.subr.mxu0 %v8850_v9  ;;  %v2664_v44 = vpop.f32.mrf.mxu1 }
 0x690   : > { %10169 = vmatprep.mubr.msk.f32.mxu0 %vm470_vm2, %v2509_v27  ;;  %10203 = vmatpush3.msra.mxu0 %v8850_v9 }
 0x691   : > { %v10120_v55 = vpop.f32.mrf.mxu0  ;;  %10170 = vmatmul.mubr.msk.f32.gmra.mxu0 %vm470_vm2, %v10117_v45  ;;  %10250 = vmatprep.subr.mxu0 %v14052_v29  ;;  %v10155_v41 = vpop.f32.mrf.mxu1 }
 0x692   : > { %v12458_v45 = vpop.permute.xlu1 %3187 }
 0x693   : > { %v2519_v60 = vpop.f32.mrf.mxu0  ;;  %v2674_v12 = vpop.f32.mrf.mxu1 }
 0x694   : > { %10172 = vmatprep.mubr.msk.f32.mxu0 %vm470_vm2, %v2519_v60 }
 0x695   : > { %v10123_v25 = vpop.f32.mrf.mxu0  ;;  %10173 = vmatmul.mubr.msk.f32.gmra.mxu0 %vm470_vm2, %v10120_v55  ;;  %v10158_v39 = vpop.f32.mrf.mxu1 }
 0x697   : > { %v2529_v61 = vpop.f32.mrf.mxu0  ;;  %v2684_v32 = vpop.f32.mrf.mxu1 }
 0x698   : > { %10175 = vmatprep.mubr.msk.f32.mxu0 %vm470_vm2, %v2529_v61 }
 0x699   : > { %v10126_v28 = vpop.f32.mrf.mxu0  ;;  %10176 = vmatmul.mubr.msk.f32.gmra.mxu0 %vm470_vm2, %v10123_v25  ;;  %v10161_v13 = vpop.f32.mrf.mxu1 }
 0x69b   : > { %v2539_v21 = vpop.f32.mrf.mxu0  ;;  %v2694_v56 = vpop.f32.mrf.mxu1 }
 0x69c   : > { %10178 = vmatprep.mubr.msk.f32.mxu0 %vm470_vm2, %v2539_v21 }
 0x69d   : > { %10179 = vmatmul.mubr.msk.f32.gmra.mxu0 %vm470_vm2, %v10126_v28  ;;  %v10187_v1 = vpop.f32.mrf.mxu1 }
 0x69e   : > { %10204 = vmatprep.mubr.msk.f32.mxu0 %vm470_vm2, %v2654_v10 }
 0x69f   : > { %v2945_v19 = vpop.f32.mrf.mxu1 }
 0x6a1   : > { %10205 = vmatmul.mubr.msk.f32.vlgmr.msra.gmra.mxu0 %vm470_vm2, %v10149_v59  ;;  %v10190_v5 = vpop.f32.mrf.mxu1 }
 0x6a2   : > { %10207 = vmatprep.mubr.msk.f32.mxu0 %vm470_vm2, %v2664_v44  ;;  %10251 = vmatpush3.msra.mxu0 %v8863_v35 }
 0x6a3   : > { %10252 = vmatprep.subr.mxu0 %v14052_v29  ;;  %v2955_v15 = vpop.f32.mrf.mxu1 }
 0x6a4   : > { %10253 = vmatpush3.msra.mxu0 %v8862_v46 }
 0x6a5   : > { %10208 = vmatmul.mubr.msk.f32.gmra.mxu0 %vm470_vm2, %v10152_v3  ;;  %10288 = vmatprep.subr.mxu0 %v14052_v29  ;;  %v10193_v33 = vpop.f32.mrf.mxu1 }
 0x6a6   : > { %10210 = vmatprep.mubr.msk.f32.mxu0 %vm470_vm2, %v2674_v12 }
 0x6a7   : > { %v2965_v6 = vpop.f32.mrf.mxu1 }
 0x6a9   : > { %10211 = vmatmul.mubr.msk.f32.gmra.mxu0 %vm470_vm2, %v10155_v41  ;;  %v10196_v25 = vpop.f32.mrf.mxu1 }
 0x6aa   : > { %10213 = vmatprep.mubr.msk.f32.mxu0 %vm470_vm2, %v2684_v32 }
 0x6ab   : > { %v2975_v23 = vpop.f32.mrf.mxu1 }
 0x6ad   : > { %10214 = vmatmul.mubr.msk.f32.gmra.mxu0 %vm470_vm2, %v10158_v39 }
 0x6ae   : > { %10216 = vmatprep.mubr.msk.f32.mxu0 %vm470_vm2, %v2694_v56 }
 0x6b1   : > { %10217 = vmatmul.mubr.msk.f32.gmra.mxu0 %vm470_vm2, %v10161_v13 }
 0x6b2   : > { %10254 = vmatprep.mubr.msk.f32.mxu0 %vm11452_vm0, %v14052_v29 }
 0x74d   : > { %v10168_v22 = vpop.f32.mrf.mxu0 }
 0x74e   : > { %v2951_v43 = vadd.f32 %v10187_v1, %v10168_v22 }
 0x74f   : > { %v2803_v42 = vpop.f32.mrf.mxu0 }
 0x750   : > { %v2946_v4 = vadd.f32 %v2945_v19, %v2803_v42 }
 0x751   : > { %v10171_v18 = vpop.f32.mrf.mxu0 }
 0x752   : > { %v2961_v52 = vadd.f32 %v10190_v5, %v10171_v18 }
 0x753   : > { %v2813_v36 = vpop.f32.mrf.mxu0 }
 0x754   : > { %v2956_v7 = vadd.f32 %v2955_v15, %v2813_v36 }
 0x755   : > { %v10174_v11 = vpop.f32.mrf.mxu0 }
 0x756   : > { %v2971_v61 = vadd.f32 %v10193_v33, %v10174_v11  ;;  %v10199_v11 = vpop.f32.mrf.mxu1 }
 0x757   : > { %v2823_v47 = vpop.f32.mrf.mxu0 }
 0x758   : > { %v2966_v41 = vadd.f32 %v2965_v6, %v2823_v47 }
 0x759   : > { %v10177_v24 = vpop.f32.mrf.mxu0 }
 0x75a   : > { %v2981_v19 = vadd.f32 %v10196_v25, %v10177_v24 }
 0x75b   : > { %v2833_v58 = vpop.f32.mrf.mxu0 }
 0x75c   : > { %v2976_v22 = vadd.f32 %v2975_v23, %v2833_v58 }
 0x75d   : > { %v12447_v14 = vpop.f32.mrf.mxu0 }
 0x75f   : > { %v12449_v16 = vpop.f32.mrf.mxu0 }
 0x761   : > { %v10206_v31 = vpop.f32.mrf.mxu0 }
 0x762   : > { %v3142_v48 = vadd.f32 %v10206_v31, %v2951_v43  ;;  %v2985_v43 = vpop.f32.mrf.mxu1 }
 0x763   : > { %v3092_v49 = vpop.f32.mrf.mxu0  ;;  %v2986_v33 = vadd.f32 %v2985_v43, %v12449_v16 }
 0x764   : > { %v3141_v57 = vadd.f32 %v3092_v49, %v2946_v4  ;;  %v3155_v62 = vadd.f32 %v12451_v54, %v3142_v48 }
 0x765   : > { %v10209_v63 = vpop.f32.mrf.mxu0 }
 0x766   : > { %v3154_v59 = vadd.f32 %v12451_v54, %v3141_v57  ;;  %v3144_v8 = vadd.f32 %v10209_v63, %v2961_v52  ;;  %v3165_v9 = vadd.f32 %v3155_v62, %v12129_v17  ;;  %v2991_v52 = vadd.f32 %v10199_v11, %v12447_v14 }
 0x767   : > { %v3102_v10 = vpop.f32.mrf.mxu0 }
 0x768   : > { %v3164_v27 = vadd.f32 %v3154_v59, %v12126_v38  ;;  %v3143_v3 = vadd.f32 %v3102_v10, %v2956_v7  ;;  %v3178_v55 = vmul.f32 %v12454_v0, %v3165_v9  ;;  %v3157_v60 = vadd.f32 %v12451_v54, %v3144_v8 }
 0x769   : > { %v10212_v44 = vpop.f32.mrf.mxu0 }
 0x76a   : > { %v3156_v28 = vadd.f32 %v12451_v54, %v3143_v3  ;;  %v12465_v21 = vadd.f32 %v12458_v45, %v3178_v55  ;;  %v3177_v12 = vmul.f32 %v12454_v0, %v3164_v27  ;;  %v3146_v38 = vadd.f32 %v10212_v44, %v2971_v61 }
 0x76b   : > { %v3112_v17 = vpop.f32.mrf.mxu0  ;;  %v3167_v13 = vadd.f32 %v3157_v60, %v12151_v37 }
 0x76c   : > { %v3166_v39 = vadd.f32 %v3156_v28, %v12148_v20  ;;  %v3145_v32 = vadd.f32 %v3112_v17, %v2966_v41  ;;  %10224 = vmatmul.mubr.msk.f32.vlgmr.msra.gmra.mxu1 %vm470_vm2, %v12465_v21  ;;  %v3190_v51 = vadd.f32 %v12458_v45, %v3177_v12  ;;  %v3159_v42 = vadd.f32 %v12451_v54, %v3146_v38 }
 0x76d   : > { %v10215_v56 = vpop.f32.mrf.mxu0  ;;  %10226 = vmatprep.mubr.msk.f32.mxu1 %vm11452_vm0, %v14052_v29  ;;  %v3180_v36 = vmul.f32 %v12454_v0, %v3167_v13 }
 0x76e   : > { %v3179_v35 = vmul.f32 %v12454_v0, %v3166_v39  ;;  %v3158_v46 = vadd.f32 %v12451_v54, %v3145_v32  ;;  %10255 = vmatmul.mubr.msk.f32.vlgmr.msra.gmra.mxu0 %vm470_vm2, %v3190_v51  ;;  %v3148_v5 = vadd.f32 %v10215_v56, %v2981_v19 }
 0x76f   : > { %v3122_v20 = vpop.f32.mrf.mxu0  ;;  %10257 = vmatprep.mubr.msk.f32.mxu0 %vm11452_vm0, %v14052_v29  ;;  %v12498_v24 = vadd.f32 %v12458_v45, %v3180_v36  ;;  %v12591_v36 = vld [vmem:[%s14035_s4 + $0x2] ss:$0 sm:$0xff] }
 0x770   : > { %v3168_v37 = vadd.f32 %v3158_v46, %v12167_v50  ;;  %v3147_v18 = vadd.f32 %v3122_v20, %v2976_v22  ;;  %v12483_v1 = vadd.f32 %v12458_v45, %v3179_v35  ;;  %v3169_v50 = vadd.f32 %v3159_v42, %v12170_v34 }
 0x771   : > { %v10218_v47 = vpop.f32.mrf.mxu0  ;;  %v3161_v34 = vadd.f32 %v12451_v54, %v3148_v5 }
 0x772   : > { %10227 = vmatmul.mubr.msk.f32.gmra.mxu1 %vm470_vm2, %v12483_v1  ;;  %10258 = vmatmul.mubr.msk.f32.gmra.mxu0 %vm470_vm2, %v12465_v21  ;;  %v3181_v58 = vmul.f32 %v12454_v0, %v3168_v37  ;;  %v3160_v15 = vadd.f32 %v12451_v54, %v3147_v18  ;;  %v3182_v4 = vmul.f32 %v12454_v0, %v3169_v50 }
 0x773   : > { %10229 = vmatprep.mubr.msk.f32.mxu1 %vm11452_vm0, %v14052_v29  ;;  %10260 = vmatprep.mubr.msk.f32.mxu0 %vm11452_vm0, %v14052_v29  ;;  %v3132_v31 = vpop.f32.mrf.mxu0  ;;  %v3171_v57 = vadd.f32 %v3161_v34, %v12195_v53  ;;  %v3150_v62 = vadd.f32 %v10218_v47, %v2991_v52 }
 0x774   : > { %v3170_v48 = vadd.f32 %v3160_v15, %v12184_v26  ;;  %v3149_v49 = vadd.f32 %v3132_v31, %v2986_v33  ;;  %v12513_v16 = vadd.f32 %v12458_v45, %v3181_v58  ;;  %v12528_v14 = vadd.f32 %v12458_v45, %v3182_v4 }
 0x775   : > { %v3184_v53 = vmul.f32 %v12454_v0, %v3171_v57  ;;  %v3163_v6 = vadd.f32 %v12451_v54, %v3150_v62 }
 0x776   : > { %10230 = vmatmul.mubr.msk.f32.gmra.mxu1 %vm470_vm2, %v12498_v24  ;;  %10261 = vmatmul.mubr.msk.f32.gmra.mxu0 %vm470_vm2, %v12483_v1  ;;  %v3183_v26 = vmul.f32 %v12454_v0, %v3170_v48  ;;  %v3162_v63 = vadd.f32 %v12451_v54, %v3149_v49 }
 0x777   : > { %10232 = vmatprep.mubr.msk.f32.mxu1 %vm11452_vm0, %v14052_v29  ;;  %10263 = vmatprep.mubr.msk.f32.mxu0 %vm11452_vm0, %v14052_v29  ;;  %v3173_v8 = vadd.f32 %v3163_v6, %v12207_v30 }
 0x778   : > { %v3172_v7 = vadd.f32 %v3162_v63, %v12200_v40  ;;  %v12542_v59 = vadd.f32 %v12458_v45, %v3183_v26  ;;  %v12555_v40 = vadd.f32 %v12458_v45, %v3184_v53 }
 0x779   : > { %v3186_v9 = vmul.f32 %v12454_v0, %v3173_v8 }
 0x77a   : > { %10233 = vmatmul.mubr.msk.f32.gmra.mxu1 %vm470_vm2, %v12513_v16  ;;  %10264 = vmatmul.mubr.msk.f32.gmra.mxu0 %vm470_vm2, %v12498_v24  ;;  %v3185_v54 = vmul.f32 %v12454_v0, %v3172_v7 }
 0x77b   : > { %10235 = vmatprep.mubr.msk.f32.mxu1 %vm11452_vm0, %v14052_v29  ;;  %10266 = vmatprep.mubr.msk.f32.mxu0 %vm11452_vm0, %v14052_v29  ;;  %v12578_v10 = vadd.f32 %v12458_v45, %v3186_v9 }
 0x77c   : > { %v12567_v30 = vadd.f32 %v12458_v45, %v3185_v54 }
 0x77e   : > { %10236 = vmatmul.mubr.msk.f32.gmra.mxu1 %vm470_vm2, %v12528_v14  ;;  %10267 = vmatmul.mubr.msk.f32.gmra.mxu0 %vm470_vm2, %v12513_v16 }
 0x77f   : > { %10238 = vmatprep.mubr.msk.f32.mxu1 %vm11452_vm0, %v14052_v29  ;;  %10269 = vmatprep.mubr.msk.f32.mxu0 %vm11452_vm0, %v14052_v29 }
 0x782   : > { %10239 = vmatmul.mubr.msk.f32.gmra.mxu1 %vm470_vm2, %v12542_v59  ;;  %10270 = vmatmul.mubr.msk.f32.gmra.mxu0 %vm470_vm2, %v12528_v14 }
 0x783   : > { %10241 = vmatprep.mubr.msk.f32.mxu1 %vm11452_vm0, %v14052_v29  ;;  %10272 = vmatprep.mubr.msk.f32.mxu0 %vm11452_vm0, %v14052_v29 }
 0x786   : > { %10242 = vmatmul.mubr.msk.f32.gmra.mxu1 %vm470_vm2, %v12555_v40  ;;  %10273 = vmatmul.mubr.msk.f32.gmra.mxu0 %vm470_vm2, %v12542_v59 }
 0x787   : > { %10244 = vmatprep.mubr.msk.f32.mxu1 %vm11452_vm0, %v14052_v29  ;;  %10275 = vmatprep.mubr.msk.f32.mxu0 %vm11452_vm0, %v14052_v29 }
 0x78a   : > { %10245 = vmatmul.mubr.msk.f32.gmra.mxu1 %vm470_vm2, %v12567_v30  ;;  %10276 = vmatmul.mubr.msk.f32.gmra.mxu0 %vm470_vm2, %v12555_v40 }
 0x78b   : > { %10247 = vmatprep.mubr.msk.f32.mxu1 %vm11452_vm0, %v14052_v29  ;;  %10278 = vmatprep.mubr.msk.f32.mxu0 %vm11452_vm0, %v14052_v29 }
 0x78e   : > { %10248 = vmatmul.mubr.msk.f32.gmra.mxu1 %vm470_vm2, %v12578_v10  ;;  %10279 = vmatmul.mubr.msk.f32.gmra.mxu0 %vm470_vm2, %v12567_v30 }
 0x78f   : > { %10285 = vmatprep.mubr.msk.f32.mxu1 %vm11452_vm0, %v14052_v29  ;;  %10306 = vmatprep.mubr.msk.f32.mxu0 %vm11452_vm0, %v14052_v29 }
 0x82c   : > { %v3298_v0 = vpop.f32.mrf.mxu1 }
 0x82e   : > { %v10225_v27 = vpop.f32.mrf.mxu1  ;;  %v3411_v3 = vpop.f32.mrf.mxu0 }
 0x830   : > { %v10256_v55 = vpop.f32.mrf.mxu0 }
 0x832   : > { %v3303_v60 = vpop.f32.mrf.mxu1  ;;  %v3416_v44 = vpop.f32.mrf.mxu0 }
 0x833   : > { %v3417_v52 = vadd.f32 %v3416_v44, %v3303_v60 }
 0x834   : > { %v10228_v45 = vpop.f32.mrf.mxu1  ;;  %v10259_v25 = vpop.f32.mrf.mxu0 }
 0x835   : > { %v12615_v55 = vadd.f32 %v12591_v36, %v3417_v52  ;;  %v3412_v45 = vadd.f32 %v3411_v3, %v3298_v0 }
 0x836   : > { %v3308_v61 = vpop.f32.mrf.mxu1  ;;  %v3421_v41 = vpop.f32.mrf.mxu0 }
 0x837   : > { %v3422_v54 = vadd.f32 %v3421_v41, %v3308_v61  ;;  %v8887_v41 = vmul.f32 -1.442695, %v12615_v55 }
 0x838   : > { %v10231_v28 = vpop.f32.mrf.mxu1  ;;  %v10262_v17 = vpop.f32.mrf.mxu0 }
 0x839   : > { %v12620_v25 = vadd.f32 %v12591_v36, %v3422_v54  ;;  %v12625_v28 = vadd.f32 %v12591_v36, %v3412_v45 }
 0x83a   : > { %v3313_v12 = vpop.f32.mrf.mxu1  ;;  %v3426_v39 = vpop.f32.mrf.mxu0 }
 0x83b   : > { %v3427_v50 = vadd.f32 %v3426_v39, %v3313_v12  ;;  %v8888_v17 = vmul.f32 -1.442695, %v12620_v25  ;;  %v8886_v12 = vmul.f32 -1.442695, %v12625_v28 }
 0x83c   : > { %v10234_v38 = vpop.f32.mrf.mxu1  ;;  %v10265_v32 = vpop.f32.mrf.mxu0 }
 0x83d   : > { %v12604_v57 = vadd.f32 %v12591_v36, %v3427_v50 }
 0x83e   : > { %v3318_v13 = vpop.f32.mrf.mxu1  ;;  %v3431_v56 = vpop.f32.mrf.mxu0 }
 0x83f   : > { %v3432_v4 = vadd.f32 %v3431_v56, %v3318_v13  ;;  %v8889_v60 = vmul.f32 -1.442695, %v12604_v57 }
 0x840   : > { %v10237_v51 = vpop.f32.mrf.mxu1  ;;  %v10268_v23 = vpop.f32.mrf.mxu0 }
 0x841   : > { %v12609_v9 = vadd.f32 %v12591_v36, %v3432_v4  ;;  %v8896_v23 = vld [vmem:[%s14034_s3 + $0xe8] sm:$0xff] }
 0x842   : > { %v3323_v35 = vpop.f32.mrf.mxu1  ;;  %v3436_v46 = vpop.f32.mrf.mxu0  ;;  %10282 = vmatpush3.msra.mxu1 %v8896_v23  ;;  %v8925_v23 = vld [vmem:[%s14034_s3 + $0xf0] sm:$0xff] }
 0x843   : > { %v3437_v42 = vadd.f32 %v3436_v46, %v3323_v35  ;;  %v8890_v61 = vmul.f32 -1.442695, %v12609_v9  ;;  %10283 = vmatprep.subr.mxu1 %v14052_v29 }
 0x844   : > { %v10240_v22 = vpop.f32.mrf.mxu1  ;;  %v10271_v20 = vpop.f32.mrf.mxu0 }
 0x845   : > { %v12594_v5 = vadd.f32 %v12591_v36, %v3437_v42  ;;  %v8895_v20 = vld [vmem:[%s14034_s3 + $0xe0] sm:$0xff] }
 0x846   : > { %v3328_v37 = vpop.f32.mrf.mxu1  ;;  %v3441_v18 = vpop.f32.mrf.mxu0  ;;  %10284 = vmatpush3.msra.mxu1 %v8895_v20  ;;  %v12788_v20 = vld [vmem:[%s14032_s1 + $0x78] sm:$0xff] }
 0x847   : > { %v3442_v11 = vadd.f32 %v3441_v18, %v3328_v37  ;;  %v8891_v48 = vmul.f32 -1.442695, %v12594_v5  ;;  %10333 = vmatprep.subr.mxu1 %v14052_v29 }
 0x848   : > { %v10243_v19 = vpop.f32.mrf.mxu1  ;;  %v10274_v47 = vpop.f32.mrf.mxu0 }
 0x849   : > { %v12597_v31 = vadd.f32 %v12591_v36, %v3442_v11  ;;  %11204 = vpow2.f32 %v8891_v48 }
 0x84a   : > { %v3333_v58 = vpop.f32.mrf.mxu1  ;;  %v3446_v15 = vpop.f32.mrf.mxu0 }
 0x84b   : > { %v3447_v43 = vadd.f32 %v3446_v15, %v3333_v58  ;;  %v8892_v6 = vmul.f32 -1.442695, %v12597_v31 }
 0x84c   : > { %v10246_v33 = vpop.f32.mrf.mxu1  ;;  %v10277_v34 = vpop.f32.mrf.mxu0 }
 0x84d   : > { %v12601_v49 = vadd.f32 %v12591_v36, %v3447_v43 }
 0x84e   : > { %v3338_v26 = vpop.f32.mrf.mxu1  ;;  %v3451_v62 = vpop.f32.mrf.mxu0 }
 0x84f   : > { %v8893_v63 = vmul.f32 -1.442695, %v12601_v49  ;;  %v3452_v53 = vadd.f32 %v3451_v62, %v3338_v26 }
 0x850   : > { %v10249_v7 = vpop.f32.mrf.mxu1  ;;  %v10280_v8 = vpop.f32.mrf.mxu0 }
 0x851   : > { %v12612_v27 = vadd.f32 %v12591_v36, %v3452_v53  ;;  %11206 = vpow2.f32 %v8893_v63 }
 0x852   : > { %11208 = vpow2.f32 %v8892_v6 }
 0x853   : > { %v8894_v44 = vmul.f32 -1.442695, %v12612_v27 }
 0x855   : > { %11210 = vpow2.f32 %v8894_v44 }
 0x856   : > { %11212 = vpow2.f32 %v8889_v60  ;;  %v11205_v0 = vpop.eup %11204 }
 0x857   : > { %11214 = vpow2.f32 %v8890_v61  ;;  %v3513_v13 = vadd.f32 1.0, %v11205_v0 }
 0x858   : > { %11216 = vpow2.f32 %v8887_v41 }
 0x859   : > { %11218 = vpow2.f32 %v8888_v17 }
 0x85a   : > { %11220 = vpow2.f32 %v8886_v12 }
 0x85e   : > { %v11207_v3 = vpop.eup %11206 }
 0x85f   : > { %v3515_v39 = vadd.f32 1.0, %v11207_v3  ;;  %v11209_v38 = vpop.eup %11208 }
 0x860   : > { %v3514_v35 = vadd.f32 1.0, %v11209_v38  ;;  %v12715_v38 = vld [vmem:[%s14032_s1] sm:$0xff] }
 0x861   : > { %11222 = vrcp.f32 %v3515_v39 }
 0x862   : > { %v11211_v32 = vpop.eup %11210 }
 0x863   : > { %v11213_v56 = vpop.eup %11212  ;;  %v3516_v51 = vadd.f32 1.0, %v11211_v32  ;;  %v12720_v32 = vld [vmem:[%s14032_s1 + $0x60] sm:$0xff] }
 0x864   : > { %v11215_v46 = vpop.eup %11214  ;;  %v3511_v22 = vadd.f32 1.0, %v11213_v56  ;;  %v12741_v56 = vld [vmem:[%s14032_s1 + $0x8] sm:$0xff] }
 0x865   : > { %11224 = vrcp.f32 %v3516_v51  ;;  %v11217_v42 = vpop.eup %11216  ;;  %v3512_v37 = vadd.f32 1.0, %v11215_v46  ;;  %v12746_v51 = vld [vmem:[%s14032_s1 + $0x68] sm:$0xff]  ;;  %v12769_v46 = vld [vmem:[%s14032_s1 + $0x70] sm:$0xff] }
 0x866   : > { %11226 = vrcp.f32 %v3513_v13  ;;  %v11219_v18 = vpop.eup %11218  ;;  %v3509_v11 = vadd.f32 1.0, %v11217_v42  ;;  %v8926_v13 = vld [vmem:[%s14034_s3 + $0xf8] sm:$0xff]  ;;  %v12802_v42 = vld [vmem:[%s14032_s1 + $0x20] sm:$0xff] }
 0x867   : > { %11228 = vrcp.f32 %v3514_v35  ;;  %v3510_v19 = vadd.f32 1.0, %v11219_v18  ;;  %v11221_v47 = vpop.eup %11220  ;;  %v12764_v35 = vld [vmem:[%s14032_s1 + $0x10] sm:$0xff]  ;;  %v12820_v18 = vld [vmem:[%s14032_s1 + $0x28] sm:$0xff] }
 0x868   : > { %11230 = vrcp.f32 %v3511_v22  ;;  %v3508_v58 = vadd.f32 1.0, %v11221_v47  ;;  %v12783_v22 = vld [vmem:[%s14032_s1 + $0x18] sm:$0xff]  ;;  %v12843_v47 = vld [vmem:[%s14032_s1 + $0x90] sm:$0xff] }
 0x869   : > { %11232 = vrcp.f32 %v3512_v37  ;;  %v12807_v37 = vld [vmem:[%s14032_s1 + $0x80] sm:$0xff] }
 0x86a   : > { %11234 = vrcp.f32 %v3509_v11  ;;  %v12825_v11 = vld [vmem:[%s14032_s1 + $0x88] sm:$0xff] }
 0x86b   : > { %11236 = vrcp.f32 %v3510_v19  ;;  %v12838_v19 = vld [vmem:[%s14032_s1 + $0x30] sm:$0xff] }
 0x86c   : > { %11238 = vrcp.f32 %v3508_v58  ;;  %v8914_v58 = vld [vmem:[%s14032_s1 + $0x98] sm:$0xff] }
 0x86d   : > { %11240 = vtanh.f32 %v12612_v27 }
 0x86e   : > { %v11223_v50 = vpop.eup %11222  ;;  %11242 = vtanh.f32 %v12601_v49 }
 0x86f   : > { %3558 = vrot.lane.b32.xlu1 %v11223_v50, %s11453_s22  ;;  %11244 = vtanh.f32 %v12597_v31  ;;  %v3666_v50 = vld [vmem:[%s14032_s1 + $0x38] sm:$0xff] }
 0x870   : > { %11246 = vtanh.f32 %v12594_v5 }
 0x871   : > { %11248 = vtanh.f32 %v12609_v9 }
 0x872   : > { %v11225_v15 = vpop.eup %11224  ;;  %11250 = vtanh.f32 %v12604_v57 }
 0x873   : > { %v11227_v43 = vpop.eup %11226  ;;  %3560 = vrot.lane.b32.xlu0 %v11225_v15, %s11453_s22  ;;  %11252 = vtanh.f32 %v12620_v25  ;;  %v3667_v15 = vld [vmem:[%s14032_s1 + $0x40] sm:$0xff] }
 0x874   : > { %3554 = vrot.lane.b32.xlu1 %v11227_v43, %s11453_s22  ;;  %v11229_v33 = vpop.eup %11228  ;;  %11254 = vtanh.f32 %v12615_v55  ;;  %v8915_v43 = vld [vmem:[%s14032_s1 + $0xa0] sm:$0xff] }
 0x875   : > { %v11231_v34 = vpop.eup %11230  ;;  %11256 = vtanh.f32 %v12625_v28 }
 0x876   : > { %v11233_v4 = vpop.eup %11232 }
 0x877   : > { %3556 = vrot.lane.b32.xlu0 %v11229_v33, %s11453_s22  ;;  %v11235_v48 = vpop.eup %11234  ;;  %v8928_v33 = vld [vmem:[%s14034_s3 + $0x108] sm:$0xff] }
 0x878   : > { %3550 = vrot.lane.b32.xlu1 %v11231_v34, %s11453_s22  ;;  %v11237_v52 = vpop.eup %11236  ;;  %v8927_v34 = vld [vmem:[%s14034_s3 + $0x100] sm:$0xff] }
 0x879   : > { %v11239_v26 = vpop.eup %11238 }
 0x87a   : > { %v11241_v63 = vpop.eup %11240 }
 0x87b   : > { %3552 = vrot.lane.b32.xlu0 %v11233_v4, %s11453_s22  ;;  %v11243_v7 = vpop.eup %11242 }
 0x87c   : > { %3546 = vrot.lane.b32.xlu1 %v11235_v48, %s11453_s22  ;;  %v11245_v5 = vpop.eup %11244 }
 0x87d   : > { %v11247_v8 = vpop.eup %11246 }
 0x87e   : > { %v11249_v27 = vpop.eup %11248 }
 0x87f   : > { %3548 = vrot.lane.b32.xlu0 %v11237_v52, %s11453_s22  ;;  %v11251_v44 = vpop.eup %11250  ;;  %v8948_v52 = vld [vmem:[%s14034_s3 + $0x118] sm:$0xff] }
 0x880   : > { %4375 = vrot.lane.b32.xlu1 %v12591_v36, %s11454_s15  ;;  %v11253_v25 = vpop.eup %11252 }
 0x881   : > { %v11255_v17 = vpop.eup %11254 }
 0x882   : > { %v11257_v0 = vpop.eup %11256 }
 0x883   : > { %3544 = vrot.lane.b32.xlu0 %v11239_v26, %s11453_s22 }
 0x884   : > { %4408 = vrot.lane.b32.xlu1 %v12591_v36, %s11456_s17 }
 0x887   : > { %4396 = vrot.lane.b32.xlu0 %v12591_v36, %s11455_s16 }
 0x8e1   : > { %v3559_v62 = vpop.permute.xlu1 %3558 }
 0x8e2   : > { %v12663_v31 = vmul.f32 %v11243_v7, %v3559_v62 }
 0x8e5   : > { %v3561_v53 = vpop.permute.xlu0 %3560 }
 0x8e6   : > { %v3555_v36 = vpop.permute.xlu1 %3554  ;;  %v12660_v6 = vmul.f32 %v11241_v63, %v3561_v53  ;;  %v8947_v63 = vld [vmem:[%s14034_s3 + $0x110] sm:$0xff] }
 0x8e7   : > { %v12676_v9 = vmul.f32 %v11247_v8, %v3555_v36 }
 0x8e8   : > { %10286 = vmatmul.mubr.msk.f32.vlgmr.msra.gmra.mxu1 %vm470_vm2, %v12660_v6  ;;  %10289 = vmatpush3.msra.mxu0 %v12660_v6 }
 0x8e9   : > { %10334 = vmatpush3.msra.mxu1 %v12660_v6  ;;  %v3557_v49 = vpop.permute.xlu0 %3556  ;;  %10290 = vmatprep.subr.mxu0 %v14052_v29 }
 0x8ea   : > { %v12670_v57 = vmul.f32 %v11245_v5, %v3557_v49  ;;  %10335 = vmatprep.subr.mxu1 %v14052_v29  ;;  %10291 = vmatpush3.msra.mxu0 %v12663_v31  ;;  %v3551_v54 = vpop.permute.xlu1 %3550 }
 0x8eb   : > { %10336 = vmatpush3.msra.mxu1 %v12663_v31  ;;  %10292 = vmatprep.subr.mxu0 %v14052_v29  ;;  %v12688_v45 = vmul.f32 %v11251_v44, %v3551_v54 }
 0x8ec   : > { %10337 = vmatprep.subr.mxu1 %v14052_v29  ;;  %10293 = vmatpush3.msra.mxu0 %v12670_v57 }
 0x8ed   : > { %10338 = vmatpush3.msra.mxu1 %v12670_v57  ;;  %v3553_v55 = vpop.permute.xlu0 %3552  ;;  %10294 = vmatprep.subr.mxu0 %v14052_v29 }
 0x8ee   : > { %v12682_v60 = vmul.f32 %v11249_v27, %v3553_v55  ;;  %10339 = vmatprep.subr.mxu1 %v14052_v29  ;;  %10295 = vmatpush3.msra.mxu0 %v12676_v9  ;;  %v3547_v61 = vpop.permute.xlu1 %3546 }
 0x8ef   : > { %10340 = vmatpush3.msra.mxu1 %v12676_v9  ;;  %10296 = vmatprep.subr.mxu0 %v14052_v29  ;;  %v12700_v12 = vmul.f32 %v11255_v17, %v3547_v61 }
 0x8f0   : > { %10341 = vmatprep.subr.mxu1 %v14052_v29  ;;  %10297 = vmatpush3.msra.mxu0 %v12682_v60 }
 0x8f1   : > { %10342 = vmatpush3.msra.mxu1 %v12682_v60  ;;  %v3549_v41 = vpop.permute.xlu0 %3548  ;;  %10298 = vmatprep.subr.mxu0 %v14052_v29 }
 0x8f2   : > { %v12694_v28 = vmul.f32 %v11253_v25, %v3549_v41  ;;  %10343 = vmatprep.subr.mxu1 %v14052_v29  ;;  %10299 = vmatpush3.msra.mxu0 %v12688_v45 }
 0x8f3   : > { %10344 = vmatpush3.msra.mxu1 %v12688_v45  ;;  %10300 = vmatprep.subr.mxu0 %v14052_v29 }
 0x8f4   : > { %10345 = vmatprep.subr.mxu1 %v14052_v29  ;;  %10301 = vmatpush3.msra.mxu0 %v12694_v28 }
 0x8f5   : > { %10346 = vmatpush3.msra.mxu1 %v12694_v28  ;;  %v3545_v3 = vpop.permute.xlu0 %3544  ;;  %10302 = vmatprep.subr.mxu0 %v14052_v29 }
 0x8f6   : > { %v12706_v39 = vmul.f32 %v11257_v0, %v3545_v3  ;;  %10347 = vmatprep.subr.mxu1 %v14052_v29  ;;  %10303 = vmatpush3.msra.mxu0 %v12700_v12 }
 0x8f7   : > { %10348 = vmatpush3.msra.mxu1 %v12700_v12  ;;  %10304 = vmatprep.subr.mxu0 %v14052_v29 }
 0x8f8   : > { %10349 = vmatprep.subr.mxu1 %v14052_v29  ;;  %10305 = vmatpush3.msra.mxu0 %v12706_v39 }
 0x8f9   : > { %10350 = vmatpush3.msra.mxu1 %v12706_v39  ;;  %10351 = vmatprep.mubr.msk.f32.mxu1 %vm11452_vm0, %v14052_v29 }
 0x8fa   : > { %10307 = vmatmul.mubr.msk.f32.vlgmr.msra.gmra.mxu0 %vm3668_vm5, %v12715_v38  ;;  %10352 = vmatmul.mubr.msk.f32.vlgmr.msra.gmra.mxu1 %vm3668_vm5, %v12720_v32 }
 0x8fb   : > { %10309 = vmatprep.mubr.msk.f32.mxu0 %vm11452_vm0, %v14052_v29  ;;  %10354 = vmatprep.mubr.msk.f32.mxu1 %vm11452_vm0, %v14052_v29 }
 0x8fc   : > { %10409 = vmatprep.subr.mxu1 %v14052_v29  ;;  %10378 = vmatprep.subr.mxu0 %v14052_v29 }
 0x8fd   : > { %10410 = vmatpush3.msra.mxu1 %v8926_v13  ;;  %10379 = vmatpush3.msra.mxu0 %v8928_v33 }
 0x8fe   : > { %10310 = vmatmul.mubr.msk.f32.gmra.mxu0 %vm3668_vm5, %v12741_v56  ;;  %10355 = vmatmul.mubr.msk.f32.gmra.mxu1 %vm3668_vm5, %v12746_v51 }
 0x8ff   : > { %10312 = vmatprep.mubr.msk.f32.mxu0 %vm11452_vm0, %v14052_v29  ;;  %10357 = vmatprep.mubr.msk.f32.mxu1 %vm11452_vm0, %v14052_v29 }
 0x900   : > { %10411 = vmatprep.subr.mxu1 %v14052_v29  ;;  %10380 = vmatprep.subr.mxu0 %v14052_v29 }
 0x901   : > { %10412 = vmatpush3.msra.mxu1 %v8925_v23  ;;  %10381 = vmatpush3.msra.mxu0 %v8927_v34 }
 0x902   : > { %10313 = vmatmul.mubr.msk.f32.gmra.mxu0 %vm3668_vm5, %v12764_v35  ;;  %10358 = vmatmul.mubr.msk.f32.gmra.mxu1 %vm3668_vm5, %v12769_v46 }
 0x903   : > { %10315 = vmatprep.mubr.msk.f32.mxu0 %vm11452_vm0, %v14052_v29  ;;  %10360 = vmatprep.mubr.msk.f32.mxu1 %vm11452_vm0, %v14052_v29 }
 0x904   : > { %10471 = vmatprep.subr.mxu1 %v14052_v29  ;;  %10440 = vmatprep.subr.mxu0 %v14052_v29 }
 0x906   : > { %10316 = vmatmul.mubr.msk.f32.gmra.mxu0 %vm3668_vm5, %v12783_v22  ;;  %10361 = vmatmul.mubr.msk.f32.gmra.mxu1 %vm3668_vm5, %v12788_v20 }
 0x907   : > { %10318 = vmatprep.mubr.msk.f32.mxu0 %vm11452_vm0, %v14052_v29  ;;  %10363 = vmatprep.mubr.msk.f32.mxu1 %vm11452_vm0, %v14052_v29 }
 0x90a   : > { %10319 = vmatmul.mubr.msk.f32.gmra.mxu0 %vm3668_vm5, %v12802_v42  ;;  %10364 = vmatmul.mubr.msk.f32.gmra.mxu1 %vm3668_vm5, %v12807_v37 }
 0x90b   : > { %10321 = vmatprep.mubr.msk.f32.mxu0 %vm11452_vm0, %v14052_v29  ;;  %10366 = vmatprep.mubr.msk.f32.mxu1 %vm11452_vm0, %v14052_v29 }
 0x90e   : > { %10322 = vmatmul.mubr.msk.f32.gmra.mxu0 %vm3668_vm5, %v12820_v18  ;;  %10367 = vmatmul.mubr.msk.f32.gmra.mxu1 %vm3668_vm5, %v12825_v11 }
 0x90f   : > { %10324 = vmatprep.mubr.msk.f32.mxu0 %vm11452_vm0, %v14052_v29  ;;  %10369 = vmatprep.mubr.msk.f32.mxu1 %vm11452_vm0, %v14052_v29 }
 0x912   : > { %10325 = vmatmul.mubr.msk.f32.gmra.mxu0 %vm3668_vm5, %v12838_v19  ;;  %10370 = vmatmul.mubr.msk.f32.gmra.mxu1 %vm3668_vm5, %v12843_v47 }
 0x913   : > { %10327 = vmatprep.mubr.msk.f32.mxu0 %vm11452_vm0, %v14052_v29  ;;  %10372 = vmatprep.mubr.msk.f32.mxu1 %vm11452_vm0, %v14052_v29 }
 0x916   : > { %10328 = vmatmul.mubr.msk.f32.gmra.mxu0 %vm3668_vm5, %v3666_v50  ;;  %10373 = vmatmul.mubr.msk.f32.gmra.mxu1 %vm3668_vm5, %v8914_v58 }
 0x917   : > { %10330 = vmatprep.mubr.msk.f32.mxu0 %vm11452_vm0, %v14052_v29  ;;  %10375 = vmatprep.mubr.msk.f32.mxu1 %vm11452_vm0, %v14052_v29 }
 0x91a   : > { %10331 = vmatmul.mubr.msk.f32.gmra.mxu0 %vm3668_vm5, %v3667_v15  ;;  %10376 = vmatmul.mubr.msk.f32.gmra.mxu1 %vm3668_vm5, %v8915_v43 }
 0x91b   : > { %10413 = vmatprep.mubr.msk.f32.mxu1 %vm11452_vm0, %v14052_v29  ;;  %10382 = vmatprep.mubr.msk.f32.mxu0 %vm11452_vm0, %v14052_v29 }
 0x91e   : > { %10414 = vmatmul.mubr.msk.f32.vlgmr.msra.gmra.mxu1 %vm470_vm2, %v12706_v39 }
 0x91f   : > { %10416 = vmatprep.mubr.msk.f32.mxu1 %vm11452_vm0, %v14052_v29 }
 0x922   : > { %10417 = vmatmul.mubr.msk.f32.gmra.mxu1 %vm470_vm2, %v12700_v12 }
 0x923   : > { %10419 = vmatprep.mubr.msk.f32.mxu1 %vm11452_vm0, %v14052_v29 }
 0x926   : > { %10420 = vmatmul.mubr.msk.f32.gmra.mxu1 %vm470_vm2, %v12694_v28 }
 0x927   : > { %10422 = vmatprep.mubr.msk.f32.mxu1 %vm11452_vm0, %v14052_v29 }
 0x92a   : > { %10423 = vmatmul.mubr.msk.f32.gmra.mxu1 %vm470_vm2, %v12688_v45 }
 0x92b   : > { %10425 = vmatprep.mubr.msk.f32.mxu1 %vm11452_vm0, %v14052_v29 }
 0x92e   : > { %10426 = vmatmul.mubr.msk.f32.gmra.mxu1 %vm470_vm2, %v12682_v60 }
 0x92f   : > { %10428 = vmatprep.mubr.msk.f32.mxu1 %vm11452_vm0, %v14052_v29 }
 0x932   : > { %10429 = vmatmul.mubr.msk.f32.gmra.mxu1 %vm470_vm2, %v12676_v9 }
 0x933   : > { %10431 = vmatprep.mubr.msk.f32.mxu1 %vm11452_vm0, %v14052_v29 }
 0x936   : > { %10432 = vmatmul.mubr.msk.f32.gmra.mxu1 %vm470_vm2, %v12670_v57 }
 0x937   : > { %10434 = vmatprep.mubr.msk.f32.mxu1 %vm11452_vm0, %v14052_v29 }
 0x93a   : > { %10435 = vmatmul.mubr.msk.f32.gmra.mxu1 %vm470_vm2, %v12663_v31 }
 0x93b   : > { %10437 = vmatprep.mubr.msk.f32.mxu1 %vm11452_vm0, %v14052_v29 }
 0x93e   : > { %10438 = vmatmul.mubr.msk.f32.gmra.mxu1 %vm470_vm2, %v12660_v6 }
 0x93f   : > { %10475 = vmatprep.mubr.msk.f32.mxu1 %vm11452_vm0, %v14052_v29 }
 0x9a8   : > { %v12921_v4 = vpop.f32.mrf.mxu1 }
 0x9aa   : > { %v10287_v48 = vpop.f32.mrf.mxu1 }
 0x9ba   : > { %v3762_v26 = vpop.f32.mrf.mxu0  ;;  %v3908_v62 = vpop.f32.mrf.mxu1 }
 0x9bb   : > { %10383 = vmatmul.mubr.msk.f32.vlgmr.msra.gmra.mxu0 %vm470_vm2, %v3762_v26 }
 0x9bc   : > { %v10308_v53 = vpop.f32.mrf.mxu0  ;;  %v10353_v36 = vpop.f32.mrf.mxu1  ;;  %10385 = vmatprep.mubr.msk.f32.mxu0 %vm11452_vm0, %v14052_v29  ;;  %10441 = vmatpush3.msra.mxu0 %v8948_v52 }
 0x9bd   : > { %10442 = vmatprep.subr.mxu0 %v14052_v29 }
 0x9be   : > { %v3767_v6 = vpop.f32.mrf.mxu0  ;;  %v3913_v7 = vpop.f32.mrf.mxu1  ;;  %10443 = vmatpush3.msra.mxu0 %v8947_v63 }
 0x9bf   : > { %10386 = vmatmul.mubr.msk.f32.gmra.mxu0 %vm470_vm2, %v3767_v6  ;;  %10496 = vmatprep.subr.mxu0 %v14052_v29 }
 0x9c0   : > { %v10311_v31 = vpop.f32.mrf.mxu0  ;;  %v10356_v5 = vpop.f32.mrf.mxu1  ;;  %10388 = vmatprep.mubr.msk.f32.mxu0 %vm11452_vm0, %v14052_v29 }
 0x9c2   : > { %v3772_v49 = vpop.f32.mrf.mxu0  ;;  %v3918_v57 = vpop.f32.mrf.mxu1 }
 0x9c3   : > { %10389 = vmatmul.mubr.msk.f32.gmra.mxu0 %vm470_vm2, %v3772_v49 }
 0x9c4   : > { %v10314_v8 = vpop.f32.mrf.mxu0  ;;  %v10359_v54 = vpop.f32.mrf.mxu1  ;;  %10391 = vmatprep.mubr.msk.f32.mxu0 %vm11452_vm0, %v14052_v29 }
 0x9c6   : > { %v3777_v9 = vpop.f32.mrf.mxu0  ;;  %v3923_v27 = vpop.f32.mrf.mxu1 }
 0x9c7   : > { %10392 = vmatmul.mubr.msk.f32.gmra.mxu0 %vm470_vm2, %v3777_v9 }
 0x9c8   : > { %v10317_v55 = vpop.f32.mrf.mxu0  ;;  %v10362_v60 = vpop.f32.mrf.mxu1  ;;  %10394 = vmatprep.mubr.msk.f32.mxu0 %vm11452_vm0, %v14052_v29 }
 0x9ca   : > { %v3782_v44 = vpop.f32.mrf.mxu0  ;;  %v3928_v45 = vpop.f32.mrf.mxu1 }
 0x9cb   : > { %10395 = vmatmul.mubr.msk.f32.gmra.mxu0 %vm470_vm2, %v3782_v44  ;;  %v8959_v44 = vld [vmem:[%s14034_s3 + $0x128] sm:$0xff] }
 0x9cc   : > { %v10320_v25 = vpop.f32.mrf.mxu0  ;;  %v10365_v61 = vpop.f32.mrf.mxu1  ;;  %10397 = vmatprep.mubr.msk.f32.mxu0 %vm11452_vm0, %v14052_v29 }
 0x9cd   : > { %v8961_v25 = vld [vmem:[%s14034_s3 + $0x138] sm:$0xff]  ;;  %v8960_v61 = vld [vmem:[%s14034_s3 + $0x130] sm:$0xff] }
 0x9ce   : > { %v3787_v41 = vpop.f32.mrf.mxu0  ;;  %v3933_v28 = vpop.f32.mrf.mxu1  ;;  %10472 = vmatpush3.msra.mxu1 %v8961_v25 }
 0x9cf   : > { %10398 = vmatmul.mubr.msk.f32.gmra.mxu0 %vm470_vm2, %v3787_v41  ;;  %10473 = vmatprep.subr.mxu1 %v14052_v29 }
 0x9d0   : > { %v10323_v17 = vpop.f32.mrf.mxu0  ;;  %v10368_v12 = vpop.f32.mrf.mxu1  ;;  %10400 = vmatprep.mubr.msk.f32.mxu0 %vm11452_vm0, %v14052_v29  ;;  %10474 = vmatpush3.msra.mxu1 %v8960_v61 }
 0x9d1   : > { %10521 = vmatprep.subr.mxu1 %v14052_v29 }
 0x9d2   : > { %v3792_v0 = vpop.f32.mrf.mxu0  ;;  %v3938_v3 = vpop.f32.mrf.mxu1 }
 0x9d3   : > { %10401 = vmatmul.mubr.msk.f32.gmra.mxu0 %vm470_vm2, %v3792_v0 }
 0x9d4   : > { %v10326_v39 = vpop.f32.mrf.mxu0  ;;  %v10371_v13 = vpop.f32.mrf.mxu1  ;;  %10403 = vmatprep.mubr.msk.f32.mxu0 %vm11452_vm0, %v14052_v29 }
 0x9d6   : > { %v3797_v23 = vpop.f32.mrf.mxu0  ;;  %v3943_v50 = vpop.f32.mrf.mxu1 }
 0x9d7   : > { %10404 = vmatmul.mubr.msk.f32.gmra.mxu0 %vm470_vm2, %v3797_v23 }
 0x9d8   : > { %v10329_v58 = vpop.f32.mrf.mxu0  ;;  %v10374_v15 = vpop.f32.mrf.mxu1  ;;  %10406 = vmatprep.mubr.msk.f32.mxu0 %vm11452_vm0, %v14052_v29 }
 0x9da   : > { %v3802_v43 = vpop.f32.mrf.mxu0  ;;  %v3948_v33 = vpop.f32.mrf.mxu1 }
 0x9db   : > { %10407 = vmatmul.mubr.msk.f32.gmra.mxu0 %vm470_vm2, %v3802_v43 }
 0x9dc   : > { %v10377_v34 = vpop.f32.mrf.mxu1  ;;  %10444 = vmatprep.mubr.msk.f32.mxu0 %vm11452_vm0, %v14052_v29  ;;  %v10332_v48 = vpop.f32.mrf.mxu0 }
 0x9de   : > { %v12958_v52 = vpop.f32.mrf.mxu1 }
 0x9df   : > { %10445 = vmatmul.mubr.msk.f32.vlgmr.msra.gmra.mxu0 %vm470_vm2, %v3908_v62 }
 0x9e0   : > { %v10415_v26 = vpop.f32.mrf.mxu1  ;;  %10447 = vmatprep.mubr.msk.f32.mxu0 %vm11452_vm0, %v14052_v29  ;;  %10497 = vmatpush3.msra.mxu0 %v8959_v44 }
 0x9e1   : > { %10498 = vmatprep.subr.mxu0 %v14052_v29 }
 0x9e2   : > { %v12963_v63 = vpop.f32.mrf.mxu1 }
 0x9e3   : > { %10448 = vmatmul.mubr.msk.f32.gmra.mxu0 %vm470_vm2, %v3913_v7 }
 0x9e4   : > { %v10418_v53 = vpop.f32.mrf.mxu1  ;;  %10450 = vmatprep.mubr.msk.f32.mxu0 %vm11452_vm0, %v14052_v29 }
 0x9e6   : > { %v12968_v36 = vpop.f32.mrf.mxu1 }
 0x9e7   : > { %10451 = vmatmul.mubr.msk.f32.gmra.mxu0 %vm470_vm2, %v3918_v57 }
 0x9e8   : > { %v10421_v6 = vpop.f32.mrf.mxu1  ;;  %10453 = vmatprep.mubr.msk.f32.mxu0 %vm11452_vm0, %v14052_v29 }
 0x9ea   : > { %v12973_v62 = vpop.f32.mrf.mxu1 }
 0x9eb   : > { %10454 = vmatmul.mubr.msk.f32.gmra.mxu0 %vm470_vm2, %v3923_v27 }
 0x9ec   : > { %v10424_v31 = vpop.f32.mrf.mxu1  ;;  %10456 = vmatprep.mubr.msk.f32.mxu0 %vm11452_vm0, %v14052_v29 }
 0x9ee   : > { %v12978_v7 = vpop.f32.mrf.mxu1 }
 0x9ef   : > { %10457 = vmatmul.mubr.msk.f32.gmra.mxu0 %vm470_vm2, %v3928_v45  ;;  %v8958_v45 = vld [vmem:[%s14034_s3 + $0x120] sm:$0xff] }
 0x9f0   : > { %v10427_v5 = vpop.f32.mrf.mxu1  ;;  %10459 = vmatprep.mubr.msk.f32.mxu0 %vm11452_vm0, %v14052_v29  ;;  %10499 = vmatpush3.msra.mxu0 %v8958_v45  ;;  %v13028_v45 = vpop.permute.xlu0 %4396 }
 0x9f1   : > { %10563 = vmatprep.subr.mxu0 %v14052_v29  ;;  %v13024_v5 = vpop.permute.xlu1 %4375 }
 0x9f2   : > { %v12983_v49 = vpop.f32.mrf.mxu1 }
 0x9f3   : > { %10460 = vmatmul.mubr.msk.f32.gmra.mxu0 %vm470_vm2, %v3933_v28 }
 0x9f4   : > { %v10430_v57 = vpop.f32.mrf.mxu1  ;;  %10462 = vmatprep.mubr.msk.f32.mxu0 %vm11452_vm0, %v14052_v29 }
 0x9f6   : > { %v12988_v8 = vpop.f32.mrf.mxu1 }
 0x9f7   : > { %10463 = vmatmul.mubr.msk.f32.gmra.mxu0 %vm470_vm2, %v3938_v3 }
 0x9f8   : > { %v10433_v54 = vpop.f32.mrf.mxu1  ;;  %10465 = vmatprep.mubr.msk.f32.mxu0 %vm11452_vm0, %v14052_v29 }
 0x9fa   : > { %v12993_v9 = vpop.f32.mrf.mxu1 }
 0x9fb   : > { %10466 = vmatmul.mubr.msk.f32.gmra.mxu0 %vm470_vm2, %v3943_v50 }
 0x9fc   : > { %v10436_v27 = vpop.f32.mrf.mxu1  ;;  %10468 = vmatprep.mubr.msk.f32.mxu0 %vm11452_vm0, %v14052_v29 }
 0x9fe   : > { %v12998_v55 = vpop.f32.mrf.mxu1 }
 0x9ff   : > { %10469 = vmatmul.mubr.msk.f32.gmra.mxu0 %vm470_vm2, %v3948_v33 }
 0xa00   : > { %v10439_v60 = vpop.f32.mrf.mxu1  ;;  %10500 = vmatprep.mubr.msk.f32.mxu0 %vm11452_vm0, %v14052_v29 }
 0xa7b   : > { %v4049_v41 = vpop.f32.mrf.mxu0 }
 0xa7c   : > { %v4184_v6 = vadd.f32 %v12958_v52, %v4049_v41 }
 0xa7d   : > { %v10384_v28 = vpop.f32.mrf.mxu0 }
 0xa7f   : > { %v4054_v17 = vpop.f32.mrf.mxu0 }
 0xa80   : > { %v4189_v27 = vadd.f32 %v12963_v63, %v4054_v17 }
 0xa81   : > { %v10387_v12 = vpop.f32.mrf.mxu0 }
 0xa82   : > { %v13031_v12 = vpop.permute.xlu1 %4408 }
 0xa83   : > { %v4059_v0 = vpop.f32.mrf.mxu0 }
 0xa84   : > { %v4194_v52 = vadd.f32 %v12968_v36, %v4059_v0 }
 0xa85   : > { %v10390_v3 = vpop.f32.mrf.mxu0 }
 0xa87   : > { %v4064_v39 = vpop.f32.mrf.mxu0 }
 0xa89   : > { %v10393_v13 = vpop.f32.mrf.mxu0 }
 0xa8b   : > { %v4069_v23 = vpop.f32.mrf.mxu0 }
 0xa8d   : > { %v10396_v50 = vpop.f32.mrf.mxu0 }
 0xa8f   : > { %v4074_v58 = vpop.f32.mrf.mxu0 }
 0xa91   : > { %v10399_v15 = vpop.f32.mrf.mxu0 }
 0xa93   : > { %v4079_v43 = vpop.f32.mrf.mxu0 }
 0xa95   : > { %v10402_v33 = vpop.f32.mrf.mxu0 }
 0xa96   : > { %v4199_v33 = vadd.f32 %v12973_v62, %v4064_v39 }
 0xa97   : > { %v13019_v34 = vpop.f32.mrf.mxu0 }
 0xa99   : > { %v10405_v48 = vpop.f32.mrf.mxu0 }
 0xa9b   : > { %v13021_v26 = vpop.f32.mrf.mxu0 }
 0xa9d   : > { %v10408_v53 = vpop.f32.mrf.mxu0 }
 0xa9f   : > { %v4322_v31 = vpop.f32.mrf.mxu0 }
 0xaa0   : > { %v4366_v57 = vadd.f32 %v4322_v31, %v4184_v6  ;;  %v4204_v31 = vadd.f32 %v12978_v7, %v4069_v23 }
 0xaa1   : > { %v10446_v54 = vpop.f32.mrf.mxu0 }
 0xaa2   : > { %v4378_v60 = vadd.f32 %v13024_v5, %v4366_v57 }
 0xaa3   : > { %v4327_v44 = vpop.f32.mrf.mxu0 }
 0xaa4   : > { %v4367_v25 = vadd.f32 %v4327_v44, %v4189_v27  ;;  %v4387_v61 = vadd.f32 %v4378_v60, %v12465_v21  ;;  %v4209_v44 = vadd.f32 %v12983_v49, %v4074_v58 }
 0xaa5   : > { %v10449_v28 = vpop.f32.mrf.mxu0 }
 0xaa6   : > { %v4379_v41 = vadd.f32 %v13024_v5, %v4367_v25  ;;  %v4399_v3 = vmul.f32 %v13028_v45, %v4387_v61  ;;  %v4214_v28 = vadd.f32 %v12988_v8, %v4079_v43 }
 0xaa7   : > { %v4332_v13 = vpop.f32.mrf.mxu0 }
 0xaa8   : > { %v4388_v63 = vadd.f32 %v4379_v41, %v12483_v1  ;;  %v4368_v17 = vadd.f32 %v4332_v13, %v4194_v52  ;;  %v4411_v50 = vadd.f32 %v13031_v12, %v4399_v3 }
 0xaa9   : > { %v10452_v15 = vpop.f32.mrf.mxu0 }
 0xaaa   : > { %v4380_v21 = vadd.f32 %v13024_v5, %v4368_v17  ;;  %10501 = vmatmul.mubr.msk.f32.vlgmr.msra.gmra.mxu0 %vm470_vm2, %v4411_v50  ;;  %v4400_v48 = vmul.f32 %v13028_v45, %v4388_v63  ;;  %v4219_v63 = vadd.f32 %v12993_v9, %v13019_v34 }
 0xaab   : > { %v4337_v36 = vpop.f32.mrf.mxu0  ;;  %10503 = vmatprep.mubr.msk.f32.mxu0 %vm11452_vm0, %v14052_v29 }
 0xaac   : > { %v4389_v0 = vadd.f32 %v4380_v21, %v12498_v24  ;;  %v4369_v53 = vadd.f32 %v4337_v36, %v4199_v33  ;;  %v4412_v1 = vadd.f32 %v13031_v12, %v4400_v48  ;;  %v4224_v21 = vadd.f32 %v12998_v55, %v13021_v26 }
 0xaad   : > { %v10455_v6 = vpop.f32.mrf.mxu0 }
 0xaae   : > { %v4401_v62 = vmul.f32 %v13028_v45, %v4389_v0  ;;  %v4381_v39 = vadd.f32 %v13024_v5, %v4369_v53  ;;  %10504 = vmatmul.mubr.msk.f32.gmra.mxu0 %vm470_vm2, %v4412_v1 }
 0xaaf   : > { %v4342_v57 = vpop.f32.mrf.mxu0  ;;  %10506 = vmatprep.mubr.msk.f32.mxu0 %vm11452_vm0, %v14052_v29 }
 0xab0   : > { %v13053_v54 = vadd.f32 %v13031_v12, %v4401_v62  ;;  %v4390_v24 = vadd.f32 %v4381_v39, %v12513_v16  ;;  %v4370_v27 = vadd.f32 %v4342_v57, %v4204_v31 }
 0xab1   : > { %v10458_v60 = vpop.f32.mrf.mxu0 }
 0xab2   : > { %v4402_v7 = vmul.f32 %v13028_v45, %v4390_v24  ;;  %v4382_v23 = vadd.f32 %v13024_v5, %v4370_v27  ;;  %10476 = vmatmul.mubr.msk.f32.vlgmr.msra.gmra.mxu1 %vm470_vm2, %v13053_v54  ;;  %10507 = vmatmul.mubr.msk.f32.gmra.mxu0 %vm470_vm2, %v13053_v54 }
 0xab3   : > { %v4347_v25 = vpop.f32.mrf.mxu0  ;;  %10478 = vmatprep.mubr.msk.f32.mxu1 %vm11452_vm0, %v14052_v29  ;;  %10509 = vmatprep.mubr.msk.f32.mxu0 %vm11452_vm0, %v14052_v29 }
 0xab4   : > { %v13068_v16 = vadd.f32 %v13031_v12, %v4402_v7  ;;  %v4391_v49 = vadd.f32 %v4382_v23, %v12528_v14  ;;  %v4371_v58 = vadd.f32 %v4347_v25, %v4209_v44 }
 0xab5   : > { %v10461_v61 = vpop.f32.mrf.mxu0 }
 0xab6   : > { %v4403_v52 = vmul.f32 %v13028_v45, %v4391_v49  ;;  %v4383_v41 = vadd.f32 %v13024_v5, %v4371_v58  ;;  %10479 = vmatmul.mubr.msk.f32.gmra.mxu1 %vm470_vm2, %v13068_v16  ;;  %10510 = vmatmul.mubr.msk.f32.gmra.mxu0 %vm470_vm2, %v13068_v16 }
 0xab7   : > { %v4352_v3 = vpop.f32.mrf.mxu0  ;;  %10481 = vmatprep.mubr.msk.f32.mxu1 %vm11452_vm0, %v14052_v29  ;;  %10512 = vmatprep.mubr.msk.f32.mxu0 %vm11452_vm0, %v14052_v29 }
 0xab8   : > { %v13083_v14 = vadd.f32 %v13031_v12, %v4403_v52  ;;  %v4392_v8 = vadd.f32 %v4383_v41, %v12542_v59  ;;  %v4372_v43 = vadd.f32 %v4352_v3, %v4214_v28 }
 0xab9   : > { %v10464_v13 = vpop.f32.mrf.mxu0 }
 0xaba   : > { %v4404_v17 = vmul.f32 %v13028_v45, %v4392_v8  ;;  %v4384_v50 = vadd.f32 %v13024_v5, %v4372_v43  ;;  %10482 = vmatmul.mubr.msk.f32.gmra.mxu1 %vm470_vm2, %v13083_v14  ;;  %10513 = vmatmul.mubr.msk.f32.gmra.mxu0 %vm470_vm2, %v13083_v14 }
 0xabb   : > { %v4357_v15 = vpop.f32.mrf.mxu0  ;;  %10484 = vmatprep.mubr.msk.f32.mxu1 %vm11452_vm0, %v14052_v29  ;;  %10515 = vmatprep.mubr.msk.f32.mxu0 %vm11452_vm0, %v14052_v29 }
 0xabc   : > { %v13099_v59 = vadd.f32 %v13031_v12, %v4404_v17  ;;  %v4393_v9 = vadd.f32 %v4384_v50, %v12555_v40  ;;  %v4373_v34 = vadd.f32 %v4357_v15, %v4219_v63  ;;  %v13147_v17 = vld [vmem:[%s14035_s4 + $0x3] ss:$0 sm:$0xff] }
 0xabd   : > { %v10467_v33 = vpop.f32.mrf.mxu0 }
 0xabe   : > { %v4405_v48 = vmul.f32 %v13028_v45, %v4393_v9  ;;  %v4385_v36 = vadd.f32 %v13024_v5, %v4373_v34  ;;  %10485 = vmatmul.mubr.msk.f32.gmra.mxu1 %vm470_vm2, %v13099_v59  ;;  %10516 = vmatmul.mubr.msk.f32.gmra.mxu0 %vm470_vm2, %v13099_v59 }
 0xabf   : > { %v4362_v0 = vpop.f32.mrf.mxu0  ;;  %10487 = vmatprep.mubr.msk.f32.mxu1 %vm11452_vm0, %v14052_v29  ;;  %10518 = vmatprep.mubr.msk.f32.mxu0 %vm11452_vm0, %v14052_v29 }
 0xac0   : > { %v13115_v40 = vadd.f32 %v13031_v12, %v4405_v48  ;;  %v4394_v55 = vadd.f32 %v4385_v36, %v12567_v30  ;;  %v4374_v26 = vadd.f32 %v4362_v0, %v4224_v21 }
 0xac1   : > { %v10470_v53 = vpop.f32.mrf.mxu0 }
 0xac2   : > { %v4406_v1 = vmul.f32 %v13028_v45, %v4394_v55  ;;  %v4386_v6 = vadd.f32 %v13024_v5, %v4374_v26  ;;  %10488 = vmatmul.mubr.msk.f32.gmra.mxu1 %vm470_vm2, %v13115_v40  ;;  %10519 = vmatmul.mubr.msk.f32.gmra.mxu0 %vm470_vm2, %v13115_v40 }
 0xac3   : > { %10490 = vmatprep.mubr.msk.f32.mxu1 %vm11452_vm0, %v14052_v29  ;;  %10577 = vmatprep.mubr.msk.f32.mxu0 %vm11452_vm0, %v14052_v29 }
 0xac4   : > { %v13129_v30 = vadd.f32 %v13031_v12, %v4406_v1  ;;  %v4395_v31 = vadd.f32 %v4386_v6, %v12578_v10 }
 0xac6   : > { %v4407_v62 = vmul.f32 %v13028_v45, %v4395_v31  ;;  %10491 = vmatmul.mubr.msk.f32.gmra.mxu1 %vm470_vm2, %v13129_v30 }
 0xac7   : > { %10493 = vmatprep.mubr.msk.f32.mxu1 %vm11452_vm0, %v14052_v29 }
 0xac8   : > { %v13138_v5 = vadd.f32 %v13031_v12, %v4407_v62 }
 0xaca   : > { %10494 = vmatmul.mubr.msk.f32.gmra.mxu1 %vm470_vm2, %v13138_v5 }
 0xacb   : > { %10525 = vmatprep.mubr.msk.f32.mxu1 %vm11452_vm0, %v14052_v29 }
 0xb6a   : > { %v4618_v39 = vpop.f32.mrf.mxu0 }
 0xb6c   : > { %v10502_v57 = vpop.f32.mrf.mxu0 }
 0xb6e   : > { %v4623_v10 = vpop.f32.mrf.mxu0 }
 0xb70   : > { %v10505_v24 = vpop.f32.mrf.mxu0 }
 0xb72   : > { %v4512_v45 = vpop.f32.mrf.mxu1  ;;  %v4628_v27 = vpop.f32.mrf.mxu0 }
 0xb74   : > { %v10477_v60 = vpop.f32.mrf.mxu1  ;;  %v10508_v44 = vpop.f32.mrf.mxu0 }
 0xb75   : > { %v4619_v44 = vadd.f32 %v4618_v39, %v4512_v45  ;;  %v8986_v45 = vld [vmem:[%s14034_s3 + $0x148] sm:$0xff] }
 0xb76   : > { %v4517_v7 = vpop.f32.mrf.mxu1  ;;  %v4633_v23 = vpop.f32.mrf.mxu0  ;;  %10522 = vmatpush3.msra.mxu1 %v8986_v45 }
 0xb77   : > { %v4624_v50 = vadd.f32 %v4623_v10, %v4517_v7  ;;  %10523 = vmatprep.subr.mxu1 %v14052_v29 }
 0xb78   : > { %v10480_v25 = vpop.f32.mrf.mxu1  ;;  %v10511_v49 = vpop.f32.mrf.mxu0 }
 0xb79   : > { %v13153_v36 = vadd.f32 %v13147_v17, %v4624_v50 }
 0xb7a   : > { %v4522_v12 = vpop.f32.mrf.mxu1  ;;  %v4638_v58 = vpop.f32.mrf.mxu0 }
 0xb7b   : > { %v4629_v1 = vadd.f32 %v4628_v27, %v4522_v12  ;;  %v8979_v57 = vmul.f32 -1.442695, %v13153_v36  ;;  %v4660_v27 = vadd.f32 %v13147_v17, %v4619_v44 }
 0xb7c   : > { %v10483_v61 = vpop.f32.mrf.mxu1  ;;  %v10514_v28 = vpop.f32.mrf.mxu0 }
 0xb7d   : > { %v4662_v7 = vadd.f32 %v13147_v17, %v4629_v1  ;;  %v8978_v49 = vmul.f32 -1.442695, %v4660_v27 }
 0xb7e   : > { %v4527_v52 = vpop.f32.mrf.mxu1  ;;  %v4643_v41 = vpop.f32.mrf.mxu0 }
 0xb7f   : > { %v4634_v43 = vadd.f32 %v4633_v23, %v4527_v52  ;;  %v8980_v25 = vmul.f32 -1.442695, %v4662_v7 }
 0xb80   : > { %v10486_v3 = vpop.f32.mrf.mxu1  ;;  %v10517_v8 = vpop.f32.mrf.mxu0 }
 0xb81   : > { %v13150_v34 = vadd.f32 %v13147_v17, %v4634_v43 }
 0xb82   : > { %v4532_v13 = vpop.f32.mrf.mxu1  ;;  %v4648_v63 = vpop.f32.mrf.mxu0 }
 0xb83   : > { %v4639_v33 = vadd.f32 %v4638_v58, %v4532_v13  ;;  %v8981_v55 = vmul.f32 -1.442695, %v13150_v34  ;;  %v8985_v13 = vld [vmem:[%s14034_s3 + $0x140] sm:$0xff] }
 0xb84   : > { %v10489_v15 = vpop.f32.mrf.mxu1  ;;  %v10520_v9 = vpop.f32.mrf.mxu0  ;;  %10524 = vmatpush3.msra.mxu1 %v8985_v13 }
 0xb85   : > { %v13157_v26 = vadd.f32 %v13147_v17, %v4639_v33  ;;  %11258 = vpow2.f32 %v8981_v55  ;;  %10528 = vmatprep.subr.mxu1 %v14052_v29 }
 0xb86   : > { %v4537_v21 = vpop.f32.mrf.mxu1 }
 0xb87   : > { %v4644_v48 = vadd.f32 %v4643_v41, %v4537_v21  ;;  %v8982_v24 = vmul.f32 -1.442695, %v13157_v26 }
 0xb88   : > { %v10492_v0 = vpop.f32.mrf.mxu1 }
 0xb89   : > { %v13160_v53 = vadd.f32 %v13147_v17, %v4644_v48 }
 0xb8a   : > { %v4542_v6 = vpop.f32.mrf.mxu1 }
 0xb8b   : > { %v8983_v31 = vmul.f32 -1.442695, %v13160_v53  ;;  %v4649_v62 = vadd.f32 %v4648_v63, %v4542_v6 }
 0xb8c   : > { %v10495_v10 = vpop.f32.mrf.mxu1 }
 0xb8d   : > { %v4666_v60 = vadd.f32 %v13147_v17, %v4649_v62  ;;  %11260 = vpow2.f32 %v8983_v31 }
 0xb8e   : > { %11262 = vpow2.f32 %v8979_v57 }
 0xb8f   : > { %v8984_v23 = vmul.f32 -1.442695, %v4666_v60  ;;  %11264 = vpow2.f32 %v8982_v24 }
 0xb91   : > { %11266 = vpow2.f32 %v8984_v23 }
 0xb92   : > { %11268 = vpow2.f32 %v8980_v25  ;;  %v11259_v12 = vpop.eup %11258 }
 0xb93   : > { %11270 = vpow2.f32 %v8978_v49  ;;  %v4698_v52 = vadd.f32 1.0, %v11259_v12 }
 0xb9a   : > { %v11261_v58 = vpop.eup %11260 }
 0xb9b   : > { %v4700_v61 = vadd.f32 1.0, %v11261_v58  ;;  %v11263_v28 = vpop.eup %11262 }
 0xb9c   : > { %v11265_v41 = vpop.eup %11264  ;;  %v4696_v8 = vadd.f32 1.0, %v11263_v28 }
 0xb9d   : > { %11272 = vrcp.f32 %v4700_v61  ;;  %v4699_v43 = vadd.f32 1.0, %v11265_v41 }
 0xb9e   : > { %v11267_v39 = vpop.eup %11266  ;;  %11274 = vrcp.f32 %v4698_v52  ;;  %v9010_v52 = vld [vmem:[%s14034_s3 + $0x158] sm:$0xff] }
 0xb9f   : > { %v4701_v3 = vadd.f32 1.0, %v11267_v39  ;;  %v11269_v63 = vpop.eup %11268 }
 0xba0   : > { %v4697_v50 = vadd.f32 1.0, %v11269_v63  ;;  %v11271_v15 = vpop.eup %11270 }
 0xba1   : > { %11276 = vrcp.f32 %v4701_v3  ;;  %v4695_v9 = vadd.f32 1.0, %v11271_v15 }
 0xba2   : > { %11278 = vrcp.f32 %v4696_v8 }
 0xba3   : > { %11280 = vrcp.f32 %v4699_v43 }
 0xba4   : > { %11282 = vrcp.f32 %v4697_v50 }
 0xba5   : > { %11284 = vrcp.f32 %v4695_v9 }
 0xba6   : > { %11286 = vtanh.f32 %v4666_v60 }
 0xba7   : > { %11288 = vtanh.f32 %v13160_v53 }
 0xba8   : > { %11290 = vtanh.f32 %v13157_v26 }
 0xba9   : > { %11292 = vtanh.f32 %v13150_v34 }
 0xbaa   : > { %v11273_v33 = vpop.eup %11272  ;;  %11294 = vtanh.f32 %v4662_v7 }
 0xbab   : > { %4733 = vrot.lane.b32.xlu1 %v11273_v33, %s11453_s22  ;;  %v11275_v21 = vpop.eup %11274  ;;  %11296 = vtanh.f32 %v13153_v36 }
 0xbac   : > { %11298 = vtanh.f32 %v4660_v27 }
 0xbae   : > { %v11277_v48 = vpop.eup %11276 }
 0xbaf   : > { %4729 = vrot.lane.b32.xlu1 %v11275_v21, %s11453_s22  ;;  %4735 = vrot.lane.b32.xlu0 %v11277_v48, %s11453_s22  ;;  %v11279_v0 = vpop.eup %11278 }
 0xbb0   : > { %v11281_v55 = vpop.eup %11280 }
 0xbb1   : > { %v11283_v1 = vpop.eup %11282 }
 0xbb2   : > { %v11285_v6 = vpop.eup %11284 }
 0xbb3   : > { %4725 = vrot.lane.b32.xlu1 %v11279_v0, %s11453_s22  ;;  %4731 = vrot.lane.b32.xlu0 %v11281_v55, %s11453_s22  ;;  %v11287_v62 = vpop.eup %11286 }
 0xbb4   : > { %v11289_v24 = vpop.eup %11288 }
 0xbb7   : > { %4727 = vrot.lane.b32.xlu0 %v11283_v1, %s11453_s22  ;;  %5460 = vrot.lane.b32.xlu1 %v13147_v17, %s11454_s15 }
 0xbbb   : > { %4723 = vrot.lane.b32.xlu0 %v11285_v6, %s11453_s22  ;;  %5487 = vrot.lane.b32.xlu1 %v13147_v17, %s11456_s17 }
 0xbbf   : > { %5477 = vrot.lane.b32.xlu0 %v13147_v17, %s11455_s16  ;;  %v11291_v17 = vpop.eup %11290 }
 0xbc0   : > { %v11293_v26 = vpop.eup %11292 }
 0xbc1   : > { %v11295_v60 = vpop.eup %11294 }
 0xbc2   : > { %v11297_v49 = vpop.eup %11296 }
 0xbc3   : > { %v11299_v58 = vpop.eup %11298 }
 0xc1d   : > { %v4734_v31 = vpop.permute.xlu1 %4733 }
 0xc1e   : > { %v13195_v23 = vmul.f32 %v11289_v24, %v4734_v31 }
 0xc21   : > { %v4736_v57 = vpop.permute.xlu0 %4735  ;;  %v4730_v44 = vpop.permute.xlu1 %4729 }
 0xc22   : > { %v13193_v10 = vmul.f32 %v11287_v62, %v4736_v57  ;;  %v13208_v53 = vmul.f32 %v11293_v26, %v4730_v44 }
 0xc24   : > { %10526 = vmatmul.mubr.msk.f32.vlgmr.msra.gmra.mxu1 %vm470_vm2, %v13193_v10  ;;  %10564 = vmatpush3.msra.mxu0 %v13193_v10 }
 0xc25   : > { %10529 = vmatpush3.msra.mxu1 %v13193_v10  ;;  %v4732_v34 = vpop.permute.xlu0 %4731  ;;  %10565 = vmatprep.subr.mxu0 %v14052_v29  ;;  %v4726_v7 = vpop.permute.xlu1 %4725 }
 0xc26   : > { %v13202_v36 = vmul.f32 %v11291_v17, %v4732_v34  ;;  %10530 = vmatprep.subr.mxu1 %v14052_v29  ;;  %10566 = vmatpush3.msra.mxu0 %v13195_v23  ;;  %v4745_v12 = vmul.f32 %v11297_v49, %v4726_v7 }
 0xc27   : > { %10531 = vmatpush3.msra.mxu1 %v13195_v23  ;;  %10567 = vmatprep.subr.mxu0 %v14052_v29 }
 0xc28   : > { %10532 = vmatprep.subr.mxu1 %v14052_v29  ;;  %10568 = vmatpush3.msra.mxu0 %v13202_v36 }
 0xc29   : > { %10533 = vmatpush3.msra.mxu1 %v13202_v36  ;;  %v4728_v27 = vpop.permute.xlu0 %4727  ;;  %10569 = vmatprep.subr.mxu0 %v14052_v29 }
 0xc2a   : > { %v4746_v25 = vmul.f32 %v11295_v60, %v4728_v27  ;;  %10534 = vmatprep.subr.mxu1 %v14052_v29  ;;  %10570 = vmatpush3.msra.mxu0 %v13208_v53 }
 0xc2b   : > { %10535 = vmatpush3.msra.mxu1 %v13208_v53  ;;  %10571 = vmatprep.subr.mxu0 %v14052_v29 }
 0xc2c   : > { %10536 = vmatprep.subr.mxu1 %v14052_v29  ;;  %10572 = vmatpush3.msra.mxu0 %v4746_v25 }
 0xc2d   : > { %10537 = vmatpush3.msra.mxu1 %v4746_v25  ;;  %v4724_v61 = vpop.permute.xlu0 %4723  ;;  %10573 = vmatprep.subr.mxu0 %v14052_v29 }
 0xc2e   : > { %v4744_v28 = vmul.f32 %v11299_v58, %v4724_v61  ;;  %10538 = vmatprep.subr.mxu1 %v14052_v29  ;;  %10574 = vmatpush3.msra.mxu0 %v4745_v12  ;;  %v9038_v58 = vld [vmem:[%s14034_s3 + $0x190] sm:$0xff]  ;;  %v9037_v61 = vld [vmem:[%s14034_s3 + $0x188] sm:$0xff] }
 0xc2f   : > { %10539 = vmatpush3.msra.mxu1 %v4745_v12  ;;  %10575 = vmatprep.subr.mxu0 %v14052_v29 }
 0xc30   : > { %10540 = vmatprep.subr.mxu1 %v14052_v29  ;;  %10542 = vmatprep.mubr.msk.f32.mxu1 %vm11452_vm0, %v14052_v29 }
 0xc31   : > { %10541 = vmatpush3.msra.mxu1 %v4744_v28  ;;  %10576 = vmatpush3.msra.mxu0 %v4744_v28 }
 0xc32   : > { %10543 = vmatmul.mubr.msk.f32.vlgmr.msra.gmra.mxu1 %vm4837_vm6, %v12715_v38  ;;  %10578 = vmatmul.mubr.msk.f32.vlgmr.msra.gmra.mxu0 %vm4837_vm6, %v12720_v32  ;;  %v9009_v38 = vld [vmem:[%s14034_s3 + $0x150] sm:$0xff]  ;;  %v9012_v32 = vld [vmem:[%s14034_s3 + $0x168] sm:$0xff] }
 0xc33   : > { %10545 = vmatprep.mubr.msk.f32.mxu1 %vm11452_vm0, %v14052_v29  ;;  %10580 = vmatprep.mubr.msk.f32.mxu0 %vm11452_vm0, %v14052_v29 }
 0xc34   : > { %10623 = vmatprep.subr.mxu0 %v14052_v29  ;;  %10598 = vmatprep.subr.mxu1 %v14052_v29 }
 0xc35   : > { %10624 = vmatpush3.msra.mxu0 %v9010_v52  ;;  %10599 = vmatpush3.msra.mxu1 %v9012_v32 }
 0xc36   : > { %10546 = vmatmul.mubr.msk.f32.gmra.mxu1 %vm4837_vm6, %v12741_v56  ;;  %10581 = vmatmul.mubr.msk.f32.gmra.mxu0 %vm4837_vm6, %v12746_v51  ;;  %v9011_v56 = vld [vmem:[%s14034_s3 + $0x160] sm:$0xff] }
 0xc37   : > { %10548 = vmatprep.mubr.msk.f32.mxu1 %vm11452_vm0, %v14052_v29  ;;  %10583 = vmatprep.mubr.msk.f32.mxu0 %vm11452_vm0, %v14052_v29 }
 0xc38   : > { %10625 = vmatprep.subr.mxu0 %v14052_v29  ;;  %10600 = vmatprep.subr.mxu1 %v14052_v29 }
 0xc39   : > { %10626 = vmatpush3.msra.mxu0 %v9009_v38  ;;  %10601 = vmatpush3.msra.mxu1 %v9011_v56 }
 0xc3a   : > { %10549 = vmatmul.mubr.msk.f32.gmra.mxu1 %vm4837_vm6, %v12764_v35  ;;  %10584 = vmatmul.mubr.msk.f32.gmra.mxu0 %vm4837_vm6, %v12769_v46  ;;  %v9028_v46 = vld [vmem:[%s14034_s3 + $0x178] sm:$0xff] }
 0xc3b   : > { %10551 = vmatprep.mubr.msk.f32.mxu1 %vm11452_vm0, %v14052_v29  ;;  %10586 = vmatprep.mubr.msk.f32.mxu0 %vm11452_vm0, %v14052_v29 }
 0xc3c   : > { %10648 = vmatprep.subr.mxu1 %v14052_v29 }
 0xc3e   : > { %10552 = vmatmul.mubr.msk.f32.gmra.mxu1 %vm4837_vm6, %v12783_v22  ;;  %10587 = vmatmul.mubr.msk.f32.gmra.mxu0 %vm4837_vm6, %v12788_v20 }
 0xc3f   : > { %10554 = vmatprep.mubr.msk.f32.mxu1 %vm11452_vm0, %v14052_v29  ;;  %10589 = vmatprep.mubr.msk.f32.mxu0 %vm11452_vm0, %v14052_v29 }
 0xc42   : > { %10555 = vmatmul.mubr.msk.f32.gmra.mxu1 %vm4837_vm6, %v12802_v42  ;;  %10590 = vmatmul.mubr.msk.f32.gmra.mxu0 %vm4837_vm6, %v12807_v37  ;;  %v9027_v42 = vld [vmem:[%s14034_s3 + $0x170] sm:$0xff] }
 0xc43   : > { %10557 = vmatprep.mubr.msk.f32.mxu1 %vm11452_vm0, %v14052_v29  ;;  %10592 = vmatprep.mubr.msk.f32.mxu0 %vm11452_vm0, %v14052_v29 }
 0xc46   : > { %10558 = vmatmul.mubr.msk.f32.gmra.mxu1 %vm4837_vm6, %v12820_v18  ;;  %10593 = vmatmul.mubr.msk.f32.gmra.mxu0 %vm4837_vm6, %v12825_v11 }
 0xc47   : > { %10560 = vmatprep.mubr.msk.f32.mxu1 %vm11452_vm0, %v14052_v29  ;;  %10595 = vmatprep.mubr.msk.f32.mxu0 %vm11452_vm0, %v14052_v29 }
 0xc4a   : > { %10561 = vmatmul.mubr.msk.f32.gmra.mxu1 %vm4837_vm6, %v12838_v19  ;;  %10596 = vmatmul.mubr.msk.f32.gmra.mxu0 %vm4837_vm6, %v12843_v47 }
 0xc4b   : > { %10627 = vmatprep.mubr.msk.f32.mxu0 %vm11452_vm0, %v14052_v29  ;;  %10602 = vmatprep.mubr.msk.f32.mxu1 %vm11452_vm0, %v14052_v29 }
 0xc4e   : > { %10628 = vmatmul.mubr.msk.f32.vlgmr.msra.gmra.mxu0 %vm470_vm2, %v4744_v28 }
 0xc4f   : > { %10630 = vmatprep.mubr.msk.f32.mxu0 %vm11452_vm0, %v14052_v29 }
 0xc52   : > { %10631 = vmatmul.mubr.msk.f32.gmra.mxu0 %vm470_vm2, %v4745_v12  ;;  %v9039_v12 = vld [vmem:[%s14034_s3 + $0x198] sm:$0xff] }
 0xc53   : > { %10633 = vmatprep.mubr.msk.f32.mxu0 %vm11452_vm0, %v14052_v29  ;;  %10673 = vmatprep.subr.mxu0 %v9039_v12 }
 0xc54   : > { %10674 = vmatpush3.msra.mxu0 %v9039_v12 }
 0xc55   : > { %10675 = vmatprep.subr.mxu0 %v9038_v58 }
 0xc56   : > { %10634 = vmatmul.mubr.msk.f32.gmra.mxu0 %vm470_vm2, %v4746_v25 }
 0xc57   : > { %10636 = vmatprep.mubr.msk.f32.mxu0 %vm11452_vm0, %v14052_v29  ;;  %10676 = vmatpush3.msra.mxu0 %v9038_v58 }
 0xc58   : > { %10686 = vmatprep.subr.mxu0 %v9037_v61 }
 0xc5a   : > { %10637 = vmatmul.mubr.msk.f32.gmra.mxu0 %vm470_vm2, %v13208_v53 }
 0xc5b   : > { %10639 = vmatprep.mubr.msk.f32.mxu0 %vm11452_vm0, %v14052_v29 }
 0xc5e   : > { %10640 = vmatmul.mubr.msk.f32.gmra.mxu0 %vm470_vm2, %v13202_v36 }
 0xc5f   : > { %10642 = vmatprep.mubr.msk.f32.mxu0 %vm11452_vm0, %v14052_v29 }
 0xc62   : > { %10643 = vmatmul.mubr.msk.f32.gmra.mxu0 %vm470_vm2, %v13195_v23 }
 0xc63   : > { %10645 = vmatprep.mubr.msk.f32.mxu0 %vm11452_vm0, %v14052_v29 }
 0xc66   : > { %10646 = vmatmul.mubr.msk.f32.gmra.mxu0 %vm470_vm2, %v13193_v10 }
 0xce4   : > { %v13321_v51 = vpop.f32.mrf.mxu1 }
 0xce6   : > { %v10527_v35 = vpop.f32.mrf.mxu1 }
 0xcf2   : > { %v4925_v22 = vpop.f32.mrf.mxu1  ;;  %v5053_v20 = vpop.f32.mrf.mxu0 }
 0xcf3   : > { %10603 = vmatmul.mubr.msk.f32.vlgmr.msra.gmra.mxu1 %vm470_vm2, %v4925_v22 }
 0xcf4   : > { %v10544_v37 = vpop.f32.mrf.mxu1  ;;  %v10579_v18 = vpop.f32.mrf.mxu0  ;;  %10605 = vmatprep.mubr.msk.f32.mxu1 %vm11452_vm0, %v14052_v29  ;;  %10649 = vmatpush3.msra.mxu1 %v9028_v46 }
 0xcf5   : > { %10650 = vmatprep.subr.mxu1 %v14052_v29 }
 0xcf6   : > { %v4930_v11 = vpop.f32.mrf.mxu1  ;;  %v5058_v19 = vpop.f32.mrf.mxu0  ;;  %10651 = vmatpush3.msra.mxu1 %v9027_v42 }
 0xcf7   : > { %10606 = vmatmul.mubr.msk.f32.gmra.mxu1 %vm470_vm2, %v4930_v11  ;;  %10699 = vmatprep.subr.mxu1 %v14052_v29 }
 0xcf8   : > { %v10547_v47 = vpop.f32.mrf.mxu1  ;;  %v10582_v41 = vpop.f32.mrf.mxu0  ;;  %10608 = vmatprep.mubr.msk.f32.mxu1 %vm11452_vm0, %v14052_v29 }
 0xcfa   : > { %v4935_v39 = vpop.f32.mrf.mxu1  ;;  %v5063_v45 = vpop.f32.mrf.mxu0 }
 0xcfb   : > { %10609 = vmatmul.mubr.msk.f32.gmra.mxu1 %vm470_vm2, %v4935_v39 }
 0xcfc   : > { %v10550_v3 = vpop.f32.mrf.mxu1  ;;  %v10585_v8 = vpop.f32.mrf.mxu0  ;;  %10611 = vmatprep.mubr.msk.f32.mxu1 %vm11452_vm0, %v14052_v29 }
 0xcfd   : > { %v5461_v8 = vpop.permute.xlu1 %5460 }
 0xcfe   : > { %v4940_v43 = vpop.f32.mrf.mxu1  ;;  %v5068_v13 = vpop.f32.mrf.mxu0 }
 0xcff   : > { %10612 = vmatmul.mubr.msk.f32.gmra.mxu1 %vm470_vm2, %v4940_v43 }
 0xd00   : > { %v10553_v63 = vpop.f32.mrf.mxu1  ;;  %v10588_v50 = vpop.f32.mrf.mxu0  ;;  %10614 = vmatprep.mubr.msk.f32.mxu1 %vm11452_vm0, %v14052_v29 }
 0xd02   : > { %v4945_v15 = vpop.f32.mrf.mxu1  ;;  %v5073_v9 = vpop.f32.mrf.mxu0 }
 0xd03   : > { %10615 = vmatmul.mubr.msk.f32.gmra.mxu1 %vm470_vm2, %v4945_v15 }
 0xd04   : > { %v10556_v33 = vpop.f32.mrf.mxu1  ;;  %v10591_v21 = vpop.f32.mrf.mxu0  ;;  %10617 = vmatprep.mubr.msk.f32.mxu1 %vm11452_vm0, %v14052_v29 }
 0xd05   : > { %v5478_v33 = vpop.permute.xlu0 %5477 }
 0xd06   : > { %v4950_v48 = vpop.f32.mrf.mxu1  ;;  %v5078_v0 = vpop.f32.mrf.mxu0 }
 0xd07   : > { %10618 = vmatmul.mubr.msk.f32.gmra.mxu1 %vm470_vm2, %v4950_v48 }
 0xd08   : > { %v10559_v55 = vpop.f32.mrf.mxu1  ;;  %v10594_v1 = vpop.f32.mrf.mxu0  ;;  %10620 = vmatprep.mubr.msk.f32.mxu1 %vm11452_vm0, %v14052_v29 }
 0xd09   : > { %v5488_v1 = vpop.permute.xlu1 %5487 }
 0xd0a   : > { %v4955_v6 = vpop.f32.mrf.mxu1  ;;  %v5083_v31 = vpop.f32.mrf.mxu0 }
 0xd0b   : > { %10621 = vmatmul.mubr.msk.f32.gmra.mxu1 %vm470_vm2, %v4955_v6 }
 0xd0c   : > { %v10597_v62 = vpop.f32.mrf.mxu0  ;;  %10652 = vmatprep.mubr.msk.f32.mxu1 %vm11452_vm0, %v14052_v29  ;;  %v10562_v57 = vpop.f32.mrf.mxu1 }
 0xd0e   : > { %v13352_v10 = vpop.f32.mrf.mxu0 }
 0xd0f   : > { %10653 = vmatmul.mubr.msk.f32.vlgmr.msra.gmra.mxu1 %vm470_vm2, %v5053_v20 }
 0xd10   : > { %v10629_v24 = vpop.f32.mrf.mxu0  ;;  %10655 = vmatprep.mubr.msk.f32.mxu1 %vm11452_vm0, %v14052_v29 }
 0xd12   : > { %v5301_v44 = vpop.f32.mrf.mxu0 }
 0xd13   : > { %10656 = vmatmul.mubr.msk.f32.gmra.mxu1 %vm470_vm2, %v5058_v19 }
 0xd14   : > { %v10632_v23 = vpop.f32.mrf.mxu0  ;;  %10658 = vmatprep.mubr.msk.f32.mxu1 %vm11452_vm0, %v14052_v29 }
 0xd16   : > { %v5306_v17 = vpop.f32.mrf.mxu0 }
 0xd17   : > { %10659 = vmatmul.mubr.msk.f32.gmra.mxu1 %vm470_vm2, %v5063_v45 }
 0xd18   : > { %v10635_v34 = vpop.f32.mrf.mxu0  ;;  %10661 = vmatprep.mubr.msk.f32.mxu1 %vm11452_vm0, %v14052_v29 }
 0xd1a   : > { %v5311_v36 = vpop.f32.mrf.mxu0 }
 0xd1b   : > { %10662 = vmatmul.mubr.msk.f32.gmra.mxu1 %vm470_vm2, %v5068_v13 }
 0xd1c   : > { %v10638_v26 = vpop.f32.mrf.mxu0  ;;  %10664 = vmatprep.mubr.msk.f32.mxu1 %vm11452_vm0, %v14052_v29 }
 0xd1e   : > { %v5316_v53 = vpop.f32.mrf.mxu0 }
 0xd1f   : > { %10665 = vmatmul.mubr.msk.f32.gmra.mxu1 %vm470_vm2, %v5073_v9 }
 0xd20   : > { %v10641_v60 = vpop.f32.mrf.mxu0  ;;  %10667 = vmatprep.mubr.msk.f32.mxu1 %vm11452_vm0, %v14052_v29 }
 0xd22   : > { %v13369_v7 = vpop.f32.mrf.mxu0 }
 0xd23   : > { %10668 = vmatmul.mubr.msk.f32.gmra.mxu1 %vm470_vm2, %v5078_v0 }
 0xd24   : > { %v10644_v27 = vpop.f32.mrf.mxu0  ;;  %10670 = vmatprep.mubr.msk.f32.mxu1 %vm11452_vm0, %v14052_v29 }
 0xd26   : > { %v13374_v25 = vpop.f32.mrf.mxu0 }
 0xd27   : > { %10671 = vmatmul.mubr.msk.f32.gmra.mxu1 %vm470_vm2, %v5083_v31 }
 0xd28   : > { %v10647_v49 = vpop.f32.mrf.mxu0  ;;  %10703 = vmatprep.mubr.msk.f32.mxu1 %vm11452_vm0, %v14052_v29 }
 0xd29   : > { %v9036_v49 = vld [vmem:[%s14034_s3 + $0x180] sm:$0xff] }
 0xdb3   : > { %v5178_v28 = vpop.f32.mrf.mxu1 }
 0xdb5   : > { %v10604_v52 = vpop.f32.mrf.mxu1 }
 0xdb7   : > { %v5183_v38 = vpop.f32.mrf.mxu1 }
 0xdb8   : > { %v5302_v39 = vadd.f32 %v5301_v44, %v5183_v38 }
 0xdb9   : > { %v10607_v32 = vpop.f32.mrf.mxu1 }
 0xdbb   : > { %v5188_v56 = vpop.f32.mrf.mxu1 }
 0xdbc   : > { %v5307_v13 = vadd.f32 %v5306_v17, %v5188_v56 }
 0xdbd   : > { %v10610_v35 = vpop.f32.mrf.mxu1 }
 0xdbf   : > { %v5193_v46 = vpop.f32.mrf.mxu1 }
 0xdc0   : > { %v5312_v48 = vadd.f32 %v5311_v36, %v5193_v46 }
 0xdc1   : > { %v10613_v22 = vpop.f32.mrf.mxu1 }
 0xdc3   : > { %v5198_v20 = vpop.f32.mrf.mxu1 }
 0xdc4   : > { %v5317_v44 = vadd.f32 %v5316_v53, %v5198_v20 }
 0xdc5   : > { %v10616_v42 = vpop.f32.mrf.mxu1 }
 0xdc7   : > { %v5203_v37 = vpop.f32.mrf.mxu1 }
 0xdc8   : > { %v5322_v53 = vadd.f32 %v13369_v7, %v5203_v37 }
 0xdc9   : > { %v10619_v18 = vpop.f32.mrf.mxu1 }
 0xdcb   : > { %v5208_v11 = vpop.f32.mrf.mxu1 }
 0xdcc   : > { %v5327_v56 = vadd.f32 %v13374_v25, %v5208_v11 }
 0xdcd   : > { %v10622_v19 = vpop.f32.mrf.mxu1 }
 0xdcf   : > { %v5419_v47 = vpop.f32.mrf.mxu1 }
 0xdd1   : > { %v10654_v41 = vpop.f32.mrf.mxu1 }
 0xdd3   : > { %v5424_v45 = vpop.f32.mrf.mxu1 }
 0xdd4   : > { %v5454_v3 = vadd.f32 %v5424_v45, %v5302_v39 }
 0xdd5   : > { %v10657_v43 = vpop.f32.mrf.mxu1 }
 0xdd6   : > { %v5464_v63 = vadd.f32 %v5461_v8, %v5454_v3 }
 0xdd7   : > { %v5429_v50 = vpop.f32.mrf.mxu1 }
 0xdd8   : > { %v5471_v15 = vadd.f32 %v5464_v63, %v13068_v16  ;;  %v5455_v9 = vadd.f32 %v5429_v50, %v5307_v13  ;;  %v5297_v16 = vadd.f32 %v13352_v10, %v5178_v28 }
 0xdd9   : > { %v10660_v21 = vpop.f32.mrf.mxu1 }
 0xdda   : > { %v5465_v0 = vadd.f32 %v5461_v8, %v5455_v9  ;;  %v5481_v55 = vmul.f32 %v5478_v33, %v5471_v15  ;;  %v5453_v27 = vadd.f32 %v5419_v47, %v5297_v16  ;;  %v13443_v9 = vld [vmem:[%s14035_s4 + $0x4] ss:$0 sm:$0xff] }
 0xddb   : > { %v5434_v6 = vpop.f32.mrf.mxu1 }
 0xddc   : > { %v5472_v31 = vadd.f32 %v5465_v0, %v13083_v14  ;;  %v5456_v62 = vadd.f32 %v5434_v6, %v5312_v48  ;;  %v13390_v57 = vadd.f32 %v5488_v1, %v5481_v55  ;;  %v5463_v32 = vadd.f32 %v5461_v8, %v5453_v27 }
 0xddd   : > { %v10663_v24 = vpop.f32.mrf.mxu1 }
 0xdde   : > { %v5482_v23 = vmul.f32 %v5478_v33, %v5472_v31  ;;  %v5466_v17 = vadd.f32 %v5461_v8, %v5456_v62  ;;  %10677 = vmatprep.mubr.msk.f32.mxu0 %vm470_vm2, %v13390_v57  ;;  %v5470_v20 = vadd.f32 %v5463_v32, %v13053_v54  ;;  %v9061_v54 = vld [vmem:[%s14034_s3 + $0x1a8] sm:$0xff] }
 0xddf   : > { %v5439_v34 = vpop.f32.mrf.mxu1  ;;  %10700 = vmatpush3.msra.mxu1 %v9061_v54 }
 0xde0   : > { %v13395_v36 = vadd.f32 %v5488_v1, %v5482_v23  ;;  %v5473_v26 = vadd.f32 %v5466_v17, %v13099_v59  ;;  %v5457_v60 = vadd.f32 %v5439_v34, %v5317_v44  ;;  %v5480_v19 = vmul.f32 %v5478_v33, %v5470_v20  ;;  %10701 = vmatprep.subr.mxu1 %v14052_v29  ;;  %v13461_v20 = vld [vmem:[%s14032_s1] sm:$0xff] }
 0xde1   : > { %v10666_v14 = vpop.f32.mrf.mxu1 }
 0xde2   : > { %v5483_v12 = vmul.f32 %v5478_v33, %v5473_v26  ;;  %v5467_v58 = vadd.f32 %v5461_v8, %v5457_v60  ;;  %10678 = vmatmul.mubr.msk.f32.vlgmr.msra.gmra.mxu0 %vm470_vm2, %v13395_v36 }
 0xde3   : > { %v5444_v10 = vpop.f32.mrf.mxu1  ;;  %10687 = vmatpush3.msra.mxu0 %v9037_v61 }
 0xde4   : > { %v5474_v28 = vadd.f32 %v5467_v58, %v13115_v40  ;;  %v5458_v52 = vadd.f32 %v5444_v10, %v5322_v53  ;;  %v13405_v59 = vadd.f32 %v5488_v1, %v5483_v12  ;;  %10688 = vmatprep.subr.mxu0 %v9036_v49 }
 0xde5   : > { %v10669_v38 = vpop.f32.mrf.mxu1  ;;  %10689 = vmatpush3.msra.mxu0 %v9036_v49 }
 0xde6   : > { %v5484_v35 = vmul.f32 %v5478_v33, %v5474_v28  ;;  %v5468_v7 = vadd.f32 %v5461_v8, %v5458_v52  ;;  %10680 = vmatprep.mubr.msk.f32.mxu0 %vm470_vm2, %v13405_v59 }
 0xde7   : > { %v5449_v46 = vpop.f32.mrf.mxu1 }
 0xde8   : > { %v13410_v22 = vadd.f32 %v5488_v1, %v5484_v35  ;;  %v5475_v61 = vadd.f32 %v5468_v7, %v13129_v30  ;;  %v5459_v40 = vadd.f32 %v5449_v46, %v5327_v56  ;;  %v5490_v30 = vadd.f32 %v5488_v1, %v5480_v19  ;;  %v9060_v56 = vld [vmem:[%s14034_s3 + $0x1a0] sm:$0xff] }
 0xde9   : > { %v10672_v42 = vpop.f32.mrf.mxu1  ;;  %10702 = vmatpush3.msra.mxu1 %v9060_v56 }
 0xdea   : > { %v5485_v37 = vmul.f32 %v5478_v33, %v5475_v61  ;;  %v5469_v18 = vadd.f32 %v5461_v8, %v5459_v40  ;;  %10681 = vmatmul.mubr.msk.f32.gmra.mxu0 %vm470_vm2, %v13410_v22 }
 0xdec   : > { %v5476_v25 = vadd.f32 %v5469_v18, %v13138_v5  ;;  %v13417_v11 = vadd.f32 %v5488_v1, %v5485_v37 }
 0xdee   : > { %v5486_v47 = vmul.f32 %v5478_v33, %v5476_v25  ;;  %10683 = vmatprep.mubr.msk.f32.mxu0 %vm470_vm2, %v13417_v11 }
 0xdf0   : > { %v13421_v41 = vadd.f32 %v5488_v1, %v5486_v47 }
 0xdf2   : > { %10684 = vmatmul.mubr.msk.f32.gmra.mxu0 %vm470_vm2, %v13421_v41 }
 0xdf3   : > { %10690 = vmatprep.mubr.msk.f32.mxu0 %vm470_vm2, %v5490_v30 }
 0xdf6   : > { %10691 = vmatmul.mubr.msk.f32.vlgmr.msra.gmra.mxu0 %vm470_vm2, %v13390_v57 }
 0xdf7   : > { %10693 = vmatprep.mubr.msk.f32.mxu0 %vm470_vm2, %v13395_v36 }
 0xdfa   : > { %10694 = vmatmul.mubr.msk.f32.gmra.mxu0 %vm470_vm2, %v13405_v59 }
 0xdfb   : > { %10696 = vmatprep.mubr.msk.f32.mxu0 %vm470_vm2, %v13410_v22 }
 0xdfe   : > { %10697 = vmatmul.mubr.msk.f32.gmra.mxu0 %vm470_vm2, %v13417_v11 }
 0xdff   : > { %10718 = vmatprep.mubr.msk.f32.mxu0 %vm5884_vm7, %v13461_v20 }
 0xea2   : > { %v10679_v5 = vpop.f32.mrf.mxu0 }
 0xea4   : > { %v5586_v39 = vpop.f32.mrf.mxu0 }
 0xeaa   : > { %v10682_v45 = vpop.f32.mrf.mxu0 }
 0xeac   : > { %v5596_v3 = vpop.f32.mrf.mxu0 }
 0xeb2   : > { %v10685_v8 = vpop.f32.mrf.mxu0 }
 0xeb4   : > { %v5606_v43 = vpop.f32.mrf.mxu0 }
 0xeb6   : > { %v10692_v13 = vpop.f32.mrf.mxu0 }
 0xeb7   : > { %v5690_v21 = vadd.f32 %v10692_v13, %v10679_v5 }
 0xeb8   : > { %v5684_v63 = vpop.f32.mrf.mxu0 }
 0xeb9   : > { %v5685_v1 = vadd.f32 %v5684_v63, %v5586_v39  ;;  %v5722_v44 = vadd.f32 %v13443_v9, %v5690_v21 }
 0xeba   : > { %v10695_v50 = vpop.f32.mrf.mxu0 }
 0xebb   : > { %v5700_v15 = vadd.f32 %v10695_v50, %v10682_v45  ;;  %v5721_v34 = vadd.f32 %v13443_v9, %v5685_v1  ;;  %v9055_v27 = vmul.f32 -1.442695, %v5722_v44  ;;  %v13499_v1 = vld [vmem:[%s14032_s1 + $0x8] sm:$0xff] }
 0xebc   : > { %v5694_v33 = vpop.f32.mrf.mxu0 }
 0xebd   : > { %v13446_v48 = vadd.f32 %v13443_v9, %v5700_v15  ;;  %v5695_v0 = vadd.f32 %v5694_v33, %v5596_v3  ;;  %v9054_v49 = vmul.f32 -1.442695, %v5721_v34 }
 0xebe   : > { %v10698_v55 = vpop.f32.mrf.mxu0 }
 0xebf   : > { %v5723_v6 = vadd.f32 %v13443_v9, %v5695_v0  ;;  %v5710_v31 = vadd.f32 %v10698_v55, %v10685_v8  ;;  %v9057_v62 = vmul.f32 -1.442695, %v13446_v48  ;;  %v13494_v55 = vld [vmem:[%s14032_s1 + $0x60] sm:$0xff] }
 0xec0   : > { %v5704_v24 = vpop.f32.mrf.mxu0 }
 0xec1   : > { %v5726_v23 = vadd.f32 %v13443_v9, %v5710_v31  ;;  %v5705_v17 = vadd.f32 %v5704_v24, %v5606_v43  ;;  %v9056_v16 = vmul.f32 -1.442695, %v5723_v6  ;;  %11300 = vpow2.f32 %v9057_v62  ;;  %v13509_v31 = vld [vmem:[%s14032_s1 + $0x10] sm:$0xff]  ;;  %v9082_v24 = vld [vmem:[%s14034_s3 + $0x1b8] sm:$0xff] }
 0xec2   : > { %v13514_v62 = vld [vmem:[%s14032_s1 + $0x70] sm:$0xff] }
 0xec3   : > { %v9059_v26 = vmul.f32 -1.442695, %v5726_v23  ;;  %v5725_v60 = vadd.f32 %v13443_v9, %v5705_v17  ;;  %v5882_v17 = vld [vmem:[%s14032_s1 + $0x20] sm:$0xff] }
 0xec5   : > { %11302 = vpow2.f32 %v9059_v26  ;;  %v9058_v14 = vmul.f32 -1.442695, %v5725_v60  ;;  %v5883_v26 = vld [vmem:[%s14032_s1 + $0x28] sm:$0xff] }
 0xec6   : > { %11304 = vpow2.f32 %v9056_v16  ;;  %v9073_v16 = vld [vmem:[%s14032_s1 + $0x80] sm:$0xff] }
 0xec7   : > { %11306 = vpow2.f32 %v9058_v14  ;;  %v9083_v14 = vld [vmem:[%s14034_s3 + $0x1c0] sm:$0xff] }
 0xec8   : > { %11308 = vpow2.f32 %v9055_v27  ;;  %v9084_v27 = vld [vmem:[%s14034_s3 + $0x1c8] sm:$0xff] }
 0xec9   : > { %11310 = vpow2.f32 %v9054_v49  ;;  %v9098_v49 = vld [vmem:[%s14034_s3 + $0x1d8] sm:$0xff] }
 0xece   : > { %v11301_v53 = vpop.eup %11300 }
 0xecf   : > { %v5754_v52 = vadd.f32 1.0, %v11301_v53 }
 0xed2   : > { %v11303_v12 = vpop.eup %11302 }
 0xed3   : > { %v11305_v58 = vpop.eup %11304  ;;  %v5756_v10 = vadd.f32 1.0, %v11303_v12 }
 0xed4   : > { %v11307_v28 = vpop.eup %11306  ;;  %v5753_v35 = vadd.f32 1.0, %v11305_v58 }
 0xed5   : > { %11312 = vrcp.f32 %v5756_v10  ;;  %v5755_v38 = vadd.f32 1.0, %v11307_v28  ;;  %v11309_v32 = vpop.eup %11308 }
 0xed6   : > { %v11311_v7 = vpop.eup %11310  ;;  %v5752_v46 = vadd.f32 1.0, %v11309_v32 }
 0xed7   : > { %11314 = vrcp.f32 %v5755_v38  ;;  %v5751_v61 = vadd.f32 1.0, %v11311_v7 }
 0xed8   : > { %11316 = vrcp.f32 %v5754_v52  ;;  %v9097_v52 = vld [vmem:[%s14034_s3 + $0x1d0] sm:$0xff] }
 0xed9   : > { %11318 = vrcp.f32 %v5753_v35 }
 0xeda   : > { %11320 = vrcp.f32 %v5752_v46 }
 0xedb   : > { %11322 = vrcp.f32 %v5751_v61 }
 0xedc   : > { %11324 = vtanh.f32 %v5726_v23  ;;  %v13537_v23 = vld [vmem:[%s14032_s1 + $0x78] sm:$0xff] }
 0xedd   : > { %11326 = vtanh.f32 %v5725_v60  ;;  %v9074_v60 = vld [vmem:[%s14032_s1 + $0x88] sm:$0xff] }
 0xede   : > { %11328 = vtanh.f32 %v13446_v48 }
 0xedf   : > { %11330 = vtanh.f32 %v5723_v6  ;;  %v13504_v6 = vld [vmem:[%s14032_s1 + $0x68] sm:$0xff] }
 0xee0   : > { %11332 = vtanh.f32 %v5722_v44  ;;  %v13532_v44 = vld [vmem:[%s14032_s1 + $0x18] sm:$0xff] }
 0xee1   : > { %11334 = vtanh.f32 %v5721_v34  ;;  %v9081_v34 = vld [vmem:[%s14034_s3 + $0x1b0] sm:$0xff] }
 0xee2   : > { %v11313_v40 = vpop.eup %11312 }
 0xee3   : > { %5785 = vrot.lane.b32.xlu0 %v11313_v40, %s11453_s22 }
 0xee4   : > { %v11315_v42 = vpop.eup %11314 }
 0xee5   : > { %5783 = vrot.lane.b32.xlu1 %v11315_v42, %s11453_s22  ;;  %v11317_v37 = vpop.eup %11316 }
 0xee6   : > { %v11319_v18 = vpop.eup %11318 }
 0xee7   : > { %5781 = vrot.lane.b32.xlu0 %v11317_v37, %s11453_s22  ;;  %v11321_v25 = vpop.eup %11320  ;;  %v9106_v37 = vld [vmem:[%s14034_s3 + $0x1e8] sm:$0xff] }
 0xee8   : > { %v11323_v19 = vpop.eup %11322 }
 0xee9   : > { %5779 = vrot.lane.b32.xlu1 %v11319_v18, %s11453_s22  ;;  %v11325_v47 = vpop.eup %11324  ;;  %v9105_v18 = vld [vmem:[%s14034_s3 + $0x1e0] sm:$0xff] }
 0xeea   : > { %v11327_v5 = vpop.eup %11326 }
 0xeeb   : > { %5777 = vrot.lane.b32.xlu0 %v11321_v25, %s11453_s22  ;;  %v11329_v3 = vpop.eup %11328  ;;  %v9108_v25 = vld [vmem:[%s14034_s3 + $0x1f8] sm:$0xff] }
 0xeec   : > { %v11331_v13 = vpop.eup %11330 }
 0xeed   : > { %5775 = vrot.lane.b32.xlu1 %v11323_v19, %s11453_s22  ;;  %v11333_v15 = vpop.eup %11332  ;;  %v9107_v19 = vld [vmem:[%s14034_s3 + $0x1f0] sm:$0xff] }
 0xeee   : > { %v11335_v21 = vpop.eup %11334 }
 0xeef   : > { %6465 = vrot.lane.b32.xlu0 %v13443_v9, %s11454_s15 }
 0xef1   : > { %6480 = vrot.lane.b32.xlu1 %v13443_v9, %s11455_s16 }
 0xef3   : > { %6489 = vrot.lane.b32.xlu0 %v13443_v9, %s11456_s17 }
 0xf55   : > { %v5786_v30 = vpop.permute.xlu0 %5785 }
 0xf56   : > { %v13477_v54 = vmul.f32 %v11325_v47, %v5786_v30 }
 0xf57   : > { %v5784_v39 = vpop.permute.xlu1 %5783 }
 0xf58   : > { %v13479_v45 = vmul.f32 %v11327_v5, %v5784_v39  ;;  %10704 = vmatmul.mubr.msk.f32.vlgmr.msra.gmra.mxu1 %vm470_vm2, %v13477_v54  ;;  %10706 = vmatprep.subr.mxu0 %v13477_v54 }
 0xf59   : > { %10727 = vmatprep.subr.mxu1 %v13477_v54  ;;  %v5782_v8 = vpop.permute.xlu0 %5781  ;;  %10707 = vmatpush3.msra.mxu0 %v13477_v54 }
 0xf5a   : > { %v5796_v43 = vmul.f32 %v11329_v3, %v5782_v8  ;;  %10728 = vmatpush3.msra.mxu1 %v13477_v54  ;;  %10708 = vmatprep.subr.mxu0 %v13479_v45 }
 0xf5b   : > { %10729 = vmatprep.subr.mxu1 %v13479_v45  ;;  %10709 = vmatpush3.msra.mxu0 %v13479_v45  ;;  %v5780_v63 = vpop.permute.xlu1 %5779 }
 0xf5c   : > { %10730 = vmatpush3.msra.mxu1 %v13479_v45  ;;  %v5795_v50 = vmul.f32 %v11331_v13, %v5780_v63  ;;  %10710 = vmatprep.subr.mxu0 %v5796_v43 }
 0xf5d   : > { %10731 = vmatprep.subr.mxu1 %v5796_v43  ;;  %v5778_v9 = vpop.permute.xlu0 %5777  ;;  %10711 = vmatpush3.msra.mxu0 %v5796_v43 }
 0xf5e   : > { %v5794_v33 = vmul.f32 %v11333_v15, %v5778_v9  ;;  %10732 = vmatpush3.msra.mxu1 %v5796_v43  ;;  %10712 = vmatprep.subr.mxu0 %v5795_v50 }
 0xf5f   : > { %10733 = vmatprep.subr.mxu1 %v5795_v50  ;;  %10713 = vmatpush3.msra.mxu0 %v5795_v50  ;;  %v5776_v48 = vpop.permute.xlu1 %5775 }
 0xf60   : > { %10734 = vmatpush3.msra.mxu1 %v5795_v50  ;;  %v5793_v0 = vmul.f32 %v11335_v21, %v5776_v48  ;;  %10714 = vmatprep.subr.mxu0 %v5794_v33 }
 0xf61   : > { %10735 = vmatprep.subr.mxu1 %v5794_v33  ;;  %10715 = vmatpush3.msra.mxu0 %v5794_v33  ;;  %v6466_v15 = vpop.permute.xlu0 %6465 }
 0xf62   : > { %10736 = vmatpush3.msra.mxu1 %v5794_v33  ;;  %10716 = vmatprep.subr.mxu0 %v5793_v0 }
 0xf63   : > { %10737 = vmatprep.subr.mxu1 %v5793_v0  ;;  %10717 = vmatpush3.msra.mxu0 %v5793_v0 }
 0xf64   : > { %10738 = vmatpush3.msra.mxu1 %v5793_v0  ;;  %10739 = vmatprep.mubr.msk.f32.mxu1 %vm5884_vm7, %v13494_v55 }
 0xf65   : > { %10719 = vmatmul.mubr.msk.f32.vlgmr.msra.gmra.mxu0 %vm5884_vm7, %v13499_v1  ;;  %10740 = vmatmul.mubr.msk.f32.vlgmr.msra.gmra.mxu1 %vm5884_vm7, %v13504_v6 }
 0xf66   : > { %10721 = vmatprep.mubr.msk.f32.mxu0 %vm5884_vm7, %v13509_v31  ;;  %10742 = vmatprep.mubr.msk.f32.mxu1 %vm5884_vm7, %v13514_v62 }
 0xf67   : > { %10761 = vmatprep.subr.mxu1 %v9082_v24  ;;  %10748 = vmatprep.subr.mxu0 %v9084_v27 }
 0xf68   : > { %10762 = vmatpush3.msra.mxu1 %v9082_v24  ;;  %10749 = vmatpush3.msra.mxu0 %v9084_v27 }
 0xf69   : > { %10722 = vmatmul.mubr.msk.f32.gmra.mxu0 %vm5884_vm7, %v13532_v44  ;;  %10743 = vmatmul.mubr.msk.f32.gmra.mxu1 %vm5884_vm7, %v13537_v23 }
 0xf6a   : > { %10724 = vmatprep.mubr.msk.f32.mxu0 %vm5884_vm7, %v5882_v17  ;;  %10745 = vmatprep.mubr.msk.f32.mxu1 %vm5884_vm7, %v9073_v16 }
 0xf6b   : > { %10763 = vmatprep.subr.mxu1 %v9081_v34  ;;  %10750 = vmatprep.subr.mxu0 %v9083_v14 }
 0xf6c   : > { %10764 = vmatpush3.msra.mxu1 %v9081_v34  ;;  %10751 = vmatpush3.msra.mxu0 %v9083_v14  ;;  %v6481_v14 = vpop.permute.xlu1 %6480 }
 0xf6d   : > { %10725 = vmatmul.mubr.msk.f32.gmra.mxu0 %vm5884_vm7, %v5883_v26  ;;  %10746 = vmatmul.mubr.msk.f32.gmra.mxu1 %vm5884_vm7, %v9074_v60 }
 0xf6e   : > { %10765 = vmatprep.mubr.msk.f32.mxu1 %vm470_vm2, %v5793_v0  ;;  %10774 = vmatprep.subr.mxu0 %v9098_v49 }
 0xf6f   : > { %10787 = vmatprep.subr.mxu1 %v9108_v25 }
 0xf71   : > { %10766 = vmatmul.mubr.msk.f32.vlgmr.msra.gmra.mxu1 %vm470_vm2, %v5794_v33 }
 0xf72   : > { %10768 = vmatprep.mubr.msk.f32.mxu1 %vm470_vm2, %v5795_v50  ;;  %10788 = vmatpush3.msra.mxu1 %v9108_v25 }
 0xf73   : > { %10789 = vmatprep.subr.mxu1 %v9107_v19 }
 0xf74   : > { %10790 = vmatpush3.msra.mxu1 %v9107_v19 }
 0xf75   : > { %10769 = vmatmul.mubr.msk.f32.gmra.mxu1 %vm470_vm2, %v5796_v43  ;;  %10807 = vmatprep.subr.mxu1 %v14052_v29 }
 0xf76   : > { %10771 = vmatprep.mubr.msk.f32.mxu1 %vm470_vm2, %v13479_v45 }
 0xf79   : > { %10772 = vmatmul.mubr.msk.f32.gmra.mxu1 %vm470_vm2, %v13477_v54 }
0x1018   : > { %v13579_v53 = vpop.f32.mrf.mxu1 }
0x101a   : > { %v10705_v12 = vpop.f32.mrf.mxu1 }
0x1025   : > { %v10720_v58 = vpop.f32.mrf.mxu0  ;;  %v10741_v10 = vpop.f32.mrf.mxu1 }
0x1027   : > { %v5969_v28 = vpop.f32.mrf.mxu0  ;;  %v6088_v38 = vpop.f32.mrf.mxu1 }
0x1028   : > { %10752 = vmatprep.mubr.msk.f32.mxu0 %vm470_vm2, %v5969_v28 }
0x1029   : > { %v10723_v32 = vpop.f32.mrf.mxu0  ;;  %10753 = vmatmul.mubr.msk.f32.vlgmr.msra.gmra.mxu0 %vm470_vm2, %v10720_v58  ;;  %v10744_v35 = vpop.f32.mrf.mxu1 }
0x102a   : > { %10775 = vmatpush3.msra.mxu0 %v9098_v49 }
0x102b   : > { %v5979_v56 = vpop.f32.mrf.mxu0  ;;  %10776 = vmatprep.subr.mxu0 %v9097_v52  ;;  %v6098_v61 = vpop.f32.mrf.mxu1 }
0x102c   : > { %10755 = vmatprep.mubr.msk.f32.mxu0 %vm470_vm2, %v5979_v56  ;;  %10777 = vmatpush3.msra.mxu0 %v9097_v52 }
0x102d   : > { %v10726_v7 = vpop.f32.mrf.mxu0  ;;  %10756 = vmatmul.mubr.msk.f32.gmra.mxu0 %vm470_vm2, %v10723_v32  ;;  %v10747_v40 = vpop.f32.mrf.mxu1  ;;  %10797 = vmatprep.subr.mxu0 %v9106_v37 }
0x102f   : > { %v5989_v46 = vpop.f32.mrf.mxu0  ;;  %v6108_v42 = vpop.f32.mrf.mxu1 }
0x1030   : > { %10758 = vmatprep.mubr.msk.f32.mxu0 %vm470_vm2, %v5989_v46 }
0x1031   : > { %10759 = vmatmul.mubr.msk.f32.gmra.mxu0 %vm470_vm2, %v10726_v7  ;;  %v10767_v47 = vpop.f32.mrf.mxu1 }
0x1032   : > { %10778 = vmatprep.mubr.msk.f32.mxu0 %vm470_vm2, %v6088_v38 }
0x1033   : > { %v6315_v5 = vpop.f32.mrf.mxu1 }
0x1035   : > { %10779 = vmatmul.mubr.msk.f32.vlgmr.msra.gmra.mxu0 %vm470_vm2, %v10741_v10  ;;  %v10770_v3 = vpop.f32.mrf.mxu1 }
0x1036   : > { %10781 = vmatprep.mubr.msk.f32.mxu0 %vm470_vm2, %v6098_v61  ;;  %10798 = vmatpush3.msra.mxu0 %v9106_v37  ;;  %v6490_v61 = vpop.permute.xlu0 %6489 }
0x1037   : > { %10799 = vmatprep.subr.mxu0 %v9105_v18  ;;  %v6325_v13 = vpop.f32.mrf.mxu1 }
0x1038   : > { %10800 = vmatpush3.msra.mxu0 %v9105_v18 }
0x1039   : > { %10782 = vmatmul.mubr.msk.f32.gmra.mxu0 %vm470_vm2, %v10744_v35  ;;  %v10773_v48 = vpop.f32.mrf.mxu1 }
0x103a   : > { %10784 = vmatprep.mubr.msk.f32.mxu0 %vm470_vm2, %v6108_v42 }
0x103b   : > { %v6335_v12 = vpop.f32.mrf.mxu1 }
0x103d   : > { %10785 = vmatmul.mubr.msk.f32.gmra.mxu0 %vm470_vm2, %v10747_v40 }
0x10e9   : > { %v10754_v30 = vpop.f32.mrf.mxu0 }
0x10ea   : > { %v6321_v63 = vadd.f32 %v10767_v47, %v10754_v30 }
0x10eb   : > { %v6205_v54 = vpop.f32.mrf.mxu0 }
0x10ec   : > { %v6316_v9 = vadd.f32 %v6315_v5, %v6205_v54 }
0x10ed   : > { %v10757_v39 = vpop.f32.mrf.mxu0 }
0x10ee   : > { %v6331_v0 = vadd.f32 %v10770_v3, %v10757_v39  ;;  %v9124_v3 = vld [vmem:[%s14034_s3 + $0x208] sm:$0xff] }
0x10ef   : > { %v6215_v45 = vpop.f32.mrf.mxu0 }
0x10f0   : > { %v6326_v34 = vadd.f32 %v6325_v13, %v6215_v45 }
0x10f1   : > { %v10760_v8 = vpop.f32.mrf.mxu0 }
0x10f2   : > { %v6341_v58 = vadd.f32 %v10773_v48, %v10760_v8 }
0x10f3   : > { %v6225_v43 = vpop.f32.mrf.mxu0 }
0x10f4   : > { %v6336_v38 = vadd.f32 %v6335_v12, %v6225_v43 }
0x10f5   : > { %v10780_v50 = vpop.f32.mrf.mxu0 }
0x10f6   : > { %v6460_v33 = vadd.f32 %v10780_v50, %v6321_v63  ;;  %v13646_v63 = vld [vmem:[%s14035_s4 + $0x5] ss:$0 sm:$0xff] }
0x10f7   : > { %v6430_v21 = vpop.f32.mrf.mxu0 }
0x10f8   : > { %v6469_v24 = vadd.f32 %v6466_v15, %v6460_v33  ;;  %v6459_v17 = vadd.f32 %v6430_v21, %v6316_v9 }
0x10f9   : > { %v10783_v16 = vpop.f32.mrf.mxu0 }
0x10fa   : > { %v6468_v26 = vadd.f32 %v6466_v15, %v6459_v17  ;;  %v6462_v60 = vadd.f32 %v10783_v16, %v6331_v0  ;;  %v6475_v27 = vadd.f32 %v6469_v24, %v13395_v36 }
0x10fb   : > { %v6440_v49 = vpop.f32.mrf.mxu0 }
0x10fc   : > { %v6474_v10 = vadd.f32 %v6468_v26, %v13390_v57  ;;  %v6471_v28 = vadd.f32 %v6466_v15, %v6462_v60  ;;  %v6461_v52 = vadd.f32 %v6440_v49, %v6326_v34  ;;  %v6484_v35 = vmul.f32 %v6481_v14, %v6475_v27 }
0x10fd   : > { %v10786_v32 = vpop.f32.mrf.mxu0 }
0x10fe   : > { %v6477_v56 = vadd.f32 %v6471_v28, %v13410_v22  ;;  %v6470_v7 = vadd.f32 %v6466_v15, %v6461_v52  ;;  %v6464_v46 = vadd.f32 %v10786_v32, %v6341_v58  ;;  %v6483_v42 = vmul.f32 %v6481_v14, %v6474_v10 }
0x10ff   : > { %v6450_v40 = vpop.f32.mrf.mxu0  ;;  %v6493_v57 = vadd.f32 %v6490_v61, %v6484_v35  ;;  %v9123_v35 = vld [vmem:[%s14034_s3 + $0x200] sm:$0xff] }
0x1100   : > { %v6476_v36 = vadd.f32 %v6470_v7, %v13405_v59  ;;  %v6473_v37 = vadd.f32 %v6466_v15, %v6464_v46  ;;  %v6463_v18 = vadd.f32 %v6450_v40, %v6336_v38  ;;  %v6486_v25 = vmul.f32 %v6481_v14, %v6477_v56 }
0x1101   : > { %v6492_v19 = vadd.f32 %v6490_v61, %v6483_v42 }
0x1102   : > { %v6485_v47 = vmul.f32 %v6481_v14, %v6476_v36  ;;  %v6479_v30 = vadd.f32 %v6473_v37, %v13421_v41  ;;  %v6472_v54 = vadd.f32 %v6466_v15, %v6463_v18  ;;  %v13619_v39 = vadd.f32 %v6490_v61, %v6486_v25 }
0x1103   : > { %10801 = vmatprep.mubr.msk.f32.mxu0 %vm470_vm2, %v6492_v19 }
0x1104   : > { %v6478_v22 = vadd.f32 %v6472_v54, %v13417_v11  ;;  %10802 = vmatmul.mubr.msk.f32.vlgmr.msra.gmra.mxu0 %vm470_vm2, %v6493_v57  ;;  %v13617_v5 = vadd.f32 %v6490_v61, %v6485_v47  ;;  %v6488_v59 = vmul.f32 %v6481_v14, %v6479_v30 }
0x1106   : > { %v6487_v45 = vmul.f32 %v6481_v14, %v6478_v22  ;;  %10791 = vmatprep.mubr.msk.f32.mxu1 %vm470_vm2, %v13617_v5  ;;  %10804 = vmatprep.mubr.msk.f32.mxu0 %vm470_vm2, %v13617_v5  ;;  %v13631_v41 = vadd.f32 %v6490_v61, %v6488_v59 }
0x1107   : > { %10792 = vmatmul.mubr.msk.f32.vlgmr.msra.gmra.mxu1 %vm470_vm2, %v13619_v39 }
0x1108   : > { %10805 = vmatmul.mubr.msk.f32.gmra.mxu0 %vm470_vm2, %v13619_v39  ;;  %v13629_v11 = vadd.f32 %v6490_v61, %v6487_v45  ;;  %10808 = vmatpush3.msra.mxu1 %v9124_v3  ;;  %v9139_v3 = vld [vmem:[%s14034_s3 + $0x218] sm:$0xff] }
0x1109   : > { %10809 = vmatprep.subr.mxu1 %v14052_v29  ;;  %10822 = vmatprep.mubr.msk.f32.mxu0 %vm6834_vm8, %v13461_v20 }
0x110a   : > { %10794 = vmatprep.mubr.msk.f32.mxu1 %vm470_vm2, %v13629_v11  ;;  %10810 = vmatpush3.msra.mxu1 %v9123_v35 }
0x110b   : > { %10795 = vmatmul.mubr.msk.f32.gmra.mxu1 %vm470_vm2, %v13631_v41 }
0x110c   : > { %10811 = vmatprep.mubr.msk.f32.mxu1 %vm11452_vm0, %v14052_v29 }
0x11c4   : > { %v10803_v8 = vpop.f32.mrf.mxu0 }
0x11c6   : > { %v6672_v43 = vpop.f32.mrf.mxu0 }
0x11c7   : > { %v10793_v13 = vpop.f32.mrf.mxu1 }
0x11c8   : > { %v6678_v50 = vadd.f32 %v10803_v8, %v10793_v13  ;;  %v10806_v15 = vpop.f32.mrf.mxu0  ;;  %v9138_v8 = vld [vmem:[%s14034_s3 + $0x210] sm:$0xff] }
0x11c9   : > { %v6581_v9 = vpop.f32.mrf.mxu1 }
0x11ca   : > { %v6700_v33 = vadd.f32 %v13646_v63, %v6678_v50  ;;  %v6673_v21 = vadd.f32 %v6672_v43, %v6581_v9  ;;  %v6682_v16 = vpop.f32.mrf.mxu0  ;;  %v9151_v43 = vld [vmem:[%s14034_s3 + $0x238] sm:$0xff] }
0x11cb   : > { %v10796_v48 = vpop.f32.mrf.mxu1 }
0x11cc   : > { %v6699_v0 = vadd.f32 %v13646_v63, %v6673_v21  ;;  %v6688_v24 = vadd.f32 %v10806_v15, %v10796_v48  ;;  %v9120_v17 = vmul.f32 -1.442695, %v6700_v33  ;;  %v9150_v21 = vld [vmem:[%s14034_s3 + $0x230] sm:$0xff] }
0x11cd   : > { %v6591_v34 = vpop.f32.mrf.mxu1 }
0x11ce   : > { %v6702_v26 = vadd.f32 %v13646_v63, %v6688_v24  ;;  %v6683_v60 = vadd.f32 %v6682_v16, %v6591_v34  ;;  %v9119_v27 = vmul.f32 -1.442695, %v6699_v0  ;;  %11336 = vpow2.f32 %v9120_v17  ;;  %v9159_v34 = vld [vmem:[%s14034_s3 + $0x258] sm:$0xff] }
0x11d0   : > { %v9122_v14 = vmul.f32 -1.442695, %v6702_v26  ;;  %v6701_v49 = vadd.f32 %v13646_v63, %v6683_v60  ;;  %v9157_v60 = vld [vmem:[%s14034_s3 + $0x248] sm:$0xff] }
0x11d2   : > { %11338 = vpow2.f32 %v9122_v14  ;;  %v9121_v12 = vmul.f32 -1.442695, %v6701_v49 }
0x11d3   : > { %11340 = vpow2.f32 %v9119_v27  ;;  %v9156_v27 = vld [vmem:[%s14034_s3 + $0x240] sm:$0xff] }
0x11d4   : > { %11342 = vpow2.f32 %v9121_v12 }
0x11db   : > { %v11337_v58 = vpop.eup %11336 }
0x11dc   : > { %v6720_v32 = vadd.f32 1.0, %v11337_v58 }
0x11df   : > { %v11339_v10 = vpop.eup %11338 }
0x11e0   : > { %v11341_v28 = vpop.eup %11340  ;;  %v6722_v52 = vadd.f32 1.0, %v11339_v10 }
0x11e1   : > { %v11343_v38 = vpop.eup %11342  ;;  %v6719_v7 = vadd.f32 1.0, %v11341_v28 }
0x11e2   : > { %11344 = vrcp.f32 %v6722_v52  ;;  %v6721_v56 = vadd.f32 1.0, %v11343_v38 }
0x11e4   : > { %11346 = vrcp.f32 %v6721_v56 }
0x11e5   : > { %11348 = vrcp.f32 %v6720_v32 }
0x11e6   : > { %11350 = vrcp.f32 %v6719_v7 }
0x11e7   : > { %11352 = vtanh.f32 %v6702_v26  ;;  %v9158_v26 = vld [vmem:[%s14034_s3 + $0x250] sm:$0xff] }
0x11e8   : > { %11354 = vtanh.f32 %v6701_v49 }
0x11e9   : > { %11356 = vtanh.f32 %v6700_v33 }
0x11ea   : > { %11358 = vtanh.f32 %v6699_v0 }
0x11ef   : > { %v11345_v46 = vpop.eup %11344 }
0x11f0   : > { %6741 = vrot.lane.b32.xlu1 %v11345_v46, %s11453_s22 }
0x11f1   : > { %v11347_v61 = vpop.eup %11346 }
0x11f2   : > { %6739 = vrot.lane.b32.xlu0 %v11347_v61, %s11453_s22  ;;  %v11349_v40 = vpop.eup %11348 }
0x11f3   : > { %v11351_v42 = vpop.eup %11350 }
0x11f4   : > { %6737 = vrot.lane.b32.xlu1 %v11349_v40, %s11453_s22  ;;  %v11353_v36 = vpop.eup %11352 }
0x11f5   : > { %v11355_v25 = vpop.eup %11354 }
0x11f6   : > { %6735 = vrot.lane.b32.xlu0 %v11351_v42, %s11453_s22  ;;  %v11357_v57 = vpop.eup %11356 }
0x11f7   : > { %v11359_v22 = vpop.eup %11358 }
0x11f8   : > { %7331 = vrot.lane.b32.xlu1 %v13646_v63, %s11454_s15 }
0x11fa   : > { %7342 = vrot.lane.b32.xlu0 %v13646_v63, %s11455_s16 }
0x11fc   : > { %7349 = vrot.lane.b32.xlu1 %v13646_v63, %s11456_s17 }
0x1262   : > { %v6742_v37 = vpop.permute.xlu1 %6741 }
0x1263   : > { %v6750_v18 = vmul.f32 %v11353_v36, %v6742_v37 }
0x1264   : > { %v6740_v19 = vpop.permute.xlu0 %6739 }
0x1265   : > { %v6749_v47 = vmul.f32 %v11355_v25, %v6740_v19  ;;  %10812 = vmatmul.mubr.msk.f32.vlgmr.msra.gmra.mxu1 %vm470_vm2, %v6750_v18  ;;  %10814 = vmatprep.subr.mxu0 %v6750_v18 }
0x1266   : > { %10828 = vmatprep.subr.mxu1 %v6750_v18  ;;  %v6738_v30 = vpop.permute.xlu1 %6737  ;;  %10815 = vmatpush3.msra.mxu0 %v6750_v18 }
0x1267   : > { %v6748_v54 = vmul.f32 %v11357_v57, %v6738_v30  ;;  %10829 = vmatpush3.msra.mxu1 %v6750_v18  ;;  %10816 = vmatprep.subr.mxu0 %v6749_v47 }
0x1268   : > { %10830 = vmatprep.subr.mxu1 %v6749_v47  ;;  %10817 = vmatpush3.msra.mxu0 %v6749_v47  ;;  %v6736_v59 = vpop.permute.xlu0 %6735 }
0x1269   : > { %10831 = vmatpush3.msra.mxu1 %v6749_v47  ;;  %v6747_v45 = vmul.f32 %v11359_v22, %v6736_v59  ;;  %10818 = vmatprep.subr.mxu0 %v6748_v54 }
0x126a   : > { %10832 = vmatprep.subr.mxu1 %v6748_v54  ;;  %10819 = vmatpush3.msra.mxu0 %v6748_v54  ;;  %v7332_v56 = vpop.permute.xlu1 %7331 }
0x126b   : > { %10833 = vmatpush3.msra.mxu1 %v6748_v54  ;;  %10820 = vmatprep.subr.mxu0 %v6747_v45 }
0x126c   : > { %10834 = vmatprep.subr.mxu1 %v6747_v45  ;;  %10821 = vmatpush3.msra.mxu0 %v6747_v45 }
0x126d   : > { %10835 = vmatpush3.msra.mxu1 %v6747_v45  ;;  %10836 = vmatprep.mubr.msk.f32.mxu1 %vm6834_vm8, %v13494_v55 }
0x126e   : > { %10823 = vmatmul.mubr.msk.f32.vlgmr.msra.gmra.mxu0 %vm6834_vm8, %v13499_v1  ;;  %10837 = vmatmul.mubr.msk.f32.vlgmr.msra.gmra.mxu1 %vm6834_vm8, %v13504_v6 }
0x126f   : > { %10825 = vmatprep.mubr.msk.f32.mxu0 %vm6834_vm8, %v13509_v31  ;;  %10839 = vmatprep.mubr.msk.f32.mxu1 %vm6834_vm8, %v13514_v62 }
0x1270   : > { %10852 = vmatprep.subr.mxu1 %v9139_v3 }
0x1271   : > { %10853 = vmatpush3.msra.mxu1 %v9139_v3 }
0x1272   : > { %10826 = vmatmul.mubr.msk.f32.gmra.mxu0 %vm6834_vm8, %v13532_v44  ;;  %10840 = vmatmul.mubr.msk.f32.gmra.mxu1 %vm6834_vm8, %v13537_v23  ;;  %v9141_v44 = vld [vmem:[%s14034_s3 + $0x228] sm:$0xff]  ;;  %v9140_v23 = vld [vmem:[%s14034_s3 + $0x220] sm:$0xff] }
0x1273   : > { %10856 = vmatprep.mubr.msk.f32.mxu1 %vm470_vm2, %v6747_v45  ;;  %10854 = vmatprep.subr.mxu1 %v9138_v8 }
0x1274   : > { %10855 = vmatpush3.msra.mxu1 %v9138_v8  ;;  %10842 = vmatprep.subr.mxu0 %v9141_v44 }
0x1275   : > { %10872 = vmatprep.subr.mxu1 %v14052_v29  ;;  %10843 = vmatpush3.msra.mxu0 %v9141_v44 }
0x1276   : > { %10857 = vmatmul.mubr.msk.f32.vlgmr.msra.gmra.mxu1 %vm470_vm2, %v6748_v54  ;;  %10844 = vmatprep.subr.mxu0 %v9140_v23  ;;  %v7350_v54 = vpop.permute.xlu1 %7349 }
0x1277   : > { %10859 = vmatprep.mubr.msk.f32.mxu1 %vm470_vm2, %v6749_v47  ;;  %10845 = vmatpush3.msra.mxu0 %v9140_v23 }
0x1278   : > { %10862 = vmatprep.subr.mxu0 %v9151_v43  ;;  %10873 = vmatpush3.msra.mxu1 %v9159_v34 }
0x1279   : > { %10874 = vmatprep.subr.mxu1 %v14052_v29 }
0x127a   : > { %10860 = vmatmul.mubr.msk.f32.gmra.mxu1 %vm470_vm2, %v6750_v18  ;;  %v7343_v18 = vpop.permute.xlu0 %7342 }
0x127b   : > { %10876 = vmatprep.mubr.msk.f32.mxu1 %vm11452_vm0, %v14052_v29  ;;  %10875 = vmatpush3.msra.mxu1 %v9158_v26 }
0x127c   : > { %10898 = vmatprep.subr.mxu1 %v14052_v29 }
0x1325   : > { %v13704_v13 = vpop.f32.mrf.mxu1 }
0x1327   : > { %v10813_v50 = vpop.f32.mrf.mxu1 }
0x132e   : > { %v10824_v15 = vpop.f32.mrf.mxu0  ;;  %v10838_v9 = vpop.f32.mrf.mxu1 }
0x1330   : > { %v6913_v33 = vpop.f32.mrf.mxu0  ;;  %v7014_v48 = vpop.f32.mrf.mxu1 }
0x1331   : > { %10846 = vmatprep.mubr.msk.f32.mxu0 %vm470_vm2, %v6913_v33 }
0x1332   : > { %v10827_v0 = vpop.f32.mrf.mxu0  ;;  %10847 = vmatmul.mubr.msk.f32.vlgmr.msra.gmra.mxu0 %vm470_vm2, %v10824_v15  ;;  %v10841_v17 = vpop.f32.mrf.mxu1 }
0x1333   : > { %10863 = vmatpush3.msra.mxu0 %v9151_v43 }
0x1334   : > { %v6923_v24 = vpop.f32.mrf.mxu0  ;;  %10864 = vmatprep.subr.mxu0 %v9150_v21  ;;  %v7024_v16 = vpop.f32.mrf.mxu1 }
0x1335   : > { %10849 = vmatprep.mubr.msk.f32.mxu0 %vm470_vm2, %v6923_v24  ;;  %10865 = vmatpush3.msra.mxu0 %v9150_v21  ;;  %v9167_v24 = vld [vmem:[%s14035_s4 + $0x6] ss:$0 sm:$0xff] }
0x1336   : > { %10850 = vmatmul.mubr.msk.f32.gmra.mxu0 %vm470_vm2, %v10827_v0  ;;  %10885 = vmatprep.subr.mxu0 %v14052_v29  ;;  %v10858_v14 = vpop.f32.mrf.mxu1 }
0x1337   : > { %10866 = vmatprep.mubr.msk.f32.mxu0 %vm470_vm2, %v7014_v48 }
0x1338   : > { %v7209_v58 = vpop.f32.mrf.mxu1 }
0x133a   : > { %10867 = vmatmul.mubr.msk.f32.vlgmr.msra.gmra.mxu0 %vm470_vm2, %v10838_v9  ;;  %v10861_v52 = vpop.f32.mrf.mxu1 }
0x133b   : > { %10869 = vmatprep.mubr.msk.f32.mxu0 %vm470_vm2, %v7024_v16  ;;  %10886 = vmatpush3.msra.mxu0 %v9157_v60 }
0x133c   : > { %10887 = vmatprep.subr.mxu0 %v14052_v29  ;;  %v7219_v61 = vpop.f32.mrf.mxu1 }
0x133d   : > { %10888 = vmatpush3.msra.mxu0 %v9156_v27 }
0x133e   : > { %10870 = vmatmul.mubr.msk.f32.gmra.mxu0 %vm470_vm2, %v10841_v17  ;;  %10905 = vmatprep.subr.mxu0 %v14052_v29 }
0x133f   : > { %10889 = vmatprep.mubr.msk.f32.mxu0 %vm11452_vm0, %v14052_v29 }
0x13f2   : > { %v10848_v49 = vpop.f32.mrf.mxu0 }
0x13f3   : > { %v7215_v38 = vadd.f32 %v10858_v14, %v10848_v49 }
0x13f4   : > { %v7115_v12 = vpop.f32.mrf.mxu0 }
0x13f5   : > { %v7210_v35 = vadd.f32 %v7209_v58, %v7115_v12 }
0x13f6   : > { %v10851_v10 = vpop.f32.mrf.mxu0 }
0x13f7   : > { %v7225_v40 = vadd.f32 %v10861_v52, %v10851_v10 }
0x13f8   : > { %v7125_v28 = vpop.f32.mrf.mxu0 }
0x13f9   : > { %v7220_v25 = vadd.f32 %v7219_v61, %v7125_v28 }
0x13fa   : > { %v10868_v32 = vpop.f32.mrf.mxu0 }
0x13fb   : > { %v7328_v7 = vadd.f32 %v10868_v32, %v7215_v38 }
0x13fc   : > { %v7308_v46 = vpop.f32.mrf.mxu0 }
0x13fd   : > { %v7335_v42 = vadd.f32 %v7332_v56, %v7328_v7  ;;  %v7327_v36 = vadd.f32 %v7308_v46, %v7210_v35 }
0x13fe   : > { %v10871_v37 = vpop.f32.mrf.mxu0 }
0x13ff   : > { %v7334_v19 = vadd.f32 %v7332_v56, %v7327_v36  ;;  %v7330_v47 = vadd.f32 %v10871_v37, %v7225_v40  ;;  %v7339_v57 = vadd.f32 %v7335_v42, %v13619_v39  ;;  %v9172_v40 = vld [vmem:[%s14034_s3 + $0x268] sm:$0xff]  ;;  %v9171_v37 = vld [vmem:[%s14034_s3 + $0x260] sm:$0xff] }
0x1400   : > { %v7318_v30 = vpop.f32.mrf.mxu0 }
0x1401   : > { %v7338_v22 = vadd.f32 %v7334_v19, %v13617_v5  ;;  %v7337_v59 = vadd.f32 %v7332_v56, %v7330_v47  ;;  %v7346_v45 = vmul.f32 %v7343_v18, %v7339_v57  ;;  %v7329_v3 = vadd.f32 %v7318_v30, %v7220_v25  ;;  %v11384_v47 = vld [vmem:[%s14035_s4] ss:$0 sm:$0xff]  ;;  %v11385_v57 = vld [vmem:[%s14035_s4 + $0x2] ss:$0 sm:$0xff]  ;;  %v11386_v30 = vld [vmem:[%s14035_s4 + $0x4] ss:$0 sm:$0xff] }
0x1403   : > { %v7345_v8 = vmul.f32 %v7343_v18, %v7338_v22  ;;  %v7336_v44 = vadd.f32 %v7332_v56, %v7329_v3  ;;  %v13738_v23 = vadd.f32 %v7350_v54, %v7346_v45  ;;  %v7341_v43 = vadd.f32 %v7337_v59, %v13631_v41 }
0x1405   : > { %v7340_v50 = vadd.f32 %v7336_v44, %v13629_v11  ;;  %v7352_v15 = vadd.f32 %v7350_v54, %v7345_v8  ;;  %10877 = vmatmul.mubr.msk.f32.vlgmr.msra.gmra.mxu1 %vm470_vm2, %v13738_v23  ;;  %v7348_v5 = vmul.f32 %v7343_v18, %v7341_v43 }
0x1406   : > { %10879 = vmatprep.mubr.msk.f32.mxu1 %vm11452_vm0, %v14052_v29  ;;  %10899 = vmatpush3.msra.mxu1 %v9172_v40 }
0x1407   : > { %v7347_v39 = vmul.f32 %v7343_v18, %v7340_v50  ;;  %10890 = vmatmul.mubr.msk.f32.vlgmr.msra.gmra.mxu0 %vm470_vm2, %v7352_v15  ;;  %v13756_v11 = vadd.f32 %v7350_v54, %v7348_v5  ;;  %10900 = vmatprep.subr.mxu1 %v14052_v29  ;;  %v9184_v15 = vld [vmem:[%s14034_s3 + $0x278] sm:$0xff] }
0x1408   : > { %10892 = vmatprep.mubr.msk.f32.mxu0 %vm11452_vm0, %v14052_v29  ;;  %10901 = vmatpush3.msra.mxu1 %v9171_v37 }
0x1409   : > { %v7354_v9 = vadd.f32 %v7350_v54, %v7347_v39  ;;  %10920 = vmatprep.subr.mxu1 %v14052_v29 }
0x140b   : > { %10880 = vmatmul.mubr.msk.f32.gmra.mxu1 %vm470_vm2, %v7354_v9  ;;  %10893 = vmatmul.mubr.msk.f32.gmra.mxu0 %vm470_vm2, %v13738_v23 }
0x140c   : > { %10882 = vmatprep.mubr.msk.f32.mxu1 %vm11452_vm0, %v14052_v29  ;;  %10895 = vmatprep.mubr.msk.f32.mxu0 %vm11452_vm0, %v14052_v29 }
0x140f   : > { %10883 = vmatmul.mubr.msk.f32.gmra.mxu1 %vm470_vm2, %v13756_v11  ;;  %10896 = vmatmul.mubr.msk.f32.gmra.mxu0 %vm470_vm2, %v7354_v9  ;;  %v9193_v9 = vld [vmem:[%s14034_s3 + $0x290] sm:$0xff] }
0x1410   : > { %10902 = vmatprep.mubr.msk.f32.mxu1 %vm11452_vm0, %v14052_v29  ;;  %10911 = vmatprep.mubr.msk.f32.mxu0 %vm11452_vm0, %v14052_v29 }
0x14c5   : > { %v7436_v41 = vpop.f32.mrf.mxu1 }
0x14c7   : > { %v10878_v33 = vpop.f32.mrf.mxu1  ;;  %v7519_v21 = vpop.f32.mrf.mxu0 }
0x14c8   : > { %v7520_v48 = vadd.f32 %v7519_v21, %v7436_v41 }
0x14c9   : > { %v10891_v0 = vpop.f32.mrf.mxu0 }
0x14ca   : > { %v7541_v26 = vadd.f32 %v9167_v24, %v7520_v48 }
0x14cb   : > { %v7441_v17 = vpop.f32.mrf.mxu1  ;;  %v7524_v16 = vpop.f32.mrf.mxu0 }
0x14cc   : > { %v7525_v34 = vadd.f32 %v7524_v16, %v7441_v17  ;;  %v9168_v28 = vmul.f32 -1.442695, %v7541_v26 }
0x14cd   : > { %v10881_v60 = vpop.f32.mrf.mxu1  ;;  %v10894_v27 = vpop.f32.mrf.mxu0 }
0x14ce   : > { %v7542_v14 = vadd.f32 %v9167_v24, %v7525_v34 }
0x14cf   : > { %v7446_v49 = vpop.f32.mrf.mxu1  ;;  %v7529_v12 = vpop.f32.mrf.mxu0 }
0x14d0   : > { %v9169_v58 = vmul.f32 -1.442695, %v7542_v14  ;;  %v7530_v10 = vadd.f32 %v7529_v12, %v7446_v49 }
0x14d1   : > { %v10884_v52 = vpop.f32.mrf.mxu1  ;;  %v10897_v38 = vpop.f32.mrf.mxu0 }
0x14d2   : > { %11360 = vpow2.f32 %v9169_v58  ;;  %v7543_v32 = vadd.f32 %v9167_v24, %v7530_v10  ;;  %v9201_v10 = vld [vmem:[%s14034_s3 + $0x2b8] sm:$0xff] }
0x14d3   : > { %11362 = vpow2.f32 %v9168_v28  ;;  %v9200_v28 = vld [vmem:[%s14034_s3 + $0x2b0] sm:$0xff] }
0x14d4   : > { %v9170_v56 = vmul.f32 -1.442695, %v7543_v32 }
0x14d6   : > { %11364 = vpow2.f32 %v9170_v56 }
0x14df   : > { %v11361_v35 = vpop.eup %11360 }
0x14e0   : > { %v7557_v7 = vadd.f32 1.0, %v11361_v35  ;;  %v11363_v46 = vpop.eup %11362 }
0x14e1   : > { %v7556_v36 = vadd.f32 1.0, %v11363_v46 }
0x14e2   : > { %11366 = vrcp.f32 %v7557_v7 }
0x14e3   : > { %v11365_v61 = vpop.eup %11364 }
0x14e4   : > { %v7558_v42 = vadd.f32 1.0, %v11365_v61 }
0x14e6   : > { %11368 = vrcp.f32 %v7558_v42 }
0x14e7   : > { %11370 = vrcp.f32 %v7556_v36 }
0x14e8   : > { %11372 = vtanh.f32 %v7543_v32 }
0x14e9   : > { %11374 = vtanh.f32 %v7542_v14 }
0x14ea   : > { %11376 = vtanh.f32 %v7541_v26 }
0x14ef   : > { %v11367_v18 = vpop.eup %11366 }
0x14f0   : > { %7570 = vrot.lane.b32.xlu1 %v11367_v18, %s11453_s22 }
0x14f3   : > { %v11369_v25 = vpop.eup %11368 }
0x14f4   : > { %8113 = vrot.lane.b32.xlu1 %v9167_v24, %s11454_s15  ;;  %7572 = vrot.lane.b32.xlu0 %v11369_v25, %s11453_s22  ;;  %v11371_v19 = vpop.eup %11370 }
0x14f5   : > { %v11373_v54 = vpop.eup %11372 }
0x14f6   : > { %v11375_v3 = vpop.eup %11374 }
0x14f7   : > { %v11377_v44 = vpop.eup %11376 }
0x14f8   : > { %8125 = vrot.lane.b32.xlu1 %v9167_v24, %s11456_s17  ;;  %7568 = vrot.lane.b32.xlu0 %v11371_v19, %s11453_s22 }
0x14fc   : > { %925 = vrot.lane.b32.xlu1 %v11384_v47, %s11457_s13  ;;  %8120 = vrot.lane.b32.xlu0 %v9167_v24, %s11455_s16  ;;  %s8555_s16 = scalar_lea.sflag [#allocation3], %s269_s23 }
0x1500   : > { %3582 = vrot.lane.b32.xlu1 %v11385_v57, %s11457_s13 }
0x1504   : > { %5801 = vrot.lane.b32.xlu1 %v11386_v30, %s11457_s13 }
0x1508   : > { %7582 = vrot.lane.b32.xlu1 %v9167_v24, %s11457_s13 }
0x1562   : > { %v7571_v22 = vpop.permute.xlu1 %7570 }
0x1563   : > { %v7578_v8 = vmul.f32 %v11375_v3, %v7571_v22 }
0x1566   : > { %v7573_v59 = vpop.permute.xlu0 %7572  ;;  %v8114_v25 = vpop.permute.xlu1 %8113 }
0x1567   : > { %v7579_v45 = vmul.f32 %v11373_v54, %v7573_v59 }
0x1569   : > { %10903 = vmatmul.mubr.msk.f32.vlgmr.msra.gmra.mxu1 %vm470_vm2, %v7579_v45  ;;  %10906 = vmatpush3.msra.mxu0 %v7579_v45 }
0x156a   : > { %10921 = vmatpush3.msra.mxu1 %v7579_v45  ;;  %v7569_v43 = vpop.permute.xlu0 %7568  ;;  %10907 = vmatprep.subr.mxu0 %v14052_v29 }
0x156b   : > { %v7577_v50 = vmul.f32 %v11377_v44, %v7569_v43  ;;  %10922 = vmatprep.subr.mxu1 %v14052_v29  ;;  %10908 = vmatpush3.msra.mxu0 %v7578_v8 }
0x156c   : > { %10923 = vmatpush3.msra.mxu1 %v7578_v8  ;;  %10909 = vmatprep.subr.mxu0 %v14052_v29 }
0x156d   : > { %10924 = vmatprep.subr.mxu1 %v14052_v29  ;;  %10910 = vmatpush3.msra.mxu0 %v7577_v50 }
0x156e   : > { %10925 = vmatpush3.msra.mxu1 %v7577_v50  ;;  %10926 = vmatprep.mubr.msk.f32.mxu1 %vm11452_vm0, %v14052_v29 }
0x156f   : > { %10912 = vmatmul.mubr.msk.f32.vlgmr.msra.gmra.mxu0 %vm7662_vm9, %v13461_v20  ;;  %10927 = vmatmul.mubr.msk.f32.vlgmr.msra.gmra.mxu1 %vm7662_vm9, %v13494_v55  ;;  %v9183_v20 = vld [vmem:[%s14034_s3 + $0x270] sm:$0xff]  ;;  %v9186_v55 = vld [vmem:[%s14034_s3 + $0x288] sm:$0xff] }
0x1570   : > { %10914 = vmatprep.mubr.msk.f32.mxu0 %vm11452_vm0, %v14052_v29  ;;  %10929 = vmatprep.mubr.msk.f32.mxu1 %vm11452_vm0, %v14052_v29 }
0x1571   : > { %10948 = vmatprep.subr.mxu1 %v14052_v29  ;;  %10935 = vmatprep.subr.mxu0 %v14052_v29 }
0x1572   : > { %10949 = vmatpush3.msra.mxu1 %v9184_v15  ;;  %10936 = vmatpush3.msra.mxu0 %v9186_v55  ;;  %v9198_v15 = vld [vmem:[%s14034_s3 + $0x2a0] sm:$0xff] }
0x1573   : > { %10915 = vmatmul.mubr.msk.f32.gmra.mxu0 %vm7662_vm9, %v13499_v1  ;;  %10930 = vmatmul.mubr.msk.f32.gmra.mxu1 %vm7662_vm9, %v13504_v6  ;;  %v9185_v1 = vld [vmem:[%s14034_s3 + $0x280] sm:$0xff] }
0x1574   : > { %10917 = vmatprep.mubr.msk.f32.mxu0 %vm11452_vm0, %v14052_v29  ;;  %10932 = vmatprep.mubr.msk.f32.mxu1 %vm11452_vm0, %v14052_v29 }
0x1575   : > { %10950 = vmatprep.subr.mxu1 %v14052_v29  ;;  %10937 = vmatprep.subr.mxu0 %v14052_v29 }
0x1576   : > { %10951 = vmatpush3.msra.mxu1 %v9183_v20  ;;  %10938 = vmatpush3.msra.mxu0 %v9185_v1 }
0x1577   : > { %10918 = vmatmul.mubr.msk.f32.gmra.mxu0 %vm7662_vm9, %v13509_v31  ;;  %10933 = vmatmul.mubr.msk.f32.gmra.mxu1 %vm7662_vm9, %v13514_v62  ;;  %v9194_v62 = vld [vmem:[%s14034_s3 + $0x298] sm:$0xff] }
0x1578   : > { %10952 = vmatprep.mubr.msk.f32.mxu1 %vm11452_vm0, %v14052_v29  ;;  %10939 = vmatprep.mubr.msk.f32.mxu0 %vm11452_vm0, %v14052_v29 }
0x1579   : > { %10974 = vmatprep.subr.mxu1 %v14052_v29  ;;  %10961 = vmatprep.subr.mxu0 %v14052_v29 }
0x157b   : > { %10953 = vmatmul.mubr.msk.f32.vlgmr.msra.gmra.mxu1 %vm470_vm2, %v7577_v50  ;;  %v9199_v50 = vld [vmem:[%s14034_s3 + $0x2a8] sm:$0xff] }
0x157c   : > { %10955 = vmatprep.mubr.msk.f32.mxu1 %vm11452_vm0, %v14052_v29  ;;  %10975 = vmatpush3.msra.mxu1 %v9201_v10  ;;  %v8468_v10 = vld [vmem:[%s14037_s6 + $0x18] sm:$0xff] }
0x157d   : > { %10976 = vmatprep.subr.mxu1 %v14052_v29 }
0x157e   : > { %10977 = vmatpush3.msra.mxu1 %v9200_v28 }
0x157f   : > { %10956 = vmatmul.mubr.msk.f32.gmra.mxu1 %vm470_vm2, %v7578_v8  ;;  %10981 = vmatprep.subr.mxu1 %v14052_v29  ;;  %v8126_v8 = vpop.permute.xlu1 %8125 }
0x1580   : > { %10958 = vmatprep.mubr.msk.f32.mxu1 %vm11452_vm0, %v14052_v29 }
0x1583   : > { %10959 = vmatmul.mubr.msk.f32.gmra.mxu1 %vm470_vm2, %v7579_v45  ;;  %v8121_v45 = vpop.permute.xlu0 %8120  ;;  %v926_v28 = vpop.permute.xlu1 %925 }
0x1584   : > { %10978 = vmatprep.mubr.msk.f32.mxu1 %vm11452_vm0, %v14052_v29 }
0x1629   : > { %v13853_v6 = vpop.f32.mrf.mxu1 }
0x162b   : > { %v10904_v31 = vpop.f32.mrf.mxu1 }
0x162c   : > { %v9205_v31 = vld [vmem:[%s14035_s4 + $0x7] ss:$0 sm:$0xff] }
0x162f   : > { %v7738_v39 = vpop.f32.mrf.mxu0  ;;  %v7830_v5 = vpop.f32.mrf.mxu1 }
0x1630   : > { %10940 = vmatmul.mubr.msk.f32.vlgmr.msra.gmra.mxu0 %vm470_vm2, %v7738_v39 }
0x1631   : > { %v10913_v41 = vpop.f32.mrf.mxu0  ;;  %v10928_v33 = vpop.f32.mrf.mxu1  ;;  %10942 = vmatprep.mubr.msk.f32.mxu0 %vm11452_vm0, %v14052_v29  ;;  %10962 = vmatpush3.msra.mxu0 %v9194_v62 }
0x1632   : > { %10963 = vmatprep.subr.mxu0 %v14052_v29 }
0x1633   : > { %v7743_v21 = vpop.f32.mrf.mxu0  ;;  %v7835_v48 = vpop.f32.mrf.mxu1  ;;  %10964 = vmatpush3.msra.mxu0 %v9193_v9 }
0x1634   : > { %10943 = vmatmul.mubr.msk.f32.gmra.mxu0 %vm470_vm2, %v7743_v21  ;;  %11006 = vmatprep.subr.mxu0 %v14052_v29  ;;  %v9207_v21 = vld [vmem:[%s14034_s3 + $0x2c0] sm:$0xff] }
0x1635   : > { %v10916_v0 = vpop.f32.mrf.mxu0  ;;  %v10931_v24 = vpop.f32.mrf.mxu1  ;;  %10945 = vmatprep.mubr.msk.f32.mxu0 %vm11452_vm0, %v14052_v29 }
0x1636   : > { %v11387_v0 = vld [vmem:[%s14035_s4 + $0x1] ss:$0 sm:$0xff]  ;;  %v11388_v24 = vld [vmem:[%s14035_s4 + $0x3] ss:$0 sm:$0xff] }
0x1637   : > { %v7748_v17 = vpop.f32.mrf.mxu0  ;;  %v7840_v16 = vpop.f32.mrf.mxu1 }
0x1638   : > { %10946 = vmatmul.mubr.msk.f32.gmra.mxu0 %vm470_vm2, %v7748_v17 }
0x1639   : > { %v10934_v34 = vpop.f32.mrf.mxu1  ;;  %10965 = vmatprep.mubr.msk.f32.mxu0 %vm11452_vm0, %v14052_v29  ;;  %v10919_v26 = vpop.f32.mrf.mxu0 }
0x163a   : > { %v8385_v26 = vld [vmem:[%s14036_s5 + $0x18] sm:$0xff] }
0x163b   : > { %v8008_v60 = vpop.f32.mrf.mxu1 }
0x163c   : > { %10966 = vmatmul.mubr.msk.f32.vlgmr.msra.gmra.mxu0 %vm470_vm2, %v7830_v5 }
0x163d   : > { %v10954_v27 = vpop.f32.mrf.mxu1  ;;  %10968 = vmatprep.mubr.msk.f32.mxu0 %vm11452_vm0, %v14052_v29 }
0x163e   : > { %v8382_v27 = vld [vmem:[%s14036_s5] sm:$0xff] }
0x163f   : > { %v8013_v14 = vpop.f32.mrf.mxu1 }
0x1640   : > { %10969 = vmatmul.mubr.msk.f32.gmra.mxu0 %vm470_vm2, %v7835_v48  ;;  %v8472_v14 = vld [vmem:[%s14037_s6 + $0x38] sm:$0xff] }
0x1641   : > { %v10957_v49 = vpop.f32.mrf.mxu1  ;;  %10971 = vmatprep.mubr.msk.f32.mxu0 %vm11452_vm0, %v14052_v29  ;;  %11007 = vmatpush3.msra.mxu0 %v8472_v14 }
0x1642   : > { %v8471_v49 = vld [vmem:[%s14037_s6 + $0x30] sm:$0xff]  ;;  %11008 = vmatprep.subr.mxu0 %v14052_v29 }
0x1643   : > { %v8017_v12 = vpop.f32.mrf.mxu1  ;;  %11009 = vmatpush3.msra.mxu0 %v8471_v49 }
0x1644   : > { %10972 = vmatmul.mubr.msk.f32.gmra.mxu0 %vm470_vm2, %v7840_v16  ;;  %11010 = vmatprep.subr.mxu0 %v14052_v29 }
0x1645   : > { %v10960_v58 = vpop.f32.mrf.mxu1  ;;  %11022 = vmatprep.mubr.msk.f32.mxu0 %vm11452_vm0, %v14052_v29 }
0x1646   : > { %v8469_v58 = vld [vmem:[%s14037_s6 + $0x20] sm:$0xff] }
0x16f0   : > { %v7923_v52 = vpop.f32.mrf.mxu0 }
0x16f1   : > { %v8009_v40 = vadd.f32 %v8008_v60, %v7923_v52  ;;  %v8383_v60 = vld [vmem:[%s14036_s5 + $0x8] sm:$0xff] }
0x16f2   : > { %v10941_v38 = vpop.f32.mrf.mxu0 }
0x16f4   : > { %v7928_v32 = vpop.f32.mrf.mxu0 }
0x16f5   : > { %v14057_v32 = vld [vmem:[#allocation9_spill] sm:$0xff] }
0x16f6   : > { %v10944_v56 = vpop.f32.mrf.mxu0 }
0x16f7   : > { %v998_v56 = vadd.f32 %v14057_v32, %v926_v28 }
0x16f8   : > { %v7932_v35 = vpop.f32.mrf.mxu0 }
0x16f9   : > { %v8018_v18 = vadd.f32 %v8017_v12, %v7932_v35  ;;  %v8470_v12 = vld [vmem:[%s14037_s6 + $0x28] sm:$0xff]  ;;  %v3583_v35 = vpop.permute.xlu1 %3582 }
0x16fa   : > { %v10947_v7 = vpop.f32.mrf.mxu0  ;;  %11011 = vmatpush3.msra.mxu0 %v8470_v12 }
0x16fb   : > { %11012 = vmatprep.subr.mxu0 %v14052_v29 }
0x16fc   : > { %v8098_v46 = vpop.f32.mrf.mxu0  ;;  %11013 = vmatpush3.msra.mxu0 %v8469_v58 }
0x16fd   : > { %v8111_v36 = vadd.f32 %v8098_v46, %v8009_v40  ;;  %11014 = vmatprep.subr.mxu0 %v14052_v29 }
0x16fe   : > { %v10967_v61 = vpop.f32.mrf.mxu0  ;;  %11015 = vmatpush3.msra.mxu0 %v8468_v10 }
0x16ff   : > { %v8116_v47 = vadd.f32 %v8114_v25, %v8111_v36  ;;  %11016 = vmatprep.subr.mxu0 %v14052_v29  ;;  %v3655_v61 = vadd.f32 %v12921_v4, %v3583_v35  ;;  %v5802_v36 = vpop.permute.xlu1 %5801 }
0x1700   : > { %v8103_v42 = vpop.f32.mrf.mxu0 }
0x1701   : > { %v8118_v22 = vadd.f32 %v8116_v47, %v13738_v23 }
0x1702   : > { %v10970_v37 = vpop.f32.mrf.mxu0 }
0x1703   : > { %v8123_v44 = vmul.f32 %v8121_v45, %v8118_v22 }
0x1704   : > { %v8107_v19 = vpop.f32.mrf.mxu0 }
0x1705   : > { %v8112_v57 = vadd.f32 %v8107_v19, %v8018_v18  ;;  %v8128_v23 = vadd.f32 %v8126_v8, %v8123_v44 }
0x1706   : > { %v10973_v30 = vpop.f32.mrf.mxu0 }
0x1707   : > { %v8117_v54 = vadd.f32 %v8114_v25, %v8112_v57  ;;  %v5874_v25 = vadd.f32 %v13579_v53, %v5802_v36  ;;  %v7583_v57 = vpop.permute.xlu1 %7582  ;;  %v8466_v53 = vld [vmem:[%s14037_s6 + $0x8] sm:$0xff] }
0x1709   : > { %v8119_v59 = vadd.f32 %v8117_v54, %v13756_v11  ;;  %v9208_v11 = vld [vmem:[%s14034_s3 + $0x2c8] sm:$0xff]  ;;  %v7655_v54 = vadd.f32 %v13853_v6, %v7583_v57  ;;  %v9210_v6 = vld [vmem:[%s14036_s5 + $0x20] ss:$0 sm:$0xff] }
0x170b   : > { %v8124_v3 = vmul.f32 %v8121_v45, %v8119_v59 }
0x170d   : > { %v8129_v43 = vadd.f32 %v8126_v8, %v8124_v3 }
0x170f   : > { %10979 = vmatmul.mubr.msk.f32.vlgmr.msra.gmra.mxu1 %vm470_vm2, %v8129_v43 }
0x1710   : > { %10982 = vmatpush3.msra.mxu1 %v9199_v50  ;;  %10985 = vmatprep.mubr.msk.f32.mxu1 %vm11452_vm0, %v14052_v29 }
0x1711   : > { %10983 = vmatprep.subr.mxu1 %v14052_v29 }
0x1712   : > { %10984 = vmatpush3.msra.mxu1 %v9198_v15 }
0x1713   : > { %10986 = vmatmul.mubr.msk.f32.vlgmr.msra.gmra.mxu1 %vm470_vm2, %v8128_v23  ;;  %10988 = vmatprep.subr.mxu1 %v14052_v29 }
0x1714   : > { %10992 = vmatprep.mubr.msk.f32.mxu1 %vm11452_vm0, %v14052_v29  ;;  %10989 = vmatpush3.msra.mxu1 %v9208_v11 }
0x1715   : > { %10990 = vmatprep.subr.mxu1 %v14052_v29 }
0x1716   : > { %10991 = vmatpush3.msra.mxu1 %v9207_v21 }
0x1717   : > { %10995 = vmatprep.subr.mxu1 %v14052_v29 }
0x17cf   : > { %v8204_v20 = vpop.f32.mrf.mxu1 }
0x17d1   : > { %v10980_v55 = vpop.f32.mrf.mxu1 }
0x17d3   : > { %v8277_v1 = vpop.f32.mrf.mxu1 }
0x17d4   : > { %v8278_v62 = vadd.f32 %v8277_v1, %v8204_v20 }
0x17d5   : > { %v10987_v39 = vpop.f32.mrf.mxu1 }
0x17d6   : > { %v8289_v5 = vadd.f32 %v9205_v31, %v8278_v62 }
0x17d8   : > { %v9206_v9 = vmul.f32 -1.442695, %v8289_v5 }
0x17da   : > { %11378 = vpow2.f32 %v9206_v9 }
0x17e7   : > { %v11379_v41 = vpop.eup %11378 }
0x17e8   : > { %v8294_v33 = vadd.f32 1.0, %v11379_v41 }
0x17ea   : > { %11380 = vrcp.f32 %v8294_v33 }
0x17eb   : > { %11382 = vtanh.f32 %v8289_v5 }
0x17f7   : > { %v11381_v48 = vpop.eup %11380 }
0x17f8   : > { %8298 = vrot.lane.b32.xlu0 %v11381_v48, %s11453_s22  ;;  %v11383_v17 = vpop.eup %11382 }
0x17fc   : > { %2315 = vrot.lane.b32.xlu0 %v11387_v0, %s11457_s13 }
0x1800   : > { %4753 = vrot.lane.b32.xlu0 %v11388_v24, %s11457_s13 }
0x1804   : > { %6753 = vrot.lane.b32.xlu0 %v13646_v63, %s11457_s13  ;;  %v8384_v63 = vld [vmem:[%s14036_s5 + $0x10] sm:$0xff] }
0x1808   : > { %8304 = vrot.lane.b32.xlu0 %v9205_v31, %s11457_s13  ;;  %s8568_s13 = sshll.u32 %s271_s14, 4  ;;  %s8569_s13 = int_to_ptr.vmem [resolvable:$true] %s8568_s13 }
0x1809   : > { %s11389_s17 = scalar_lea.vmem %s8569_s13, 128  ;;  %p11396_p0 = scmp.lt.s32.totalorder %s8569_s13, %s11394_s20 }
0x180a   : > { %p11390_p11 = scmp.ne.s32.totalorder %s8569_s13, %s11389_s17  ;;  %p11397_p1 = scmp.lt.s32.totalorder %s11395_s21, %s11389_s17 }
0x180c   : > { %p11391_p12 = pnand %p11390_p11, %p11537_p5  ;;  %p11398_p2 = por %p11397_p1, %p11396_p0 }
0x180e   : > { %p11392_p13 = pneg %p11391_p12 }
0x1810   : > { %p11399_p3 = pnand %p11398_p2, %p11392_p13 }
0x186a   : > { %v8299_v16 = vpop.permute.xlu0 %8298 }
0x186b   : > { %v8301_v34 = vmul.f32 %v11383_v17, %v8299_v16 }
0x186d   : > { %10993 = vmatmul.mubr.msk.f32.vlgmr.msra.gmra.mxu1 %vm470_vm2, %v8301_v34 }
0x186e   : > { %11003 = vmatprep.mubr.msk.f32.mxu1 %vm11452_vm0, %v14052_v29  ;;  %10996 = vmatpush3.msra.mxu1 %v8385_v26  ;;  %v2316_v52 = vpop.permute.xlu0 %2315 }
0x186f   : > { %10997 = vmatprep.subr.mxu1 %v14052_v29  ;;  %v2388_v38 = vadd.f32 %v12403_v2, %v2316_v52 }
0x1870   : > { %10998 = vmatpush3.msra.mxu1 %v8384_v63 }
0x1871   : > { %10999 = vmatprep.subr.mxu1 %v14052_v29  ;;  %v2391_v7 = vadd.f32 %v2388_v38, %v998_v56 }
0x1872   : > { %11000 = vmatpush3.msra.mxu1 %v8383_v60  ;;  %v4754_v46 = vpop.permute.xlu0 %4753 }
0x1873   : > { %11001 = vmatprep.subr.mxu1 %v14052_v29  ;;  %v3658_v40 = vadd.f32 %v3655_v61, %v2391_v7  ;;  %v4826_v42 = vadd.f32 %v13321_v51, %v4754_v46  ;;  %v8467_v51 = vld [vmem:[%s14037_s6 + $0x10] sm:$0xff] }
0x1874   : > { %11002 = vmatpush3.msra.mxu1 %v8382_v27  ;;  %11017 = vmatpush3.msra.mxu0 %v8467_v51 }
0x1875   : > { %v4829_v37 = vadd.f32 %v4826_v42, %v3658_v40  ;;  %11018 = vmatprep.subr.mxu0 %v14052_v29 }
0x1876   : > { %v6754_v18 = vpop.permute.xlu0 %6753  ;;  %11019 = vmatpush3.msra.mxu0 %v8466_v53 }
0x1877   : > { %v5877_v19 = vadd.f32 %v5874_v25, %v4829_v37  ;;  %v6826_v47 = vadd.f32 %v13704_v13, %v6754_v18  ;;  %11020 = vmatprep.subr.mxu0 %v14052_v29  ;;  %v8465_v13 = vld [vmem:[%s14037_s6] sm:$0xff] }
0x1878   : > { %11021 = vmatpush3.msra.mxu0 %v8465_v13  ;;  %v9212_v29 = vld [vmem:[%s14037_s6 + $0x40] ss:$0 sm:$0xff] }
0x1879   : > { %v6829_v2 = vadd.f32 %v6826_v47, %v5877_v19 }
0x187a   : > { %v8305_v30 = vpop.permute.xlu0 %8304 }
0x187b   : > { %v7658_v59 = vadd.f32 %v7655_v54, %v6829_v2 }
0x192d   : > { %v8376_v22 = vpop.f32.mrf.mxu1 }
0x192e   : > { %v8377_v45 = vadd.f32 %v8376_v22, %v8305_v30 }
0x192f   : > { %v10994_v4 = vpop.f32.mrf.mxu1 }
0x1930   : > { %v8380_v3 = vadd.f32 %v8377_v45, %v7658_v59 }
0x1932   : > { %v8381_v8 = vmax.f32 %v8380_v3, 0.0 }
0x1934   : > { %11004 = vmatmul.mubr.msk.f32.vlgmr.msra.gmra.mxu1 %vm6834_vm8, %v8381_v8 }
0x19f4   : > { %v8460_v44 = vpop.f32.mrf.mxu1 }
0x19f5   : > { %v8461_v43 = vadd.f32 %v9210_v6, %v8460_v44 }
0x19f6   : > { %v11005_v50 = vpop.f32.mrf.mxu1 }
0x19f7   : > { %v8464_v15 = vmax.f32 %v8461_v43, 0.0 }
0x19f9   : > { %11023 = vmatmul.mubr.msk.f32.vlgmr.msra.gmra.mxu0 %vm8478_vm10, %v8464_v15 }
0x1ab9   : > { %v8548_v23 = vpop.f32.mrf.mxu0 }
0x1aba   : > { %v8549_v11 = vadd.f32 %v9212_v29, %v8548_v23 }
0x1abb   : > { %v11024_v20 = vpop.f32.mrf.mxu0 }
0x1abc   : > { %8553 = vst.msk [vmem:[%s271_s14] sm:$0xff] %vm8552_vm11, %v8549_v11 }
0x1abd   : > { %11402 = shalt.err (!%p11399_p3)
}
0x1abe   : > { %s11403_s29 = scalar_lea.hbm %s13996_s19, 128  ;;  %s11407_s8 = scalar_lea.hbm %s14038_s7, 256 }
0x1abf   : > { %p11404_p4 = scmp.ne.s32.totalorder %s13996_s19, %s11403_s29  ;;  %p11408_p9 = scmp.lt.s32.totalorder %s13996_s19, %s14038_s7 }
0x1ac0   : > { %p11409_p10 = scmp.lt.s32.totalorder %s11407_s8, %s11403_s29 }
0x1ac1   : > { %p11405_p7 = pnand %p11404_p4, %p11537_p5 }
0x1ac2   : > { %p11410_p11 = por %p11409_p10, %p11408_p9 }
0x1ac3   : > { %p11406_p8 = pneg %p11405_p7 }
0x1ac5   : > { %p11411_p12 = pnand %p11410_p11, %p11406_p8 }
0x1ac7   : > { %11414 = shalt.err (!%p11411_p12)
}
0x1ac8   : > { %11026 = dma.vmem_to_hbm [thread:$0]  (%p11537_p5), %s8569_s13, 128, %s13996_s19, %s8555_s16  }
0x1ac9 PF: > { %p11032_p13 = scmp.ge.s32.totalorder %s11449_s27, 2  ;;  %s8580_s18 = sand.u32 1, %s11437_s24  }
0x1aca   : > { %s8581_s15 = scalar_lea.sflag [#allocation3], %s8580_s18 }
0x1acb   : > { %p11029_p0 = pnand %p11032_p13, %p11541_p6 }
0x1acd   : > { %p11030_p1 = pneg %p11029_p0 }
0x1acf   : > { %11432 = dma.done.wait (%p11030_p1), %s8581_s15, 128  }
0x1ad0   : > { %11434 = vsyncadd (%p11030_p1), %s8581_s15, 4294967168  ;;  %p17_p2 = scmp.ge.s32.totalorder %s11524_s30, 4   ;;  %s14058_s24 = smov %s11441_s25 }
0x1ad1   : > { %s14059_s25 = smov %s11445_s26  ;;  %s14060_s26 = smov %s11535_s10 }
0x1ad2   : > { %s14061_s27 = smov %s11524_s30  ;;  %19 = sbr.rel (!%p17_p2) target bundleno = 3 (0x3), region = 98 }
0x1ad7   :  { %8586 = vsyncpa [#allocation3], 1 }
0x1ad8   :  { %8588 = vsyncpa [#allocation3 + $0x1], 1 }

</bundles_post_ra>
